<compile_context>
chip_gen: v6e
topology: v6e:2x2x1
jax: 0.10.0
libtpu: 0.0.40
codegen_flags: <defaults>
</compile_context>

<pallas_src>
import math
from functools import partial

import jax
import jax.numpy as jnp
from jax import lax
from jax.experimental import pallas as pl
from jax.experimental.pallas import tpu as pltpu

CUTOFF = 6.0
LOG2 = math.log(2.0)


def _round_up(a, b):
    return (a + b - 1) // b * b


def _ssp(v):
    # shifted softplus: softplus(v) - log(2), numerically stable
    return jnp.maximum(v, 0.0) + jnp.log1p(jnp.exp(-jnp.abs(v))) - LOG2


def interaction_block_kernel(
    x_ref,                 # (N_pad, F) f32, resident (full)
    src_ref,               # (TE, 1) i32, this edge tile
    dst_ref,               # (TE, 1) i32
    c_ref,                 # (TE, 1) f32, cosine-cutoff envelope (precomputed)
    ea_ref,                # (TE, G) f32
    w_m1_ref, b_m1_ref,    # (G, F), (1, F)   filter-MLP layer 1
    w_m2_ref, b_m2_ref,    # (F, F), (1, F)   filter-MLP layer 2
    w_l1_ref,              # (F, F)           CFConv.lin1 (no bias)
    w_l2_ref, b_l2_ref,    # (F, F), (1, F)   CFConv.lin2
    w_lin_ref, b_lin_ref,  # (F, F), (1, F)   InteractionBlock.lin
    out_ref,               # (TN, F) f32, resident across the edge axis
    xh_ref,                # scratch (N_pad, F) f32 : x @ w_l1 (computed at e==0)
    acc_ref,               # scratch (TN, F) f32    : message accumulator
    *, onehot_dtype,
):
    n = pl.program_id(0)
    e = pl.program_id(1)
    n_edge_steps = pl.num_programs(1)

    TE = src_ref.shape[0]
    N_pad = x_ref.shape[0]
    TN = acc_ref.shape[0]

    @pl.when(e == 0)
    def _init():
        # CFConv.lin1 (bias-free). Recomputed once per node tile so the kernel stays
        # fully fused and megacore-safe (scratch is per-core); this is cheap vs. the
        # edge-side work.
        xh_ref[...] = jnp.dot(x_ref[...], w_l1_ref[...],
                              preferred_element_type=jnp.float32)
        acc_ref[...] = jnp.zeros_like(acc_ref)

    # --- filter-generating MLP on this edge tile: (TE, G) -> (TE, F) ---
    h = jnp.dot(ea_ref[...], w_m1_ref[...],
                preferred_element_type=jnp.float32) + b_m1_ref[...]
    h = _ssp(h)
    W = jnp.dot(h, w_m2_ref[...],
                preferred_element_type=jnp.float32) + b_m2_ref[...]
    W = W * c_ref[...]                                   # cosine cutoff envelope

    # --- gather xh[src] via one-hot matmul on the MXU (single (TE, N) iota) ---
    node_iota = lax.broadcasted_iota(jnp.int32, (TE, N_pad), 1)
    S = (src_ref[...] == node_iota).astype(onehot_dtype)             # (TE, N_pad)
    x_j = jnp.dot(S, xh_ref[...].astype(onehot_dtype),
                  preferred_element_type=jnp.float32)                # (TE, F)
    msg = x_j * W                                                    # (TE, F) f32

    # --- scatter-add into this node tile: contract over the edge dim with
    #     dot_general (no second (TN, TE) iota materialized) ---
    local_iota = lax.broadcasted_iota(jnp.int32, (TE, TN), 1) + n * TN
    D = (dst_ref[...] == local_iota).astype(onehot_dtype)            # (TE, TN)
    acc_ref[...] += lax.dot_general(
        D, msg.astype(onehot_dtype),
        dimension_numbers=(((0,), (0,)), ((), ())),
        preferred_element_type=jnp.float32)                          # (TN, F)

    # --- finalize on the last edge tile: lin2 -> ssp -> lin ---
    @pl.when(e == n_edge_steps - 1)
    def _finalize():
        y = jnp.dot(acc_ref[...], w_l2_ref[...],
                    preferred_element_type=jnp.float32) + b_l2_ref[...]
        y = _ssp(y)
        y = jnp.dot(y, w_lin_ref[...],
                    preferred_element_type=jnp.float32) + b_lin_ref[...]
        out_ref[...] = y


def interaction_block(x, edge_index, edge_weight, edge_attr, params, *,
                      edge_tile=256, node_tile=128, use_bf16_onehot=True):
    """Pallas wrapper. edge_index is (2, E) int32: row 0 = src (j), row 1 = dst (i).
    All weights are stored [in, out] so the kernel computes x @ W (== torch x @ W.T)."""
    N, F = x.shape
    E = edge_index.shape[1]
    G = edge_attr.shape[1]

    # --- tile sizes / padding (8-sublane aligned) ---
    node_tile = int(min(node_tile, _round_up(N, 8)))
    edge_tile = int(min(edge_tile, _round_up(E, 8)))
    N_pad = _round_up(N, node_tile)
    E_pad = _round_up(E, edge_tile)
    n_node_tiles = N_pad // node_tile
    n_edge_tiles = E_pad // edge_tile

    x_p = jnp.zeros((N_pad, F), jnp.float32).at[:N].set(x.astype(jnp.float32))

    src = edge_index[0].astype(jnp.int32)
    dst = edge_index[1].astype(jnp.int32)
    ew = edge_weight.astype(jnp.float32)
    # Cosine cutoff computed lane-dense in the wrapper (one tiny fused XLA op).
    # TODO(synk): torch_geometric SchNet CFConv uses exactly this formula (no hard
    # r < cutoff mask); edges at r == cutoff get C == 0 anyway.
    C = 0.5 * (jnp.cos(ew * (math.pi / CUTOFF)) + 1.0)

    def pad_e(v, fill):
        return jnp.full((E_pad,), fill, v.dtype).at[:E].set(v)

    src_p = pad_e(src, 0).reshape(E_pad, 1)
    dst_p = pad_e(dst, -1).reshape(E_pad, 1)   # -1 never matches a node -> dropped
    c_p = pad_e(C, 0.0).reshape(E_pad, 1)
    ea_p = jnp.zeros((E_pad, G), jnp.float32).at[:E].set(edge_attr.astype(jnp.float32))

    f32 = jnp.float32
    w_m1 = params["w_m1"].astype(f32);  b_m1 = params["b_m1"].reshape(1, F).astype(f32)
    w_m2 = params["w_m2"].astype(f32);  b_m2 = params["b_m2"].reshape(1, F).astype(f32)
    w_l1 = params["w_l1"].astype(f32)
    w_l2 = params["w_l2"].astype(f32);  b_l2 = params["b_l2"].reshape(1, F).astype(f32)
    w_lin = params["w_lin"].astype(f32); b_lin = params["b_lin"].reshape(1, F).astype(f32)

    full = lambda shape: pl.BlockSpec(shape, lambda n, e: (0, 0))
    edge = lambda last: pl.BlockSpec((edge_tile, last), lambda n, e: (e, 0))

    in_specs = [
        pl.BlockSpec((N_pad, F), lambda n, e: (0, 0)),   # x (resident)
        edge(1),                                         # src
        edge(1),                                         # dst
        edge(1),                                         # cutoff envelope
        edge(G),                                         # edge_attr
        full((G, F)), full((1, F)),                      # w_m1, b_m1
        full((F, F)), full((1, F)),                      # w_m2, b_m2
        full((F, F)),                                    # w_l1
        full((F, F)), full((1, F)),                      # w_l2, b_l2
        full((F, F)), full((1, F)),                      # w_lin, b_lin
    ]
    out_specs = pl.BlockSpec((node_tile, F), lambda n, e: (n, 0))
    scratch_shapes = [
        pltpu.VMEM((N_pad, F), jnp.float32),             # xh = x @ w_l1
        pltpu.VMEM((node_tile, F), jnp.float32),         # accumulator
    ]

    # Advisory cost estimate so XLA can schedule/overlap this (tiny) call.
    flops = 2 * (
        n_node_tiles * (E_pad * G * F + E_pad * F * F + N_pad * F * F
                        + E_pad * N_pad * F)             # filter MLP + lin1 + gather
        + E_pad * N_pad * F                              # scatter
        + 2 * N_pad * F * F)                             # lin2 + lin
    transcendentals = 2 * (n_node_tiles * E_pad * F + N_pad * F)
    bytes_accessed = 4 * (x_p.size + src_p.size + dst_p.size + c_p.size + ea_p.size
                          + w_m1.size + b_m1.size + w_m2.size + b_m2.size + w_l1.size
                          + w_l2.size + b_l2.size + w_lin.size + b_lin.size
                          + N_pad * F)

    # Explicit VMEM budget (keeps v7x's 64 MiB/TC ceiling in mind).
    onehot_bytes = 2 if use_bf16_onehot else 4
    vmem_est = (
        4 * N_pad * F * 2                                # x resident + xh scratch
        + 4 * node_tile * F * 3                          # acc + double-buffered out
        + 4 * (G * F + 4 * F * F + 4 * F) * 2            # weights (+ buffering headroom)
        + 2 * 4 * edge_tile * (G + 3)                    # double-buffered edge-tile inputs
        + onehot_bytes * edge_tile * (N_pad + node_tile) # S, D one-hots
        + 4 * edge_tile * F * 4                          # h, W, x_j, msg temporaries
    )
    vmem_limit = int(min(max(2 * vmem_est, 16 * 1024 * 1024), 48 * 1024 * 1024))

    kernel = partial(
        interaction_block_kernel,
        onehot_dtype=jnp.bfloat16 if use_bf16_onehot else jnp.float32)

    out = pl.pallas_call(
        kernel,
        out_shape=jax.ShapeDtypeStruct((N_pad, F), jnp.float32),
        grid_spec=pltpu.PrefetchScalarGridSpec(
            num_scalar_prefetch=0,
            grid=(n_node_tiles, n_edge_tiles),
            in_specs=in_specs,
            out_specs=out_specs,
            scratch_shapes=scratch_shapes),
        compiler_params=pltpu.CompilerParams(
            dimension_semantics=("parallel", "arbitrary"),
            vmem_limit_bytes=vmem_limit),
        cost_estimate=pl.CostEstimate(
            flops=int(flops),
            transcendentals=int(transcendentals),
            bytes_accessed=int(bytes_accessed)),
    )(x_p, src_p, dst_p, c_p, ea_p,
      w_m1, b_m1, w_m2, b_m2, w_l1, w_l2, b_l2, w_lin, b_lin)
    return out[:N]


def reference(x, edge_index, edge_weight, edge_attr, params):
    """Pure-JAX reference (mirrors torch_geometric SchNet InteractionBlock)."""
    ssp = lambda v: jax.nn.softplus(v) - LOG2
    src, dst = edge_index[0], edge_index[1]
    h = ssp(edge_attr @ params["w_m1"] + params["b_m1"])
    W = h @ params["w_m2"] + params["b_m2"]
    C = 0.5 * (jnp.cos(edge_weight * math.pi / CUTOFF) + 1.0)
    W = W * C[:, None]
    xh = x @ params["w_l1"]
    msg = xh[src] * W
    agg = jax.ops.segment_sum(msg, dst, num_segments=x.shape[0])
    y = ssp(agg @ params["w_l2"] + params["b_l2"])
    return y @ params["w_lin"] + params["b_lin"]


if __name__ == "__main__":
    # Small shapes consistent with ModelParams (hidden_channels = num_features = 128,
    # 50 gaussians, cutoff 6.0); node/edge counts shrunk from 4096/65536.
    N, F, E, G = 256, 128, 1024, 50

    key = jax.random.PRNGKey(0)
    ks = jax.random.split(key, 16)

    x = jax.random.normal(ks[0], (N, F), jnp.float32)
    src = jax.random.randint(ks[1], (E,), 0, N, dtype=jnp.int32)
    dst = jax.random.randint(ks[2], (E,), 0, N, dtype=jnp.int32)
    edge_index = jnp.stack([src, dst])
    edge_weight = jax.random.uniform(ks[3], (E,), jnp.float32, 1.0, 6.0)

    # GaussianSmearing(start=0, stop=6, num_gaussians=50)
    offset = jnp.linspace(0.0, 6.0, G)
    coeff = -0.5 / (offset[1] - offset[0]) ** 2
    edge_attr = jnp.exp(coeff * (edge_weight[:, None] - offset[None, :]) ** 2)

    s = 0.1  # deterministic synthetic weight init
    params = {
        "w_m1":  s * jax.random.normal(ks[4],  (G, F), jnp.float32),
        "b_m1":  s * jax.random.normal(ks[5],  (F,),  jnp.float32),
        "w_m2":  s * jax.random.normal(ks[6],  (F, F), jnp.float32),
        "b_m2":  s * jax.random.normal(ks[7],  (F,),  jnp.float32),
        "w_l1":  s * jax.random.normal(ks[8],  (F, F), jnp.float32),
        "w_l2":  s * jax.random.normal(ks[9],  (F, F), jnp.float32),
        "b_l2":  s * jax.random.normal(ks[10], (F,),  jnp.float32),
        "w_lin": s * jax.random.normal(ks[11], (F, F), jnp.float32),
        "b_lin": s * jax.random.normal(ks[12], (F,),  jnp.float32),
    }

    ref = reference(x, edge_index, edge_weight, edge_attr, params)

    # f32 path (exact structure check, tight tolerance)
    out_f32 = interaction_block(x, edge_index, edge_weight, edge_attr, params,
                                use_bf16_onehot=False)
    out_f32 = jax.block_until_ready(out_f32)
    assert out_f32.shape == (N, F) and out_f32.dtype == jnp.float32
    assert jnp.allclose(out_f32, ref, atol=5e-4, rtol=5e-4), "f32 path mismatch vs reference"

    # fast path: bf16 one-hot gather/scatter with f32 accumulation (looser tolerance)
    out_bf16 = interaction_block(x, edge_index, edge_weight, edge_attr, params,
                                 use_bf16_onehot=True)
    out_bf16 = jax.block_until_ready(out_bf16)
    assert out_bf16.shape == (N, F) and out_bf16.dtype == jnp.float32
    assert jnp.allclose(out_bf16, ref, atol=3e-2, rtol=3e-2), "bf16 path mismatch vs reference"

    print("KERNEL_OK")
</pallas_src>

<mosaic_0001>
module attributes {stable_mosaic.version = 11 : i64} {
  func.func @interaction_block_kernel(%arg0: i32, %arg1: i32, %arg2: memref<256x128xf32, #tpu.memory_space<vmem>>, %arg3: memref<256x1xi32, #tpu.memory_space<vmem>>, %arg4: memref<256x1xi32, #tpu.memory_space<vmem>>, %arg5: memref<256x1xf32, #tpu.memory_space<vmem>>, %arg6: memref<256x50xf32, #tpu.memory_space<vmem>>, %arg7: memref<50x128xf32, #tpu.memory_space<vmem>>, %arg8: memref<1x128xf32, #tpu.memory_space<vmem>>, %arg9: memref<128x128xf32, #tpu.memory_space<vmem>>, %arg10: memref<1x128xf32, #tpu.memory_space<vmem>>, %arg11: memref<128x128xf32, #tpu.memory_space<vmem>>, %arg12: memref<128x128xf32, #tpu.memory_space<vmem>>, %arg13: memref<1x128xf32, #tpu.memory_space<vmem>>, %arg14: memref<128x128xf32, #tpu.memory_space<vmem>>, %arg15: memref<1x128xf32, #tpu.memory_space<vmem>>, %arg16: memref<128x128xf32, #tpu.memory_space<vmem>>, %arg17: memref<256x128xf32, #tpu.memory_space<vmem>>, %arg18: memref<128x128xf32, #tpu.memory_space<vmem>>) attributes {dimension_semantics = [#tpu.dimension_semantics<parallel>, #tpu.dimension_semantics<arbitrary>], iteration_bounds = array<i64: 2, 4>, scalar_prefetch = 0 : i64, scratch_operands = 2 : i64, tpu.core_type = #tpu.core_type<tc>, window_params = [{pipeline_mode = #tpu.pipeline_mode<synchronous>, transform_indices = @transform_0, window_bounds = array<i64: 256, 128>}, {transform_indices = @transform_1, window_bounds = array<i64: 256, 1>}, {transform_indices = @transform_2, window_bounds = array<i64: 256, 1>}, {transform_indices = @transform_3, window_bounds = array<i64: 256, 1>}, {transform_indices = @transform_4, window_bounds = array<i64: 256, 50>}, {pipeline_mode = #tpu.pipeline_mode<synchronous>, transform_indices = @transform_5, window_bounds = array<i64: 50, 128>}, {pipeline_mode = #tpu.pipeline_mode<synchronous>, transform_indices = @transform_6, window_bounds = array<i64: 1, 128>}, {pipeline_mode = #tpu.pipeline_mode<synchronous>, transform_indices = @transform_7, window_bounds = array<i64: 128, 128>}, {pipeline_mode = #tpu.pipeline_mode<synchronous>, transform_indices = @transform_8, window_bounds = array<i64: 1, 128>}, {pipeline_mode = #tpu.pipeline_mode<synchronous>, transform_indices = @transform_9, window_bounds = array<i64: 128, 128>}, {pipeline_mode = #tpu.pipeline_mode<synchronous>, transform_indices = @transform_10, window_bounds = array<i64: 128, 128>}, {pipeline_mode = #tpu.pipeline_mode<synchronous>, transform_indices = @transform_11, window_bounds = array<i64: 1, 128>}, {pipeline_mode = #tpu.pipeline_mode<synchronous>, transform_indices = @transform_12, window_bounds = array<i64: 128, 128>}, {pipeline_mode = #tpu.pipeline_mode<synchronous>, transform_indices = @transform_13, window_bounds = array<i64: 1, 128>}, {transform_indices = @transform_14, window_bounds = array<i64: 128, 128>}]} {
    %c0_i32 = arith.constant 0 : i32
    %0 = arith.cmpi eq, %arg1, %c0_i32 : i32
    %1 = arith.extui %0 : i1 to i32
    %c0_i32_0 = arith.constant 0 : i32
    %2 = arith.cmpi ne, %1, %c0_i32_0 : i32
    scf.if %2 {
      %c0_29 = arith.constant 0 : index
      %c0_30 = arith.constant 0 : index
      %52 = vector.load %arg2[%c0_29, %c0_30] : memref<256x128xf32, #tpu.memory_space<vmem>>, vector<256x128xf32>
      %c0_31 = arith.constant 0 : index
      %c0_32 = arith.constant 0 : index
      %53 = vector.load %arg11[%c0_31, %c0_32] : memref<128x128xf32, #tpu.memory_space<vmem>>, vector<128x128xf32>
      %cst_33 = arith.constant dense<0.000000e+00> : vector<256x128xf32>
      %54 = tpu.matmul %52, %53, %cst_33 {dimension_numbers = #tpu.dot_dimension_numbers<[1], [0], [0], [1], [0, 0, 1, 1], [], []>} : vector<256x128xf32>, vector<128x128xf32>, vector<256x128xf32> -> vector<256x128xf32>
      %c0_34 = arith.constant 0 : index
      %c0_35 = arith.constant 0 : index
      %55 = vector.load %arg17[%c0_34, %c0_35] : memref<256x128xf32, #tpu.memory_space<vmem>>, vector<256x128xf32>
      tpu.vector_store %arg17[%c0_34, %c0_35], %54 {strides = array<i32>} : memref<256x128xf32, #tpu.memory_space<vmem>>, vector<256x128xf32>,
      %cst_36 = arith.constant 0.000000e+00 : f32
      %56 = vector.broadcast %cst_36 : f32 to vector<128x128xf32>
      %c0_37 = arith.constant 0 : index
      %c0_38 = arith.constant 0 : index
      %57 = vector.load %arg18[%c0_37, %c0_38] : memref<128x128xf32, #tpu.memory_space<vmem>>, vector<128x128xf32>
      tpu.vector_store %arg18[%c0_37, %c0_38], %56 {strides = array<i32>} : memref<128x128xf32, #tpu.memory_space<vmem>>, vector<128x128xf32>,
    } else {
    }
    %c0 = arith.constant 0 : index
    %c0_1 = arith.constant 0 : index
    %3 = vector.load %arg6[%c0, %c0_1] : memref<256x50xf32, #tpu.memory_space<vmem>>, vector<256x50xf32>
    %c0_2 = arith.constant 0 : index
    %c0_3 = arith.constant 0 : index
    %4 = vector.load %arg7[%c0_2, %c0_3] : memref<50x128xf32, #tpu.memory_space<vmem>>, vector<50x128xf32>
    %cst = arith.constant dense<0.000000e+00> : vector<256x128xf32>
    %5 = tpu.matmul %3, %4, %cst {dimension_numbers = #tpu.dot_dimension_numbers<[1], [0], [0], [1], [0, 0, 1, 1], [], []>} : vector<256x50xf32>, vector<50x128xf32>, vector<256x128xf32> -> vector<256x128xf32>
    %c0_4 = arith.constant 0 : index
    %c0_5 = arith.constant 0 : index
    %6 = vector.load %arg8[%c0_4, %c0_5] : memref<1x128xf32, #tpu.memory_space<vmem>>, vector<1x128xf32>
    %7 = vector.broadcast %6 : vector<1x128xf32> to vector<256x128xf32>
    %8 = arith.addf %5, %7 : vector<256x128xf32>
    %cst_6 = arith.constant 0.000000e+00 : f32
    %9 = vector.broadcast %cst_6 : f32 to vector<256x128xf32>
    %10 = arith.maximumf %8, %9 : vector<256x128xf32>
    %11 = math.absf %8 : vector<256x128xf32>
    %cst_7 = arith.constant 0.000000e+00 : f32
    %12 = vector.broadcast %cst_7 : f32 to vector<256x128xf32>
    %13 = arith.subf %12, %11 : vector<256x128xf32>
    %14 = math.exp %13 : vector<256x128xf32>
    %15 = math.log1p %14 : vector<256x128xf32>
    %16 = arith.addf %10, %15 : vector<256x128xf32>
    %cst_8 = arith.constant 0.693147182 : f32
    %17 = vector.broadcast %cst_8 : f32 to vector<256x128xf32>
    %18 = arith.subf %16, %17 : vector<256x128xf32>
    %c0_9 = arith.constant 0 : index
    %c0_10 = arith.constant 0 : index
    %19 = vector.load %arg9[%c0_9, %c0_10] : memref<128x128xf32, #tpu.memory_space<vmem>>, vector<128x128xf32>
    %cst_11 = arith.constant dense<0.000000e+00> : vector<256x128xf32>
    %20 = tpu.matmul %18, %19, %cst_11 {dimension_numbers = #tpu.dot_dimension_numbers<[1], [0], [0], [1], [0, 0, 1, 1], [], []>} : vector<256x128xf32>, vector<128x128xf32>, vector<256x128xf32> -> vector<256x128xf32>
    %c0_12 = arith.constant 0 : index
    %c0_13 = arith.constant 0 : index
    %21 = vector.load %arg10[%c0_12, %c0_13] : memref<1x128xf32, #tpu.memory_space<vmem>>, vector<1x128xf32>
    %22 = vector.broadcast %21 : vector<1x128xf32> to vector<256x128xf32>
    %23 = arith.addf %20, %22 : vector<256x128xf32>
    %c0_14 = arith.constant 0 : index
    %c0_15 = arith.constant 0 : index
    %24 = vector.load %arg5[%c0_14, %c0_15] : memref<256x1xf32, #tpu.memory_space<vmem>>, vector<256x1xf32>
    %25 = vector.broadcast %24 : vector<256x1xf32> to vector<256x128xf32>
    %26 = arith.mulf %23, %25 : vector<256x128xf32>
    %27 = tpu.iota {dimensions = array<i32: 1>} : vector<256x256xi32>
    %c0_16 = arith.constant 0 : index
    %c0_17 = arith.constant 0 : index
    %28 = vector.load %arg3[%c0_16, %c0_17] : memref<256x1xi32, #tpu.memory_space<vmem>>, vector<256x1xi32>
    %29 = vector.broadcast %28 : vector<256x1xi32> to vector<256x256xi32>
    %30 = arith.cmpi eq, %29, %27 : vector<256x256xi32>
    %31 = arith.extui %30 : vector<256x256xi1> to vector<256x256xi32>
    %32 = arith.sitofp %31 : vector<256x256xi32> to vector<256x256xf32>
    %c0_18 = arith.constant 0 : index
    %c0_19 = arith.constant 0 : index
    %33 = vector.load %arg17[%c0_18, %c0_19] : memref<256x128xf32, #tpu.memory_space<vmem>>, vector<256x128xf32>
    %cst_20 = arith.constant dense<0.000000e+00> : vector<256x128xf32>
    %34 = tpu.matmul %32, %33, %cst_20 {dimension_numbers = #tpu.dot_dimension_numbers<[1], [0], [0], [1], [0, 0, 1, 1], [], []>} : vector<256x256xf32>, vector<256x128xf32>, vector<256x128xf32> -> vector<256x128xf32>
    %35 = arith.mulf %34, %26 : vector<256x128xf32>
    %36 = tpu.iota {dimensions = array<i32: 1>} : vector<256x128xi32>
    %c128_i32 = arith.constant 128 : i32
    %37 = arith.muli %arg0, %c128_i32 : i32
    %38 = vector.broadcast %37 : i32 to vector<256x128xi32>
    %39 = arith.addi %36, %38 : vector<256x128xi32>
    %c0_21 = arith.constant 0 : index
    %c0_22 = arith.constant 0 : index
    %40 = vector.load %arg4[%c0_21, %c0_22] : memref<256x1xi32, #tpu.memory_space<vmem>>, vector<256x1xi32>
    %41 = vector.broadcast %40 : vector<256x1xi32> to vector<256x128xi32>
    %42 = arith.cmpi eq, %41, %39 : vector<256x128xi32>
    %43 = arith.extui %42 : vector<256x128xi1> to vector<256x128xi32>
    %44 = arith.sitofp %43 : vector<256x128xi32> to vector<256x128xf32>
    %c0_23 = arith.constant 0 : index
    %c0_24 = arith.constant 0 : index
    %45 = vector.load %arg18[%c0_23, %c0_24] : memref<128x128xf32, #tpu.memory_space<vmem>>, vector<128x128xf32>
    %cst_25 = arith.constant dense<0.000000e+00> : vector<128x128xf32>
    %46 = tpu.matmul %44, %35, %cst_25 {dimension_numbers = #tpu.dot_dimension_numbers<[0], [0], [1], [1], [0, 1, 1, 1], [], []>} : vector<256x128xf32>, vector<256x128xf32>, vector<128x128xf32> -> vector<128x128xf32>
    %47 = arith.addf %45, %46 : vector<128x128xf32>
    %c0_26 = arith.constant 0 : index
    %c0_27 = arith.constant 0 : index
    %48 = vector.load %arg18[%c0_26, %c0_27] : memref<128x128xf32, #tpu.memory_space<vmem>>, vector<128x128xf32>
    tpu.vector_store %arg18[%c0_26, %c0_27], %47 {strides = array<i32>} : memref<128x128xf32, #tpu.memory_space<vmem>>, vector<128x128xf32>,
    %c3_i32 = arith.constant 3 : i32
    %49 = arith.cmpi eq, %arg1, %c3_i32 : i32
    %50 = arith.extui %49 : i1 to i32
    %c0_i32_28 = arith.constant 0 : i32
    %51 = arith.cmpi ne, %50, %c0_i32_28 : i32
    scf.if %51 {
      %c0_29 = arith.constant 0 : index
      %c0_30 = arith.constant 0 : index
      %52 = vector.load %arg18[%c0_29, %c0_30] : memref<128x128xf32, #tpu.memory_space<vmem>>, vector<128x128xf32>
      %c0_31 = arith.constant 0 : index
      %c0_32 = arith.constant 0 : index
      %53 = vector.load %arg12[%c0_31, %c0_32] : memref<128x128xf32, #tpu.memory_space<vmem>>, vector<128x128xf32>
      %cst_33 = arith.constant dense<0.000000e+00> : vector<128x128xf32>
      %54 = tpu.matmul %52, %53, %cst_33 {dimension_numbers = #tpu.dot_dimension_numbers<[1], [0], [0], [1], [0, 0, 1, 1], [], []>} : vector<128x128xf32>, vector<128x128xf32>, vector<128x128xf32> -> vector<128x128xf32>
      %c0_34 = arith.constant 0 : index
      %c0_35 = arith.constant 0 : index
      %55 = vector.load %arg13[%c0_34, %c0_35] : memref<1x128xf32, #tpu.memory_space<vmem>>, vector<1x128xf32>
      %56 = vector.broadcast %55 : vector<1x128xf32> to vector<128x128xf32>
      %57 = arith.addf %54, %56 : vector<128x128xf32>
      %cst_36 = arith.constant 0.000000e+00 : f32
      %58 = vector.broadcast %cst_36 : f32 to vector<128x128xf32>
      %59 = arith.maximumf %57, %58 : vector<128x128xf32>
      %60 = math.absf %57 : vector<128x128xf32>
      %cst_37 = arith.constant 0.000000e+00 : f32
      %61 = vector.broadcast %cst_37 : f32 to vector<128x128xf32>
      %62 = arith.subf %61, %60 : vector<128x128xf32>
      %63 = math.exp %62 : vector<128x128xf32>
      %64 = math.log1p %63 : vector<128x128xf32>
      %65 = arith.addf %59, %64 : vector<128x128xf32>
      %cst_38 = arith.constant 0.693147182 : f32
      %66 = vector.broadcast %cst_38 : f32 to vector<128x128xf32>
      %67 = arith.subf %65, %66 : vector<128x128xf32>
      %c0_39 = arith.constant 0 : index
      %c0_40 = arith.constant 0 : index
      %68 = vector.load %arg14[%c0_39, %c0_40] : memref<128x128xf32, #tpu.memory_space<vmem>>, vector<128x128xf32>
      %cst_41 = arith.constant dense<0.000000e+00> : vector<128x128xf32>
      %69 = tpu.matmul %67, %68, %cst_41 {dimension_numbers = #tpu.dot_dimension_numbers<[1], [0], [0], [1], [0, 0, 1, 1], [], []>} : vector<128x128xf32>, vector<128x128xf32>, vector<128x128xf32> -> vector<128x128xf32>
      %c0_42 = arith.constant 0 : index
      %c0_43 = arith.constant 0 : index
      %70 = vector.load %arg15[%c0_42, %c0_43] : memref<1x128xf32, #tpu.memory_space<vmem>>, vector<1x128xf32>
      %71 = vector.broadcast %70 : vector<1x128xf32> to vector<128x128xf32>
      %72 = arith.addf %69, %71 : vector<128x128xf32>
      %c0_44 = arith.constant 0 : index
      %c0_45 = arith.constant 0 : index
      %73 = vector.load %arg16[%c0_44, %c0_45] : memref<128x128xf32, #tpu.memory_space<vmem>>, vector<128x128xf32>
      tpu.vector_store %arg16[%c0_44, %c0_45], %72 {strides = array<i32>} : memref<128x128xf32, #tpu.memory_space<vmem>>, vector<128x128xf32>,
    } else {
    }
    return
  }
  func.func @transform_0(%arg0: i32, %arg1: i32) -> (i32, i32) {
    %c0_i32 = arith.constant 0 : i32
    %c0_i32_0 = arith.constant 0 : i32
    %c0_i32_1 = arith.constant 0 : i32
    return %c0_i32, %c0_i32_0 : i32, i32
  }
  func.func @transform_1(%arg0: i32, %arg1: i32) -> (i32, i32) {
    %c0_i32 = arith.constant 0 : i32
    %c0_i32_0 = arith.constant 0 : i32
    return %arg1, %c0_i32 : i32, i32
  }
  func.func @transform_2(%arg0: i32, %arg1: i32) -> (i32, i32) {
    %c0_i32 = arith.constant 0 : i32
    %c0_i32_0 = arith.constant 0 : i32
    return %arg1, %c0_i32 : i32, i32
  }
  func.func @transform_3(%arg0: i32, %arg1: i32) -> (i32, i32) {
    %c0_i32 = arith.constant 0 : i32
    %c0_i32_0 = arith.constant 0 : i32
    return %arg1, %c0_i32 : i32, i32
  }
  func.func @transform_4(%arg0: i32, %arg1: i32) -> (i32, i32) {
    %c0_i32 = arith.constant 0 : i32
    %c0_i32_0 = arith.constant 0 : i32
    return %arg1, %c0_i32 : i32, i32
  }
  func.func @transform_5(%arg0: i32, %arg1: i32) -> (i32, i32) {
    %c0_i32 = arith.constant 0 : i32
    %c0_i32_0 = arith.constant 0 : i32
    %c0_i32_1 = arith.constant 0 : i32
    return %c0_i32, %c0_i32_0 : i32, i32
  }
  func.func @transform_6(%arg0: i32, %arg1: i32) -> (i32, i32) {
    %c0_i32 = arith.constant 0 : i32
    %c0_i32_0 = arith.constant 0 : i32
    %c0_i32_1 = arith.constant 0 : i32
    return %c0_i32, %c0_i32_0 : i32, i32
  }
  func.func @transform_7(%arg0: i32, %arg1: i32) -> (i32, i32) {
    %c0_i32 = arith.constant 0 : i32
    %c0_i32_0 = arith.constant 0 : i32
    %c0_i32_1 = arith.constant 0 : i32
    return %c0_i32, %c0_i32_0 : i32, i32
  }
  func.func @transform_8(%arg0: i32, %arg1: i32) -> (i32, i32) {
    %c0_i32 = arith.constant 0 : i32
    %c0_i32_0 = arith.constant 0 : i32
    %c0_i32_1 = arith.constant 0 : i32
    return %c0_i32, %c0_i32_0 : i32, i32
  }
  func.func @transform_9(%arg0: i32, %arg1: i32) -> (i32, i32) {
    %c0_i32 = arith.constant 0 : i32
    %c0_i32_0 = arith.constant 0 : i32
    %c0_i32_1 = arith.constant 0 : i32
    return %c0_i32, %c0_i32_0 : i32, i32
  }
  func.func @transform_10(%arg0: i32, %arg1: i32) -> (i32, i32) {
    %c0_i32 = arith.constant 0 : i32
    %c0_i32_0 = arith.constant 0 : i32
    %c0_i32_1 = arith.constant 0 : i32
    return %c0_i32, %c0_i32_0 : i32, i32
  }
  func.func @transform_11(%arg0: i32, %arg1: i32) -> (i32, i32) {
    %c0_i32 = arith.constant 0 : i32
    %c0_i32_0 = arith.constant 0 : i32
    %c0_i32_1 = arith.constant 0 : i32
    return %c0_i32, %c0_i32_0 : i32, i32
  }
  func.func @transform_12(%arg0: i32, %arg1: i32) -> (i32, i32) {
    %c0_i32 = arith.constant 0 : i32
    %c0_i32_0 = arith.constant 0 : i32
    %c0_i32_1 = arith.constant 0 : i32
    return %c0_i32, %c0_i32_0 : i32, i32
  }
  func.func @transform_13(%arg0: i32, %arg1: i32) -> (i32, i32) {
    %c0_i32 = arith.constant 0 : i32
    %c0_i32_0 = arith.constant 0 : i32
    %c0_i32_1 = arith.constant 0 : i32
    return %c0_i32, %c0_i32_0 : i32, i32
  }
  func.func @transform_14(%arg0: i32, %arg1: i32) -> (i32, i32) {
    %c0_i32 = arith.constant 0 : i32
    %c0_i32_0 = arith.constant 0 : i32
    return %arg0, %c0_i32 : i32, i32
  }
}

</mosaic_0001>

<bundles_post_ra>
// kernel: tpu_custom_call.1
= control target key start
LH: loop header
LB: loop body
LE: loop exit
PB: predicated region body
PF: predicated region fallthrough
CT: control target
= control target key end

     0   :  { %s7895_s0 = inlined_call_operand.vmem [shape: f32[256,128], index: 0, kind: input, shape index: {}]   ;;  %s7896_s1 = inlined_call_operand.vmem [shape: s32[1024,1], index: 1, kind: input, shape index: {}]   ;;  %s7897_s2 = inlined_call_operand.vmem [shape: s32[1024,1], index: 2, kind: input, shape index: {}]   ;;  %s7898_s3 = inlined_call_operand.vmem [shape: f32[1024,1], index: 3, kind: input, shape index: {}]   ;;  %s7899_s4 = inlined_call_operand.vmem [shape: f32[1024,50], index: 4, kind: input, shape index: {}]   ;;  %s7900_s5 = inlined_call_operand.vmem [shape: f32[50,128], index: 5, kind: input, shape index: {}]   ;;  %s7901_s6 = inlined_call_operand.vmem [shape: f32[1,128], index: 6, kind: input, shape index: {}]   ;;  %s7902_s7 = inlined_call_operand.vmem [shape: f32[128,128], index: 7, kind: input, shape index: {}]   ;;  %s7903_s8 = inlined_call_operand.vmem [shape: f32[1,128], index: 8, kind: input, shape index: {}]   ;;  %s7904_s9 = inlined_call_operand.vmem [shape: f32[128,128], index: 9, kind: input, shape index: {}]   ;;  %s7905_s10 = inlined_call_operand.vmem [shape: f32[128,128], index: 10, kind: input, shape index: {}]   ;;  %s7906_s11 = inlined_call_operand.vmem [shape: f32[1,128], index: 11, kind: input, shape index: {}]   ;;  %s7907_s12 = inlined_call_operand.vmem [shape: f32[128,128], index: 12, kind: input, shape index: {}]   ;;  %s7908_s13 = inlined_call_operand.vmem [shape: f32[1,128], index: 13, kind: input, shape index: {}]   ;;  %s7909_s14 = inlined_call_operand.hbm [shape: f32[256,128], index: 14, kind: output, shape index: {}]  }
   0x1   :  { %7954 = sst [smem:[#allocation73_spill]] %s7909_s14 }
   0x2   :  { %19 = vsyncpa [#allocation5], 0 }
   0x3   :  { %21 = vsyncpa [#allocation5 + $0x1], 0  ;;  %s5547_s29 = smov 0   ;;  %s5549_s30 = smov 0  }
   0x4   :  { %s5551_s15 = smov 0   ;;  %s5553_s16 = smov 0  }
   0x5   :  { %s5555_s17 = smov 0   ;;  %s5557_s18 = smov 0  }
   0x6   :  { %s5559_s19 = smov 0   ;;  %s5561_s20 = smov 0  }
   0x7 LB: > { %7955 = sst [smem:[#allocation7_spill]] %s5435_s29  ;;  %s4075_s21 = sadd.s32 4294967295, %s5463_s20   ;;  %s5463_s20 = sphi %s5561_s20, %s27_s20   ;;  %s5459_s19 = sphi %s5559_s19, %s8200_s19   ;;  %s5455_s18 = sphi %s5557_s18, %s8199_s18   ;;  %s5451_s17 = sphi %s5555_s17, %s8198_s17   ;;  %s5447_s16 = sphi %s5553_s16, %s8197_s16   ;;  %s5443_s15 = sphi %s5551_s15, %s8196_s15   ;;  %s5439_s30 = sphi %s5549_s30, %s8195_s30   ;;  %s5435_s29 = sphi %s5547_s29, %s8194_s29  }
   0x8   : > { %7956 = sst [smem:[#allocation8_spill]] %s5439_s30  ;;  %s4076_s22 = sadd.s32 4294967294, %s5463_s20  }
   0x9   : > { %7957 = sst [smem:[#allocation9_spill]] %s5443_s15  ;;  %s36_s23 = sadd.s32 1, %s5455_s18 }
   0xa   : > { %7958 = sst [smem:[#allocation10_spill]] %s5455_s18  ;;  %p37_p0 = scmp.ge.s32.totalorder %s36_s23, 4 }
   0xb   : > { %7959 = sst [smem:[#allocation11_spill]] %s5459_s19  ;;  %s39_s24 = sadd.s32 1, %s5459_s19 }
   0xc   : > { %7960 = sst [smem:[#allocation12_spill]] %s5463_s20  ;;  %p370_p1 = scmp.ne.s32.totalorder %s5443_s15, %s5439_s30 }
   0xd   : > { %p371_p2 = scmp.eq.s32.totalorder %s4075_s21, 7  ;;  %s8202_s23 = smov (%p37_p0, %s36_s23), 0 }
   0xe   : > { %7961 = sst [smem:[#allocation13_spill]] %s8202_s23  ;;  %s8204_s24 = smov (!%p37_p0, %s39_s24), %s5459_s19 }
   0xf   : > { %p5596_p3 = por %p371_p2, %p370_p1  ;;  %p376_p4 = scmp.ne.s32.totalorder %s5439_s30, %s5435_s29 }
  0x10   : > { %p41_p5 = scmp.ge.s32.totalorder %s8204_s24, 2  ;;  %p377_p6 = scmp.eq.s32.totalorder %s4076_s22, 7 }
  0x11   : > { %s7962_s25 = scalar_select %p5596_p3, 1, 0 }
  0x12   : > { %p4079_p7 = scmp.ge.s32.totalorder %s5463_s20, 1  ;;  %p461_p8 = scmp.lt.s32.totalorder %s5463_s20, 9 }
  0x13   : > { %7963 = sst [smem:[#allocation14_spill]] %s7962_s25  ;;  %s8206_s24 = smov (%p41_p5, %s8204_s24), 0 }
  0x14   : > { %7964 = sst [smem:[#allocation15_spill]] %s8206_s24  ;;  %p5606_p9 = por %p377_p6, %p376_p4 }
  0x15   : > { %p462_p10 = pnand %p4079_p7, %p461_p8  ;;  %s357_s27 = ssub.s32 %s5459_s19, %s8206_s24 }
  0x16   : > { %s7965_s26 = scalar_select %p5606_p9, 1, 0 }
  0x17   : > { %s360_s28 = sadd.s32 1, %s5443_s15  ;;  %p358_p11 = scmp.eq.s32.totalorder %s357_s27, 0 }
  0x18   : > { %7966 = sst [smem:[#allocation16_spill]] %s7965_s26  ;;  %465 = sbr.rel (%p462_p10) target bundleno = 1699 (0x6a3), region = 76 }
  0x19   : > { %s5614_s21 = scalar_select %p358_p11, %s5443_s15, %s360_s28  }
  0x1b   : > { %7967 = sst [smem:[#allocation17_spill]] %s5614_s21 }
  0x1d   : > { %s7921_s22 = sand.u32 1, %s5439_s30   ;;  %s4081_s23 = sshll.u32 %s5447_s16, 5 }
  0x1e   : > { %s4080_s18 = sshll.u32 %s7921_s22, 7  ;;  %p523_p12 = scmp.lt.s32.totalorder %s4081_s23, 127 }
  0x1f   : > { %p4089_p13 = scmp.ne.s32.totalorder %s5447_s16, 0 }
  0x20   : > { %s8208_s23 = smov (!%p523_p12, %s4081_s23), 127 }
  0x21   : > { %s4082_s29 = sshll.u32 %s8208_s23, 3  ;;  %s5640_s23 = scalar_lea.vmem [#allocation4], %s4080_s18 }
  0x22   : > { %s5623_s26 = scalar_lea.vmem %s7896_s1, %s4082_s29  ;;  %s5628_s28 = scalar_lea.vmem %s7897_s2, %s4082_s29 }
  0x23   : > { %s5633_s15 = scalar_lea.vmem %s7898_s3, %s4082_s29  ;;  %s5638_s30 = scalar_lea.vmem %s7899_s4, %s4082_s29 }
  0x24   : > { %550 = sbr.rel (%p4089_p13) target bundleno = 299 (0x12b), region = 80 }
  0x29   : > { %v598_v0 = vld [vmem:[%s7904_s9 + $0x78] sm:$0xff]  ;;  %v597_v1 = vld [vmem:[%s7904_s9 + $0x70] sm:$0xff]  ;;  %v596_v2 = vld [vmem:[%s7904_s9 + $0x68] sm:$0xff]  ;;  %v5465_v48 = vmov 0.0  }
  0x2a   : > { %4622 = vmatprep.subr.mxu0 %v598_v0  ;;  %4956 = vmatprep.subr.mxu1 %v598_v0  ;;  %v595_v3 = vld [vmem:[%s7904_s9 + $0x60] sm:$0xff]  ;;  %v594_v4 = vld [vmem:[%s7904_s9 + $0x58] sm:$0xff]  ;;  %v593_v5 = vld [vmem:[%s7904_s9 + $0x50] sm:$0xff]  ;;  %856 = vst [vmem:[#allocation3] sm:$0xff] %v5465_v48 }
  0x2b   : > { %4623 = vmatpush3.msra.mxu0 %v598_v0  ;;  %4972 = vmatpush3.msra.mxu1 %v598_v0  ;;  %v592_v6 = vld [vmem:[%s7904_s9 + $0x48] sm:$0xff]  ;;  %v591_v7 = vld [vmem:[%s7904_s9 + $0x40] sm:$0xff]  ;;  %v590_v8 = vld [vmem:[%s7904_s9 + $0x38] sm:$0xff]  ;;  %857 = vst [vmem:[#allocation3 + $0x48] sm:$0xff] %v5465_v48 }
  0x2c   : > { %4624 = vmatprep.subr.mxu0 %v597_v1  ;;  %4957 = vmatprep.subr.mxu1 %v597_v1  ;;  %v589_v9 = vld [vmem:[%s7904_s9 + $0x30] sm:$0xff]  ;;  %v588_v10 = vld [vmem:[%s7904_s9 + $0x28] sm:$0xff]  ;;  %v587_v11 = vld [vmem:[%s7904_s9 + $0x20] sm:$0xff]  ;;  %858 = vst [vmem:[#allocation3 + $0x68] sm:$0xff] %v5465_v48 }
  0x2d   : > { %4625 = vmatpush3.msra.mxu0 %v597_v1  ;;  %4973 = vmatpush3.msra.mxu1 %v597_v1  ;;  %v586_v12 = vld [vmem:[%s7904_s9 + $0x18] sm:$0xff]  ;;  %v585_v13 = vld [vmem:[%s7904_s9 + $0x10] sm:$0xff]  ;;  %v584_v14 = vld [vmem:[%s7904_s9 + $0x8] sm:$0xff]  ;;  %859 = vst [vmem:[#allocation3 + $0x78] sm:$0xff] %v5465_v48 }
  0x2e   : > { %4626 = vmatprep.subr.mxu0 %v596_v2  ;;  %4958 = vmatprep.subr.mxu1 %v596_v2  ;;  %v583_v15 = vld [vmem:[%s7904_s9] sm:$0xff]  ;;  %v552_v18 = vld [vmem:[%s7895_s0 + $0x8] sm:$0xff]  ;;  %v553_v20 = vld [vmem:[%s7895_s0 + $0x10] sm:$0xff]  ;;  %860 = vst [vmem:[#allocation3 + $0x8] sm:$0xff] %v5465_v48 }
  0x2f   : > { %4627 = vmatpush3.msra.mxu0 %v596_v2  ;;  %4974 = vmatpush3.msra.mxu1 %v596_v2  ;;  %v551_v16 = vld [vmem:[%s7895_s0] sm:$0xff]  ;;  %v568_v19 = vld [vmem:[%s7895_s0 + $0x88] sm:$0xff]  ;;  %v569_v21 = vld [vmem:[%s7895_s0 + $0x90] sm:$0xff]  ;;  %861 = vst [vmem:[#allocation3 + $0x50] sm:$0xff] %v5465_v48 }
  0x30   : > { %4628 = vmatprep.subr.mxu0 %v595_v3  ;;  %4959 = vmatprep.subr.mxu1 %v595_v3  ;;  %v567_v17 = vld [vmem:[%s7895_s0 + $0x80] sm:$0xff]  ;;  %v554_v22 = vld [vmem:[%s7895_s0 + $0x18] sm:$0xff]  ;;  %v556_v26 = vld [vmem:[%s7895_s0 + $0x28] sm:$0xff]  ;;  %862 = vst [vmem:[#allocation3 + $0x40] sm:$0xff] %v5465_v48 }
  0x31   : > { %4629 = vmatpush3.msra.mxu0 %v595_v3  ;;  %4975 = vmatpush3.msra.mxu1 %v595_v3  ;;  %v570_v23 = vld [vmem:[%s7895_s0 + $0x98] sm:$0xff]  ;;  %v555_v24 = vld [vmem:[%s7895_s0 + $0x20] sm:$0xff]  ;;  %v572_v27 = vld [vmem:[%s7895_s0 + $0xa8] sm:$0xff]  ;;  %863 = vst [vmem:[#allocation3 + $0x38] sm:$0xff] %v5465_v48 }
  0x32   : > { %4630 = vmatprep.subr.mxu0 %v594_v4  ;;  %4960 = vmatprep.subr.mxu1 %v594_v4  ;;  %v571_v25 = vld [vmem:[%s7895_s0 + $0xa0] sm:$0xff]  ;;  %v557_v28 = vld [vmem:[%s7895_s0 + $0x30] sm:$0xff]  ;;  %v558_v30 = vld [vmem:[%s7895_s0 + $0x38] sm:$0xff]  ;;  %864 = vst [vmem:[#allocation3 + $0x70] sm:$0xff] %v5465_v48 }
  0x33   : > { %4631 = vmatpush3.msra.mxu0 %v594_v4  ;;  %4976 = vmatpush3.msra.mxu1 %v594_v4  ;;  %v573_v29 = vld [vmem:[%s7895_s0 + $0xb0] sm:$0xff]  ;;  %v574_v31 = vld [vmem:[%s7895_s0 + $0xb8] sm:$0xff]  ;;  %v559_v32 = vld [vmem:[%s7895_s0 + $0x40] sm:$0xff]  ;;  %865 = vst [vmem:[#allocation3 + $0x60] sm:$0xff] %v5465_v48 }
  0x34   : > { %4632 = vmatprep.subr.mxu0 %v593_v5  ;;  %4961 = vmatprep.subr.mxu1 %v593_v5  ;;  %v575_v33 = vld [vmem:[%s7895_s0 + $0xc0] sm:$0xff]  ;;  %v560_v34 = vld [vmem:[%s7895_s0 + $0x48] sm:$0xff]  ;;  %v561_v36 = vld [vmem:[%s7895_s0 + $0x50] sm:$0xff]  ;;  %866 = vst [vmem:[#allocation3 + $0x18] sm:$0xff] %v5465_v48 }
  0x35   : > { %4633 = vmatpush3.msra.mxu0 %v593_v5  ;;  %4977 = vmatpush3.msra.mxu1 %v593_v5  ;;  %v576_v35 = vld [vmem:[%s7895_s0 + $0xc8] sm:$0xff]  ;;  %v577_v37 = vld [vmem:[%s7895_s0 + $0xd0] sm:$0xff]  ;;  %v562_v38 = vld [vmem:[%s7895_s0 + $0x58] sm:$0xff]  ;;  %867 = vst [vmem:[#allocation3 + $0x20] sm:$0xff] %v5465_v48 }
  0x36   : > { %4634 = vmatprep.subr.mxu0 %v592_v6  ;;  %4962 = vmatprep.subr.mxu1 %v592_v6  ;;  %v578_v39 = vld [vmem:[%s7895_s0 + $0xd8] sm:$0xff]  ;;  %v563_v40 = vld [vmem:[%s7895_s0 + $0x60] sm:$0xff]  ;;  %v564_v42 = vld [vmem:[%s7895_s0 + $0x68] sm:$0xff]  ;;  %868 = vst [vmem:[#allocation3 + $0x10] sm:$0xff] %v5465_v48 }
  0x37   : > { %4635 = vmatpush3.msra.mxu0 %v592_v6  ;;  %4978 = vmatpush3.msra.mxu1 %v592_v6  ;;  %v579_v41 = vld [vmem:[%s7895_s0 + $0xe0] sm:$0xff]  ;;  %v580_v43 = vld [vmem:[%s7895_s0 + $0xe8] sm:$0xff]  ;;  %v565_v44 = vld [vmem:[%s7895_s0 + $0x70] sm:$0xff]  ;;  %869 = vst [vmem:[#allocation3 + $0x30] sm:$0xff] %v5465_v48 }
  0x38   : > { %4636 = vmatprep.subr.mxu0 %v591_v7  ;;  %4963 = vmatprep.subr.mxu1 %v591_v7  ;;  %v581_v45 = vld [vmem:[%s7895_s0 + $0xf0] sm:$0xff]  ;;  %v566_v46 = vld [vmem:[%s7895_s0 + $0x78] sm:$0xff]  ;;  %870 = vst [vmem:[#allocation3 + $0x28] sm:$0xff] %v5465_v48  ;;  %871 = vst [vmem:[#allocation3 + $0x58] sm:$0xff] %v5465_v48 }
  0x39   : > { %4637 = vmatpush3.msra.mxu0 %v591_v7  ;;  %4979 = vmatpush3.msra.mxu1 %v591_v7  ;;  %v582_v47 = vld [vmem:[%s7895_s0 + $0xf8] sm:$0xff] }
  0x3a   : > { %4638 = vmatprep.subr.mxu0 %v590_v8  ;;  %4964 = vmatprep.subr.mxu1 %v590_v8 }
  0x3b   : > { %4639 = vmatpush3.msra.mxu0 %v590_v8  ;;  %4980 = vmatpush3.msra.mxu1 %v590_v8 }
  0x3c   : > { %4640 = vmatprep.subr.mxu0 %v589_v9  ;;  %4965 = vmatprep.subr.mxu1 %v589_v9 }
  0x3d   : > { %4641 = vmatpush3.msra.mxu0 %v589_v9  ;;  %4981 = vmatpush3.msra.mxu1 %v589_v9 }
  0x3e   : > { %4642 = vmatprep.subr.mxu0 %v588_v10  ;;  %4966 = vmatprep.subr.mxu1 %v588_v10 }
  0x3f   : > { %4643 = vmatpush3.msra.mxu0 %v588_v10  ;;  %4982 = vmatpush3.msra.mxu1 %v588_v10 }
  0x40   : > { %4644 = vmatprep.subr.mxu0 %v587_v11  ;;  %4967 = vmatprep.subr.mxu1 %v587_v11 }
  0x41   : > { %4645 = vmatpush3.msra.mxu0 %v587_v11  ;;  %4983 = vmatpush3.msra.mxu1 %v587_v11 }
  0x42   : > { %4646 = vmatprep.subr.mxu0 %v586_v12  ;;  %4968 = vmatprep.subr.mxu1 %v586_v12 }
  0x43   : > { %4647 = vmatpush3.msra.mxu0 %v586_v12  ;;  %4984 = vmatpush3.msra.mxu1 %v586_v12 }
  0x44   : > { %4648 = vmatprep.subr.mxu0 %v585_v13  ;;  %4969 = vmatprep.subr.mxu1 %v585_v13 }
  0x45   : > { %4649 = vmatpush3.msra.mxu0 %v585_v13  ;;  %4985 = vmatpush3.msra.mxu1 %v585_v13 }
  0x46   : > { %4650 = vmatprep.subr.mxu0 %v584_v14  ;;  %4970 = vmatprep.subr.mxu1 %v584_v14 }
  0x47   : > { %4651 = vmatpush3.msra.mxu0 %v584_v14  ;;  %4986 = vmatpush3.msra.mxu1 %v584_v14 }
  0x48   : > { %4652 = vmatprep.subr.mxu0 %v583_v15  ;;  %4971 = vmatprep.subr.mxu1 %v583_v15 }
  0x49   : > { %4653 = vmatpush3.msra.mxu0 %v583_v15  ;;  %4987 = vmatpush3.msra.mxu1 %v583_v15 }
  0x4a   : > { %4654 = vmatprep.mubr.f32.mxu0 %v551_v16  ;;  %4678 = vmatprep.mubr.f32.mxu1 %v567_v17 }
  0x4b   : > { %4655 = vmatmul.mubr.f32.vlgmr.msra.gmra.mxu0 %v552_v18  ;;  %4679 = vmatmul.mubr.f32.vlgmr.msra.gmra.mxu1 %v568_v19 }
  0x4c   : > { %4657 = vmatprep.mubr.f32.mxu0 %v553_v20  ;;  %4681 = vmatprep.mubr.f32.mxu1 %v569_v21 }
  0x4f   : > { %4658 = vmatmul.mubr.f32.gmra.mxu0 %v554_v22  ;;  %4682 = vmatmul.mubr.f32.gmra.mxu1 %v570_v23 }
  0x50   : > { %4660 = vmatprep.mubr.f32.mxu0 %v555_v24  ;;  %4684 = vmatprep.mubr.f32.mxu1 %v571_v25 }
  0x53   : > { %4661 = vmatmul.mubr.f32.gmra.mxu0 %v556_v26  ;;  %4685 = vmatmul.mubr.f32.gmra.mxu1 %v572_v27 }
  0x54   : > { %4663 = vmatprep.mubr.f32.mxu0 %v557_v28  ;;  %4687 = vmatprep.mubr.f32.mxu1 %v573_v29 }
  0x57   : > { %4664 = vmatmul.mubr.f32.gmra.mxu0 %v558_v30  ;;  %4688 = vmatmul.mubr.f32.gmra.mxu1 %v574_v31 }
  0x58   : > { %4666 = vmatprep.mubr.f32.mxu0 %v559_v32  ;;  %4690 = vmatprep.mubr.f32.mxu1 %v575_v33 }
  0x5b   : > { %4667 = vmatmul.mubr.f32.gmra.mxu0 %v560_v34  ;;  %4691 = vmatmul.mubr.f32.gmra.mxu1 %v576_v35 }
  0x5c   : > { %4669 = vmatprep.mubr.f32.mxu0 %v561_v36  ;;  %4693 = vmatprep.mubr.f32.mxu1 %v577_v37 }
  0x5f   : > { %4670 = vmatmul.mubr.f32.gmra.mxu0 %v562_v38  ;;  %4694 = vmatmul.mubr.f32.gmra.mxu1 %v578_v39 }
  0x60   : > { %4672 = vmatprep.mubr.f32.mxu0 %v563_v40  ;;  %4696 = vmatprep.mubr.f32.mxu1 %v579_v41 }
  0x63   : > { %4673 = vmatmul.mubr.f32.gmra.mxu0 %v564_v42  ;;  %4697 = vmatmul.mubr.f32.gmra.mxu1 %v580_v43 }
  0x64   : > { %4675 = vmatprep.mubr.f32.mxu0 %v565_v44  ;;  %4699 = vmatprep.mubr.f32.mxu1 %v581_v45 }
  0x67   : > { %4676 = vmatmul.mubr.f32.gmra.mxu0 %v566_v46  ;;  %4700 = vmatmul.mubr.f32.gmra.mxu1 %v582_v47 }
 0x10b   : > { %v4656_v49 = vpop.f32.mrf.mxu0  ;;  %v4680_v50 = vpop.f32.mrf.mxu1 }
 0x10c   : > { %825 = vst [vmem:[#allocation2] sm:$0xff] %v4656_v49  ;;  %841 = vst [vmem:[#allocation2 + $0x58] sm:$0xff] %v4680_v50 }
 0x10d   : > { %v665_v51 = vpop.f32.mrf.mxu0  ;;  %v745_v52 = vpop.f32.mrf.mxu1 }
 0x10e   : > { %824 = vst [vmem:[#allocation2 + $0xb0] sm:$0xff] %v665_v51  ;;  %840 = vst [vmem:[#allocation2 + $0x38] sm:$0xff] %v745_v52 }
 0x10f   : > { %v4659_v53 = vpop.f32.mrf.mxu0  ;;  %v4683_v54 = vpop.f32.mrf.mxu1 }
 0x110   : > { %827 = vst [vmem:[#allocation2 + $0x18] sm:$0xff] %v4659_v53  ;;  %843 = vst [vmem:[#allocation2 + $0xc8] sm:$0xff] %v4683_v54 }
 0x111   : > { %v675_v55 = vpop.f32.mrf.mxu0  ;;  %v755_v56 = vpop.f32.mrf.mxu1 }
 0x112   : > { %826 = vst [vmem:[#allocation2 + $0xd8] sm:$0xff] %v675_v55  ;;  %842 = vst [vmem:[#allocation2 + $0x40] sm:$0xff] %v755_v56 }
 0x113   : > { %v4662_v57 = vpop.f32.mrf.mxu0  ;;  %v4686_v58 = vpop.f32.mrf.mxu1 }
 0x114   : > { %829 = vst [vmem:[#allocation2 + $0x68] sm:$0xff] %v4662_v57  ;;  %845 = vst [vmem:[#allocation2 + $0x90] sm:$0xff] %v4686_v58 }
 0x115   : > { %v685_v59 = vpop.f32.mrf.mxu0  ;;  %v765_v60 = vpop.f32.mrf.mxu1 }
 0x116   : > { %828 = vst [vmem:[#allocation2 + $0x50] sm:$0xff] %v685_v59  ;;  %844 = vst [vmem:[#allocation2 + $0xe0] sm:$0xff] %v765_v60 }
 0x117   : > { %v4665_v61 = vpop.f32.mrf.mxu0  ;;  %v4689_v62 = vpop.f32.mrf.mxu1 }
 0x118   : > { %831 = vst [vmem:[#allocation2 + $0x48] sm:$0xff] %v4665_v61  ;;  %847 = vst [vmem:[#allocation2 + $0xc0] sm:$0xff] %v4689_v62 }
 0x119   : > { %v695_v63 = vpop.f32.mrf.mxu0  ;;  %v775_v0 = vpop.f32.mrf.mxu1 }
 0x11a   : > { %830 = vst [vmem:[#allocation2 + $0x30] sm:$0xff] %v695_v63  ;;  %846 = vst [vmem:[#allocation2 + $0x70] sm:$0xff] %v775_v0 }
 0x11b   : > { %v4668_v1 = vpop.f32.mrf.mxu0  ;;  %v4692_v2 = vpop.f32.mrf.mxu1 }
 0x11c   : > { %833 = vst [vmem:[#allocation2 + $0x88] sm:$0xff] %v4668_v1  ;;  %849 = vst [vmem:[#allocation2 + $0xd0] sm:$0xff] %v4692_v2 }
 0x11d   : > { %v705_v3 = vpop.f32.mrf.mxu0  ;;  %v785_v4 = vpop.f32.mrf.mxu1 }
 0x11e   : > { %832 = vst [vmem:[#allocation2 + $0x80] sm:$0xff] %v705_v3  ;;  %848 = vst [vmem:[#allocation2 + $0xa8] sm:$0xff] %v785_v4 }
 0x11f   : > { %v4671_v5 = vpop.f32.mrf.mxu0  ;;  %v4695_v6 = vpop.f32.mrf.mxu1 }
 0x120   : > { %835 = vst [vmem:[#allocation2 + $0xb8] sm:$0xff] %v4671_v5  ;;  %851 = vst [vmem:[#allocation2 + $0x28] sm:$0xff] %v4695_v6 }
 0x121   : > { %v715_v7 = vpop.f32.mrf.mxu0  ;;  %v795_v8 = vpop.f32.mrf.mxu1 }
 0x122   : > { %834 = vst [vmem:[#allocation2 + $0xe8] sm:$0xff] %v715_v7  ;;  %850 = vst [vmem:[#allocation2 + $0x10] sm:$0xff] %v795_v8 }
 0x123   : > { %v4674_v9 = vpop.f32.mrf.mxu0  ;;  %v4698_v10 = vpop.f32.mrf.mxu1 }
 0x124   : > { %837 = vst [vmem:[#allocation2 + $0xf0] sm:$0xff] %v4674_v9  ;;  %853 = vst [vmem:[#allocation2 + $0xf8] sm:$0xff] %v4698_v10 }
 0x125   : > { %v725_v11 = vpop.f32.mrf.mxu0  ;;  %v805_v12 = vpop.f32.mrf.mxu1 }
 0x126   : > { %836 = vst [vmem:[#allocation2 + $0x60] sm:$0xff] %v725_v11  ;;  %852 = vst [vmem:[#allocation2 + $0xa0] sm:$0xff] %v805_v12 }
 0x127   : > { %v4677_v13 = vpop.f32.mrf.mxu0  ;;  %v4701_v14 = vpop.f32.mrf.mxu1 }
 0x128   : > { %839 = vst [vmem:[#allocation2 + $0x78] sm:$0xff] %v4677_v13  ;;  %855 = vst [vmem:[#allocation2 + $0x98] sm:$0xff] %v4701_v14 }
 0x129   : > { %v735_v15 = vpop.f32.mrf.mxu0  ;;  %v815_v16 = vpop.f32.mrf.mxu1 }
 0x12a   : > { %838 = vst [vmem:[#allocation2 + $0x8] sm:$0xff] %v735_v15  ;;  %854 = vst [vmem:[#allocation2 + $0x20] sm:$0xff] %v815_v16 }
 0x12b PF: > { %v910_v17 = vld [vmem:[%s7900_s5 + $0x30] sm:$0x3]  ;;  %vm1015_vm0 = vcmask 1041408   ;;  %v2231_v19 = vld [vmem:[%s5623_s26] sm:$0xff]  ;;  %v5466_v20 = vmov 0   ;;  %v909_v21 = vld [vmem:[%s7900_s5 + $0x28] sm:$0xff] }
 0x12c   : > { %v2233_v18 = vld [vmem:[%s5623_s26 + $0x10] sm:$0xff]  ;;  %5066 = vset.pattern.permute.xlu1 %v5466_v20  ;;  %5065 = vset.pattern.permute.xlu0 %v5466_v20  ;;  %v908_v22 = vld [vmem:[%s7900_s5 + $0x20] sm:$0xff]  ;;  %v2234_v23 = vld [vmem:[%s5623_s26 + $0x18] sm:$0xff]  ;;  %vm918_vm1 = vcmask 408576   ;;  %v7924_v38 = vmov 0.0   ;;  %p4318_p0 = scmp.ne.s32.totalorder %s5447_s16, 3 }
 0x12d   : > { %4702 = vmatprep.subr.msk.mxu0 %vm1015_vm0, %v910_v17  ;;  %2270 = vperm.xlu1 %5066, %v2233_v18   ;;  %v2232_v24 = vld [vmem:[%s5623_s26 + $0x8] sm:$0xff]  ;;  %v907_v25 = vld [vmem:[%s7900_s5 + $0x18] sm:$0xff]  ;;  %v872_v26 = vld [vmem:[%s5638_s30] sm:$0xff] }
 0x12e   : > { %2264 = vperm.xlu0 %5065, %v2231_v19   ;;  %4703 = vmatpush3.msk.msra.mxu0 %vm1015_vm0, %v910_v17  ;;  %v906_v27 = vld [vmem:[%s7900_s5 + $0x10] sm:$0xff]  ;;  %v2236_v28 = vld [vmem:[%s5623_s26 + $0x28] sm:$0xff]  ;;  %v2235_v29 = vld [vmem:[%s5623_s26 + $0x20] sm:$0xff] }
 0x12f   : > { %4704 = vmatprep.subr.mxu0 %v909_v21  ;;  %4716 = vmatprep.mubr.msk.f32.mxu0 %vm918_vm1, %v872_v26  ;;  %v905_v30 = vld [vmem:[%s7900_s5 + $0x8] sm:$0xff]  ;;  %v904_v31 = vld [vmem:[%s7900_s5] sm:$0xff]  ;;  %v2238_v32 = vld [vmem:[%s5623_s26 + $0x38] sm:$0xff] }
 0x130   : > { %4705 = vmatpush3.msra.mxu0 %v909_v21  ;;  %v2237_v33 = vld [vmem:[%s5623_s26 + $0x30] sm:$0xff]  ;;  %v873_v34 = vld [vmem:[%s5638_s30 + $0x8] sm:$0xff]  ;;  %v2239_v37 = vld [vmem:[%s5623_s26 + $0x40] sm:$0xff] }
 0x131   : > { %4706 = vmatprep.subr.mxu0 %v908_v22  ;;  %2273 = vperm.xlu1 %5066, %v2234_v23   ;;  %v874_v35 = vld [vmem:[%s5638_s30 + $0x10] sm:$0xff]  ;;  %v2240_v36 = vld [vmem:[%s5623_s26 + $0x48] sm:$0xff]  ;;  %v875_v39 = vld [vmem:[%s5638_s30 + $0x18] sm:$0xff] }
 0x132   : > { %2267 = vperm.xlu0 %5065, %v2232_v24   ;;  %4707 = vmatpush3.msra.mxu0 %v908_v22  ;;  %v876_v40 = vld [vmem:[%s5638_s30 + $0x20] sm:$0xff]  ;;  %v2242_v41 = vld [vmem:[%s5623_s26 + $0x58] sm:$0xff]  ;;  %v2241_v42 = vld [vmem:[%s5623_s26 + $0x50] sm:$0xff] }
 0x133   : > { %4708 = vmatprep.subr.mxu0 %v907_v25  ;;  %v877_v43 = vld [vmem:[%s5638_s30 + $0x28] sm:$0xff]  ;;  %v2566_v44 = vld [vmem:[#allocation2 + $0x78] sm:$0xff]  ;;  %v878_v45 = vld [vmem:[%s5638_s30 + $0x30] sm:$0xff] }
 0x134   : > { %4709 = vmatpush3.msra.mxu0 %v907_v25  ;;  %v2244_v46 = vld [vmem:[%s5623_s26 + $0x68] sm:$0xff]  ;;  %v2243_v48 = vld [vmem:[%s5623_s26 + $0x60] sm:$0xff]  ;;  %v2564_v49 = vld [vmem:[#allocation2 + $0xf0] sm:$0xff] }
 0x135   : > { %4710 = vmatprep.subr.mxu0 %v906_v27  ;;  %2279 = vperm.xlu1 %5066, %v2236_v28   ;;  %v2565_v47 = vld [vmem:[#allocation2 + $0x8] sm:$0xff]  ;;  %v879_v50 = vld [vmem:[%s5638_s30 + $0x38] sm:$0xff]  ;;  %v880_v51 = vld [vmem:[%s5638_s30 + $0x40] sm:$0xff] }
 0x136   : > { %2276 = vperm.xlu0 %5065, %v2235_v29   ;;  %4711 = vmatpush3.msra.mxu0 %v906_v27  ;;  %v2563_v52 = vld [vmem:[#allocation2 + $0x60] sm:$0xff]  ;;  %v2246_v53 = vld [vmem:[%s5623_s26 + $0x78] sm:$0xff]  ;;  %v2245_v54 = vld [vmem:[%s5623_s26 + $0x70] sm:$0xff] }
 0x137   : > { %4712 = vmatprep.subr.mxu0 %v905_v30  ;;  %v2562_v55 = vld [vmem:[#allocation2 + $0xb8] sm:$0xff]  ;;  %v881_v56 = vld [vmem:[%s5638_s30 + $0x48] sm:$0xff]  ;;  %v882_v57 = vld [vmem:[%s5638_s30 + $0x50] sm:$0xff] }
 0x138   : > { %4713 = vmatpush3.msra.mxu0 %v905_v30  ;;  %v2561_v58 = vld [vmem:[#allocation2 + $0xe8] sm:$0xff]  ;;  %v2247_v60 = vld [vmem:[%s5623_s26 + $0x80] sm:$0xff]  ;;  %v883_v62 = vld [vmem:[%s5638_s30 + $0x58] sm:$0xff] }
 0x139   : > { %4714 = vmatprep.subr.mxu0 %v904_v31  ;;  %2285 = vperm.xlu1 %5066, %v2238_v32   ;;  %v2248_v59 = vld [vmem:[%s5623_s26 + $0x88] sm:$0xff]  ;;  %v884_v63 = vld [vmem:[%s5638_s30 + $0x60] sm:$0xff]  ;;  %v2250_v1 = vld [vmem:[%s5623_s26 + $0x98] sm:$0xff] }
 0x13a   : > { %2282 = vperm.xlu0 %5065, %v2237_v33   ;;  %4715 = vmatpush3.msra.mxu0 %v904_v31  ;;  %v2560_v61 = vld [vmem:[#allocation2 + $0x88] sm:$0xff]  ;;  %v2559_v0 = vld [vmem:[#allocation2 + $0x80] sm:$0xff]  ;;  %v2249_v2 = vld [vmem:[%s5623_s26 + $0x90] sm:$0xff] }
 0x13b   : > { %4717 = vmatmul.mubr.msk.f32.vlgmr.msra.gmra.mxu0 %vm918_vm1, %v873_v34  ;;  %2583 = vmatprep.subr.mxu0 %v7924_v38  ;;  %v2558_v3 = vld [vmem:[#allocation2 + $0x48] sm:$0xff]  ;;  %v886_v5 = vld [vmem:[%s5638_s30 + $0x70] sm:$0xff]  ;;  %v2251_v8 = vld [vmem:[%s5623_s26 + $0xa0] sm:$0xff] }
 0x13c   : > { %4719 = vmatprep.mubr.msk.f32.mxu0 %vm918_vm1, %v874_v35  ;;  %2584 = vmatpush1.msra.mxu0 %v2566_v44  ;;  %v885_v4 = vld [vmem:[%s5638_s30 + $0x68] sm:$0xff]  ;;  %v2557_v6 = vld [vmem:[#allocation2 + $0x30] sm:$0xff]  ;;  %v887_v10 = vld [vmem:[%s5638_s30 + $0x78] sm:$0xff] }
 0x13d   : > { %2291 = vperm.xlu1 %5066, %v2240_v36   ;;  %2585 = vmatprep.subr.mxu0 %v7924_v38  ;;  %v2252_v7 = vld [vmem:[%s5623_s26 + $0xa8] sm:$0xff]  ;;  %v888_v11 = vld [vmem:[%s5638_s30 + $0x80] sm:$0xff]  ;;  %v2555_v12 = vld [vmem:[#allocation2 + $0x50] sm:$0xff] }
 0x13e   : > { %2288 = vperm.xlu0 %5065, %v2239_v37   ;;  %2586 = vmatpush1.msra.mxu0 %v2565_v47  ;;  %v2556_v9 = vld [vmem:[#allocation2 + $0x68] sm:$0xff]  ;;  %v2254_v13 = vld [vmem:[%s5623_s26 + $0xb8] sm:$0xff]  ;;  %v2253_v14 = vld [vmem:[%s5623_s26 + $0xb0] sm:$0xff] }
 0x13f   : > { %4720 = vmatmul.mubr.msk.f32.gmra.mxu0 %vm918_vm1, %v875_v39  ;;  %2587 = vmatprep.subr.mxu0 %v7924_v38  ;;  %v2554_v15 = vld [vmem:[#allocation2 + $0x18] sm:$0xff]  ;;  %v889_v16 = vld [vmem:[%s5638_s30 + $0x88] sm:$0xff]  ;;  %v890_v17 = vld [vmem:[%s5638_s30 + $0x90] sm:$0xff] }
 0x140   : > { %4722 = vmatprep.mubr.msk.f32.mxu0 %vm918_vm1, %v876_v40  ;;  %2588 = vmatpush1.msra.mxu0 %v2564_v49  ;;  %v2553_v18 = vld [vmem:[#allocation2 + $0xd8] sm:$0xff]  ;;  %v2256_v19 = vld [vmem:[%s5623_s26 + $0xc8] sm:$0xff]  ;;  %v2255_v20 = vld [vmem:[%s5623_s26 + $0xc0] sm:$0xff] }
 0x141   : > { %2297 = vperm.xlu1 %5066, %v2242_v41   ;;  %2589 = vmatprep.subr.mxu0 %v7924_v38  ;;  %v2552_v21 = vld [vmem:[#allocation2] sm:$0xff]  ;;  %v891_v22 = vld [vmem:[%s5638_s30 + $0x98] sm:$0xff]  ;;  %v2551_v24 = vld [vmem:[#allocation2 + $0xb0] sm:$0xff] }
 0x142   : > { %2294 = vperm.xlu0 %5065, %v2241_v42   ;;  %2590 = vmatpush1.msra.mxu0 %v2563_v52  ;;  %v892_v23 = vld [vmem:[%s5638_s30 + $0xa0] sm:$0xff]  ;;  %v2258_v25 = vld [vmem:[%s5623_s26 + $0xd8] sm:$0xff]  ;;  %v2257_v26 = vld [vmem:[%s5623_s26 + $0xd0] sm:$0xff] }
 0x143   : > { %4723 = vmatmul.mubr.msk.f32.gmra.mxu0 %vm918_vm1, %v877_v43  ;;  %2591 = vmatprep.subr.mxu0 %v7924_v38  ;;  %v2582_v27 = vld [vmem:[#allocation2 + $0x98] sm:$0xff]  ;;  %v893_v28 = vld [vmem:[%s5638_s30 + $0xa8] sm:$0xff]  ;;  %v894_v29 = vld [vmem:[%s5638_s30 + $0xb0] sm:$0xff] }
 0x144   : > { %4725 = vmatprep.mubr.msk.f32.mxu0 %vm918_vm1, %v878_v45  ;;  %2592 = vmatpush1.msra.mxu0 %v2562_v55  ;;  %v2581_v30 = vld [vmem:[#allocation2 + $0x20] sm:$0xff]  ;;  %v2260_v31 = vld [vmem:[%s5623_s26 + $0xe8] sm:$0xff]  ;;  %v2580_v33 = vld [vmem:[#allocation2 + $0xf8] sm:$0xff] }
 0x145   : > { %2303 = vperm.xlu1 %5066, %v2244_v46   ;;  %2593 = vmatprep.subr.mxu0 %v7924_v38  ;;  %v2259_v32 = vld [vmem:[%s5623_s26 + $0xe0] sm:$0xff]  ;;  %v895_v34 = vld [vmem:[%s5638_s30 + $0xb8] sm:$0xff]  ;;  %v2261_v39 = vld [vmem:[%s5623_s26 + $0xf0] sm:$0xff] }
 0x146   : > { %2300 = vperm.xlu0 %5065, %v2243_v48   ;;  %2594 = vmatpush1.msra.mxu0 %v2561_v58  ;;  %v896_v35 = vld [vmem:[%s5638_s30 + $0xc0] sm:$0xff]  ;;  %v2262_v37 = vld [vmem:[%s5623_s26 + $0xf8] sm:$0xff]  ;;  %v2578_v40 = vld [vmem:[#allocation2 + $0x28] sm:$0xff] }
 0x147   : > { %4726 = vmatmul.mubr.msk.f32.gmra.mxu0 %vm918_vm1, %v879_v50  ;;  %2595 = vmatprep.subr.mxu0 %v7924_v38  ;;  %v2579_v36 = vld [vmem:[#allocation2 + $0xa0] sm:$0xff]  ;;  %v897_v41 = vld [vmem:[%s5638_s30 + $0xc8] sm:$0xff]  ;;  %v898_v42 = vld [vmem:[%s5638_s30 + $0xd0] sm:$0xff] }
 0x148   : > { %4728 = vmatprep.mubr.msk.f32.mxu0 %vm918_vm1, %v880_v51  ;;  %2596 = vmatpush1.msra.mxu0 %v2560_v61  ;;  %v2577_v43 = vld [vmem:[#allocation2 + $0x10] sm:$0xff]  ;;  %v2843_v44 = vld [vmem:[%s5628_s28] sm:$0xff]  ;;  %v899_v47 = vld [vmem:[%s5638_s30 + $0xd8] sm:$0xff] }
 0x149   : > { %2309 = vperm.xlu1 %5066, %v2246_v53   ;;  %2597 = vmatprep.subr.mxu0 %v7924_v38  ;;  %v2859_v45 = vld [vmem:[%s5628_s28 + $0x80] sm:$0xff]  ;;  %v2576_v46 = vld [vmem:[#allocation2 + $0xd0] sm:$0xff]  ;;  %v2575_v49 = vld [vmem:[#allocation2 + $0xa8] sm:$0xff] }
 0x14a   : > { %2306 = vperm.xlu0 %5065, %v2245_v54   ;;  %2598 = vmatpush1.msra.mxu0 %v2559_v0  ;;  %v900_v48 = vld [vmem:[%s5638_s30 + $0xe0] sm:$0xff]  ;;  %v2844_v50 = vld [vmem:[%s5628_s28 + $0x8] sm:$0xff]  ;;  %v902_v54 = vld [vmem:[%s5638_s30 + $0xf0] sm:$0xff] }
 0x14b   : > { %4729 = vmatmul.mubr.msk.f32.gmra.mxu0 %vm918_vm1, %v881_v56  ;;  %2599 = vmatprep.subr.mxu0 %v7924_v38  ;;  %v2860_v51 = vld [vmem:[%s5628_s28 + $0x88] sm:$0xff]  ;;  %v2574_v52 = vld [vmem:[#allocation2 + $0xc0] sm:$0xff]  ;;  %v2573_v55 = vld [vmem:[#allocation2 + $0x70] sm:$0xff] }
 0x14c   : > { %4731 = vmatprep.mubr.msk.f32.mxu0 %vm918_vm1, %v882_v57  ;;  %2600 = vmatpush1.msra.mxu0 %v2558_v3  ;;  %v901_v53 = vld [vmem:[%s5638_s30 + $0xe8] sm:$0xff]  ;;  %v2845_v56 = vld [vmem:[%s5628_s28 + $0x10] sm:$0xff]  ;;  %v2846_v61 = vld [vmem:[%s5628_s28 + $0x18] sm:$0xff] }
 0x14d   : > { %2315 = vperm.xlu1 %5066, %v2248_v59   ;;  %2601 = vmatprep.subr.mxu0 %v7924_v38  ;;  %v2861_v57 = vld [vmem:[%s5628_s28 + $0x90] sm:$0xff]  ;;  %v903_v59 = vld [vmem:[%s5638_s30 + $0xf8] sm:$0xff]  ;;  %v2569_v0 = vld [vmem:[#allocation2 + $0x40] sm:$0xff] }
 0x14e   : > { %2312 = vperm.xlu0 %5065, %v2247_v60   ;;  %2602 = vmatpush1.msra.mxu0 %v2557_v6  ;;  %v2572_v58 = vld [vmem:[#allocation2 + $0x90] sm:$0xff]  ;;  %v2571_v60 = vld [vmem:[#allocation2 + $0xe0] sm:$0xff]  ;;  %v2568_v3 = vld [vmem:[#allocation2 + $0x58] sm:$0xff] }
 0x14f   : > { %4732 = vmatmul.mubr.msk.f32.gmra.mxu0 %vm918_vm1, %v883_v62  ;;  %2603 = vmatprep.subr.mxu0 %v7924_v38  ;;  %v2862_v62 = vld [vmem:[%s5628_s28 + $0x98] sm:$0xff]  ;;  %v2864_v6 = vld [vmem:[%s5628_s28 + $0xa8] sm:$0xff] }
 0x150   : > { %4734 = vmatprep.mubr.msk.f32.mxu0 %vm918_vm1, %v884_v63  ;;  %2604 = vmatpush1.msra.mxu0 %v2556_v9  ;;  %v2570_v63 = vld [vmem:[#allocation2 + $0xc8] sm:$0xff]  ;;  %v2850_v9 = vld [vmem:[%s5628_s28 + $0x38] sm:$0xff] }
 0x151   : > { %2321 = vperm.xlu1 %5066, %v2250_v1   ;;  %2605 = vmatprep.subr.mxu0 %v7924_v38  ;;  %v2847_v1 = vld [vmem:[%s5628_s28 + $0x20] sm:$0xff] }
 0x152   : > { %2318 = vperm.xlu0 %5065, %v2249_v2   ;;  %2606 = vmatpush1.msra.mxu0 %v2555_v12  ;;  %v2863_v2 = vld [vmem:[%s5628_s28 + $0xa0] sm:$0xff] }
 0x153   : > { %4735 = vmatmul.mubr.msk.f32.gmra.mxu0 %vm918_vm1, %v885_v4  ;;  %2607 = vmatprep.subr.mxu0 %v7924_v38  ;;  %v2567_v4 = vld [vmem:[#allocation2 + $0x38] sm:$0xff]  ;;  %v2867_v12 = vld [vmem:[%s5628_s28 + $0xc0] sm:$0xff] }
 0x154   : > { %4737 = vmatprep.mubr.msk.f32.mxu0 %vm918_vm1, %v886_v5  ;;  %2608 = vmatpush1.msra.mxu0 %v2554_v15  ;;  %v2848_v5 = vld [vmem:[%s5628_s28 + $0x28] sm:$0xff] }
 0x155   : > { %2327 = vperm.xlu1 %5066, %v2252_v7   ;;  %2609 = vmatprep.subr.mxu0 %v7924_v38  ;;  %v2849_v7 = vld [vmem:[%s5628_s28 + $0x30] sm:$0xff]  ;;  %v2868_v15 = vld [vmem:[%s5628_s28 + $0xc8] sm:$0xff] }
 0x156   : > { %2324 = vperm.xlu0 %5065, %v2251_v8   ;;  %2610 = vmatpush1.msra.mxu0 %v2553_v18  ;;  %v2865_v8 = vld [vmem:[%s5628_s28 + $0xb0] sm:$0xff] }
 0x157   : > { %4738 = vmatmul.mubr.msk.f32.gmra.mxu0 %vm918_vm1, %v887_v10  ;;  %2611 = vmatprep.subr.mxu0 %v7924_v38  ;;  %v2866_v10 = vld [vmem:[%s5628_s28 + $0xb8] sm:$0xff]  ;;  %v2853_v18 = vld [vmem:[%s5628_s28 + $0x50] sm:$0xff] }
 0x158   : > { %4740 = vmatprep.mubr.msk.f32.mxu0 %vm918_vm1, %v888_v11  ;;  %2612 = vmatpush1.msra.mxu0 %v2552_v21  ;;  %v2851_v11 = vld [vmem:[%s5628_s28 + $0x40] sm:$0xff]  ;;  %v1767_v21 = vld [vmem:[%s7902_s7 + $0x58] sm:$0xff] }
 0x159   : > { %2333 = vperm.xlu1 %5066, %v2254_v13   ;;  %2613 = vmatprep.subr.mxu0 %v7924_v38  ;;  %v1771_v13 = vld [vmem:[%s7902_s7 + $0x78] sm:$0xff] }
 0x15a   : > { %2330 = vperm.xlu0 %5065, %v2253_v14   ;;  %2614 = vmatpush1.msra.mxu0 %v2551_v24  ;;  %v2852_v14 = vld [vmem:[%s5628_s28 + $0x48] sm:$0xff]  ;;  %v1766_v24 = vld [vmem:[%s7902_s7 + $0x50] sm:$0xff] }
 0x15b   : > { %4741 = vmatmul.mubr.msk.f32.gmra.mxu0 %vm918_vm1, %v889_v16  ;;  %2615 = vmatprep.subr.mxu0 %v7924_v38  ;;  %v1770_v16 = vld [vmem:[%s7902_s7 + $0x70] sm:$0xff] }
 0x15c   : > { %4743 = vmatprep.mubr.msk.f32.mxu0 %vm918_vm1, %v890_v17  ;;  %2616 = vmatpush2.msra.mxu0 %v2582_v27  ;;  %v1769_v17 = vld [vmem:[%s7902_s7 + $0x68] sm:$0xff]  ;;  %v2871_v27 = vld [vmem:[%s5628_s28 + $0xe0] sm:$0xff] }
 0x15d   : > { %2339 = vperm.xlu1 %5066, %v2256_v19   ;;  %2617 = vmatprep.subr.mxu0 %v7924_v38  ;;  %v2869_v19 = vld [vmem:[%s5628_s28 + $0xd0] sm:$0xff] }
 0x15e   : > { %2336 = vperm.xlu0 %5065, %v2255_v20   ;;  %2618 = vmatpush2.msra.mxu0 %v2581_v30  ;;  %v1768_v20 = vld [vmem:[%s7902_s7 + $0x60] sm:$0xff]  ;;  %v2228_v30 = vlaneseq }
 0x15f   : > { %4744 = vmatmul.mubr.msk.f32.gmra.mxu0 %vm918_vm1, %v891_v22  ;;  %2619 = vmatprep.subr.mxu0 %v7924_v38  ;;  %v2854_v22 = vld [vmem:[%s5628_s28 + $0x58] sm:$0xff] }
 0x160   : > { %4746 = vmatprep.mubr.msk.f32.mxu0 %vm918_vm1, %v892_v23  ;;  %2620 = vmatpush2.msra.mxu0 %v2580_v33  ;;  %v2870_v23 = vld [vmem:[%s5628_s28 + $0xd8] sm:$0xff]  ;;  %v1762_v33 = vld [vmem:[%s7902_s7 + $0x30] sm:$0xff] }
 0x161   : > { %2345 = vperm.xlu1 %5066, %v2258_v25   ;;  %2621 = vmatprep.subr.mxu0 %v7924_v38  ;;  %v2855_v25 = vld [vmem:[%s5628_s28 + $0x60] sm:$0xff] }
 0x162   : > { %2342 = vperm.xlu0 %5065, %v2257_v26   ;;  %2622 = vmatpush2.msra.mxu0 %v2579_v36  ;;  %v1765_v26 = vld [vmem:[%s7902_s7 + $0x48] sm:$0xff] }
 0x163   : > { %4747 = vmatmul.mubr.msk.f32.gmra.mxu0 %vm918_vm1, %v893_v28  ;;  %2623 = vmatprep.subr.mxu0 %v7924_v38  ;;  %v1764_v28 = vld [vmem:[%s7902_s7 + $0x40] sm:$0xff]  ;;  %v1761_v36 = vld [vmem:[%s7902_s7 + $0x28] sm:$0xff] }
 0x164   : > { %4749 = vmatprep.mubr.msk.f32.mxu0 %vm918_vm1, %v894_v29  ;;  %2624 = vmatpush2.msra.mxu0 %v2578_v40  ;;  %v2856_v29 = vld [vmem:[%s5628_s28 + $0x68] sm:$0xff] }
 0x165   : > { %2351 = vperm.xlu1 %5066, %v2260_v31   ;;  %2625 = vmatprep.subr.mxu0 %v7924_v38  ;;  %v1763_v31 = vld [vmem:[%s7902_s7 + $0x38] sm:$0xff] }
 0x166   : > { %2348 = vperm.xlu0 %5065, %v2259_v32   ;;  %2626 = vmatpush2.msra.mxu0 %v2577_v43  ;;  %v2872_v32 = vld [vmem:[%s5628_s28 + $0xe8] sm:$0xff]  ;;  %v2035_v43 = vld [vmem:[%s5633_s15 + $0xf8] sm:$0xff] }
 0x167   : > { %4750 = vmatmul.mubr.msk.f32.gmra.mxu0 %vm918_vm1, %v895_v34  ;;  %2627 = vmatprep.subr.mxu0 %v7924_v38  ;;  %v2857_v34 = vld [vmem:[%s5628_s28 + $0x70] sm:$0xff] }
 0x168   : > { %4752 = vmatprep.mubr.msk.f32.mxu0 %vm918_vm1, %v896_v35  ;;  %2628 = vmatpush2.msra.mxu0 %v2576_v46  ;;  %v5995_v35 = vand.u32 127, %v2228_v30  ;;  %v2008_v30 = vld [vmem:[%s5633_s15 + $0x20] sm:$0xff] }
 0x169   : > { %2357 = vperm.xlu1 %5066, %v2262_v37   ;;  %2629 = vmatprep.subr.mxu0 %v7924_v38  ;;  %v2873_v37 = vld [vmem:[%s5628_s28 + $0xf0] sm:$0xff] }
 0x16a   : > { %2354 = vperm.xlu0 %5065, %v2261_v39   ;;  %2630 = vmatpush2.msra.mxu0 %v2575_v49  ;;  %v1760_v39 = vld [vmem:[%s7902_s7 + $0x20] sm:$0xff]  ;;  %v6005_v40 = vadd.s32 128, %v5995_v35  ;;  %v5468_v49 = vmov 1.0  }
 0x16b   : > { %4753 = vmatmul.mubr.msk.f32.gmra.mxu0 %vm918_vm1, %v897_v41  ;;  %2631 = vmatprep.subr.mxu0 %v7924_v38  ;;  %v2874_v41 = vld [vmem:[%s5628_s28 + $0xf8] sm:$0xff] }
 0x16c   : > { %4755 = vmatprep.mubr.msk.f32.mxu0 %vm918_vm1, %v898_v42  ;;  %2632 = vmatpush2.msra.mxu0 %v2574_v52  ;;  %v1759_v42 = vld [vmem:[%s7902_s7 + $0x18] sm:$0xff]  ;;  %v1756_v52 = vld [vmem:[%s7902_s7] sm:$0xff] }
 0x16d   : > { %2876 = vperm.xlu1 %5066, %v2843_v44   ;;  %2633 = vmatprep.subr.mxu0 %v7924_v38 }
 0x16e   : > { %2924 = vperm.xlu0 %5065, %v2859_v45   ;;  %2634 = vmatpush2.msra.mxu0 %v2573_v55  ;;  %v1758_v45 = vld [vmem:[%s7902_s7 + $0x10] sm:$0xff] }
 0x16f   : > { %4756 = vmatmul.mubr.msk.f32.gmra.mxu0 %vm918_vm1, %v899_v47  ;;  %2635 = vmatprep.subr.mxu0 %v7924_v38  ;;  %v2858_v47 = vld [vmem:[%s5628_s28 + $0x78] sm:$0xff]  ;;  %v2034_v55 = vld [vmem:[%s5633_s15 + $0xf0] sm:$0xff] }
 0x170   : > { %4758 = vmatprep.mubr.msk.f32.mxu0 %vm918_vm1, %v900_v48  ;;  %2636 = vmatpush2.msra.mxu0 %v2572_v58  ;;  %v1757_v48 = vld [vmem:[%s7902_s7 + $0x8] sm:$0xff] }
 0x171   : > { %2879 = vperm.xlu1 %5066, %v2844_v50   ;;  %2637 = vmatprep.subr.mxu0 %v7924_v38  ;;  %v2019_v50 = vld [vmem:[%s5633_s15 + $0x78] sm:$0xff]  ;;  %v2017_v58 = vld [vmem:[%s5633_s15 + $0x68] sm:$0xff] }
 0x172   : > { %2927 = vperm.xlu0 %5065, %v2860_v51   ;;  %2638 = vmatpush2.msra.mxu0 %v2571_v60 }
 0x173   : > { %4759 = vmatmul.mubr.msk.f32.gmra.mxu0 %vm918_vm1, %v901_v53  ;;  %2639 = vmatprep.subr.mxu0 %v7924_v38 }
 0x174   : > { %4761 = vmatprep.mubr.msk.f32.mxu0 %vm918_vm1, %v902_v54  ;;  %2640 = vmatpush2.msra.mxu0 %v2570_v63  ;;  %v2018_v54 = vld [vmem:[%s5633_s15 + $0x70] sm:$0xff]  ;;  %v2032_v63 = vld [vmem:[%s5633_s15 + $0xe0] sm:$0xff] }
 0x175   : > { %2882 = vperm.xlu1 %5066, %v2845_v56   ;;  %2641 = vmatprep.subr.mxu0 %v7924_v38 }
 0x176   : > { %2930 = vperm.xlu0 %5065, %v2861_v57   ;;  %2642 = vmatpush2.msra.mxu0 %v2569_v0 }
 0x177   : > { %4762 = vmatmul.mubr.msk.f32.gmra.mxu0 %vm918_vm1, %v903_v59  ;;  %2643 = vmatprep.subr.mxu0 %v7924_v38  ;;  %v2033_v59 = vld [vmem:[%s5633_s15 + $0xe8] sm:$0xff] }
 0x178   : > { %2644 = vmatpush2.msra.mxu0 %v2568_v3  ;;  %4764 = vmatprep.subr.mxu1 %v1771_v13  ;;  %v2031_v3 = vld [vmem:[%s5633_s15 + $0xd8] sm:$0xff] }
 0x179   : > { %2885 = vperm.xlu1 %5066, %v2846_v61   ;;  %2645 = vmatprep.subr.mxu0 %v7924_v38 }
 0x17a   : > { %2933 = vperm.xlu0 %5065, %v2862_v62   ;;  %2646 = vmatpush2.msra.mxu0 %v2567_v4  ;;  %v2016_v62 = vld [vmem:[%s5633_s15 + $0x60] sm:$0xff] }
 0x17b   : > { %4765 = vmatpush3.msra.mxu1 %v1771_v13 }
 0x17c   : > { %4766 = vmatprep.subr.mxu1 %v1770_v16 }
 0x17d   : > { %2888 = vperm.xlu1 %5066, %v2847_v1   ;;  %4767 = vmatpush3.msra.mxu1 %v1770_v16 }
 0x17e   : > { %2936 = vperm.xlu0 %5065, %v2863_v2   ;;  %4768 = vmatprep.subr.mxu1 %v1769_v17  ;;  %v2015_v2 = vld [vmem:[%s5633_s15 + $0x58] sm:$0xff] }
 0x17f   : > { %4769 = vmatpush3.msra.mxu1 %v1769_v17 }
 0x180   : > { %4770 = vmatprep.subr.mxu1 %v1768_v20 }
 0x181   : > { %2891 = vperm.xlu1 %5066, %v2848_v5   ;;  %4771 = vmatpush3.msra.mxu1 %v1768_v20 }
 0x182   : > { %2939 = vperm.xlu0 %5065, %v2864_v6   ;;  %4772 = vmatprep.subr.mxu1 %v1767_v21  ;;  %v2014_v6 = vld [vmem:[%s5633_s15 + $0x50] sm:$0xff] }
 0x183   : > { %4773 = vmatpush3.msra.mxu1 %v1767_v21 }
 0x184   : > { %4774 = vmatprep.subr.mxu1 %v1766_v24 }
 0x185   : > { %2894 = vperm.xlu1 %5066, %v2849_v7   ;;  %4775 = vmatpush3.msra.mxu1 %v1766_v24  ;;  %v2030_v7 = vld [vmem:[%s5633_s15 + $0xd0] sm:$0xff] }
 0x186   : > { %2942 = vperm.xlu0 %5065, %v2865_v8   ;;  %4776 = vmatprep.subr.mxu1 %v1765_v26 }
 0x187   : > { %4777 = vmatpush3.msra.mxu1 %v1765_v26  ;;  %v2009_v26 = vld [vmem:[%s5633_s15 + $0x28] sm:$0xff] }
 0x188   : > { %4778 = vmatprep.subr.mxu1 %v1764_v28 }
 0x189   : > { %2897 = vperm.xlu1 %5066, %v2850_v9   ;;  %4779 = vmatpush3.msra.mxu1 %v1764_v28 }
 0x18a   : > { %2945 = vperm.xlu0 %5065, %v2866_v10   ;;  %4780 = vmatprep.subr.mxu1 %v1763_v31  ;;  %v2013_v10 = vld [vmem:[%s5633_s15 + $0x48] sm:$0xff] }
 0x18b   : > { %4781 = vmatpush3.msra.mxu1 %v1763_v31  ;;  %v2024_v31 = vld [vmem:[%s5633_s15 + $0xa0] sm:$0xff] }
 0x18c   : > { %4782 = vmatprep.subr.mxu1 %v1762_v33 }
 0x18d   : > { %2900 = vperm.xlu1 %5066, %v2851_v11   ;;  %4783 = vmatpush3.msra.mxu1 %v1762_v33  ;;  %v2029_v11 = vld [vmem:[%s5633_s15 + $0xc8] sm:$0xff] }
 0x18e   : > { %2948 = vperm.xlu0 %5065, %v2867_v12   ;;  %4784 = vmatprep.subr.mxu1 %v1761_v36 }
 0x18f   : > { %4785 = vmatpush3.msra.mxu1 %v1761_v36  ;;  %v2023_v36 = vld [vmem:[%s5633_s15 + $0x98] sm:$0xff] }
 0x190   : > { %4786 = vmatprep.subr.mxu1 %v1760_v39 }
 0x191   : > { %2903 = vperm.xlu1 %5066, %v2852_v14   ;;  %4787 = vmatpush3.msra.mxu1 %v1760_v39  ;;  %v2012_v14 = vld [vmem:[%s5633_s15 + $0x40] sm:$0xff] }
 0x192   : > { %2951 = vperm.xlu0 %5065, %v2868_v15   ;;  %4788 = vmatprep.subr.mxu1 %v1759_v42  ;;  %v2028_v15 = vld [vmem:[%s5633_s15 + $0xc0] sm:$0xff] }
 0x193   : > { %4789 = vmatpush3.msra.mxu1 %v1759_v42  ;;  %v2022_v42 = vld [vmem:[%s5633_s15 + $0x90] sm:$0xff] }
 0x194   : > { %4790 = vmatprep.subr.mxu1 %v1758_v45 }
 0x195   : > { %2906 = vperm.xlu1 %5066, %v2853_v18   ;;  %4791 = vmatpush3.msra.mxu1 %v1758_v45  ;;  %v2011_v18 = vld [vmem:[%s5633_s15 + $0x38] sm:$0xff]  ;;  %v2005_v45 = vld [vmem:[%s5633_s15 + $0x8] sm:$0xff] }
 0x196   : > { %2954 = vperm.xlu0 %5065, %v2869_v19   ;;  %4792 = vmatprep.subr.mxu1 %v1757_v48  ;;  %v2027_v19 = vld [vmem:[%s5633_s15 + $0xb8] sm:$0xff] }
 0x197   : > { %4793 = vmatpush3.msra.mxu1 %v1757_v48 }
 0x198   : > { %4794 = vmatprep.subr.mxu1 %v1756_v52 }
 0x199   : > { %2909 = vperm.xlu1 %5066, %v2854_v22   ;;  %4795 = vmatpush3.msra.mxu1 %v1756_v52  ;;  %v2010_v22 = vld [vmem:[%s5633_s15 + $0x30] sm:$0xff] }
 0x19a   : > { %2957 = vperm.xlu0 %5065, %v2870_v23   ;;  %v2026_v23 = vld [vmem:[%s5633_s15 + $0xb0] sm:$0xff] }
 0x19d   : > { %2912 = vperm.xlu1 %5066, %v2855_v25  }
 0x19e   : > { %2960 = vperm.xlu0 %5065, %v2871_v27   ;;  %v2025_v27 = vld [vmem:[%s5633_s15 + $0xa8] sm:$0xff] }
 0x1a1   : > { %2915 = vperm.xlu1 %5066, %v2856_v29  }
 0x1a2   : > { %2963 = vperm.xlu0 %5065, %v2872_v32  }
 0x1a5   : > { %2918 = vperm.xlu1 %5066, %v2857_v34   ;;  %v2007_v34 = vld [vmem:[%s5633_s15 + $0x18] sm:$0xff] }
 0x1a6   : > { %2966 = vperm.xlu0 %5065, %v2873_v37  }
 0x1a8   : > { %v2271_v44 = vpop.permute.xlu1 %2270 }
 0x1a9   : > { %v2265_v46 = vpop.permute.xlu0 %2264  ;;  %2969 = vperm.xlu1 %5066, %v2874_v41   ;;  %vm2364_vm4 = vcmp.eq.s32.totalorder %v2271_v44, %v6005_v40  ;;  %vm2363_vm7 = vcmp.eq.s32.totalorder %v2271_v44, %v5995_v35  ;;  %v2006_v41 = vld [vmem:[%s5633_s15 + $0x10] sm:$0xff] }
 0x1aa   : > { %vm2359_vm2 = vcmp.eq.s32.totalorder %v2265_v46, %v5995_v35  ;;  %vm2360_vm3 = vcmp.eq.s32.totalorder %v2265_v46, %v6005_v40  ;;  %2193 = vperm.xlu0 %5065, %v2035_v43   ;;  %v2021_v46 = vld [vmem:[%s5633_s15 + $0x88] sm:$0xff] }
 0x1ab   : > { %4221 = vmatprep.mubr.msk.f32.mxu0 %vm2360_vm3, %v5468_v49 }
 0x1ac   : > { %4222 = vmatmul.mubr.msk.f32.vlgmr.msra.gmra.mxu0 %vm2359_vm2, %v5468_v49  ;;  %v2274_v51 = vpop.permute.xlu1 %2273 }
 0x1ad   : > { %v2268_v53 = vpop.permute.xlu0 %2267  ;;  %2921 = vperm.xlu1 %5066, %v2858_v47   ;;  %vm2366_vm8 = vcmp.eq.s32.totalorder %v2274_v51, %v6005_v40  ;;  %vm2365_vm9 = vcmp.eq.s32.totalorder %v2274_v51, %v5995_v35  ;;  %v2020_v51 = vld [vmem:[%s5633_s15 + $0x80] sm:$0xff] }
 0x1ae   : > { %vm2361_vm5 = vcmp.eq.s32.totalorder %v2268_v53, %v5995_v35  ;;  %vm2362_vm6 = vcmp.eq.s32.totalorder %v2268_v53, %v6005_v40  ;;  %2113 = vperm.xlu0 %5065, %v2019_v50   ;;  %v2004_v50 = vld [vmem:[%s5633_s15] sm:$0xff]  ;;  %s4285_s15 = sshll.u32 %s5451_s17, 7 }
 0x1af   : > { %4223 = vmatprep.mubr.msk.f32.mxu0 %vm2362_vm6, %v5468_v49 }
 0x1b0   : > { %4224 = vmatmul.mubr.msk.f32.gmra.mxu0 %vm2361_vm5, %v5468_v49  ;;  %v2280_v56 = vpop.permute.xlu1 %2279 }
 0x1b1   : > { %v2277_v57 = vpop.permute.xlu0 %2276  ;;  %2108 = vperm.xlu1 %5066, %v2018_v54   ;;  %4225 = vmatprep.mubr.msk.f32.mxu0 %vm2364_vm4, %v5468_v49  ;;  %vm2370_vm12 = vcmp.eq.s32.totalorder %v2280_v56, %v6005_v40  ;;  %vm2369_vm13 = vcmp.eq.s32.totalorder %v2280_v56, %v5995_v35 }
 0x1b2   : > { %2188 = vperm.xlu0 %5065, %v2034_v55   ;;  %vm2368_vm10 = vcmp.eq.s32.totalorder %v2277_v57, %v6005_v40  ;;  %vm2367_vm11 = vcmp.eq.s32.totalorder %v2277_v57, %v5995_v35 }
 0x1b4   : > { %4226 = vmatmul.mubr.msk.f32.gmra.mxu0 %vm2363_vm7, %v5468_v49  ;;  %v2286_v60 = vpop.permute.xlu1 %2285 }
 0x1b5   : > { %v2283_v61 = vpop.permute.xlu0 %2282  ;;  %2103 = vperm.xlu1 %5066, %v2017_v58   ;;  %4227 = vmatprep.mubr.msk.f32.mxu0 %vm2366_vm8, %v5468_v49  ;;  %vm2374_vm0 = vcmp.eq.s32.totalorder %v2286_v60, %v6005_v40  ;;  %vm2373_vm1 = vcmp.eq.s32.totalorder %v2286_v60, %v5995_v35  ;;  %v2841_v60 = vstv %s4285_s15 }
 0x1b6   : > { %2183 = vperm.xlu0 %5065, %v2033_v59   ;;  %vm2372_vm14 = vcmp.eq.s32.totalorder %v2283_v61, %v6005_v40  ;;  %vm2371_vm15 = vcmp.eq.s32.totalorder %v2283_v61, %v5995_v35 }
 0x1b8   : > { %4228 = vmatmul.mubr.msk.f32.gmra.mxu0 %vm2365_vm9, %v5468_v49  ;;  %v2292_v0 = vpop.permute.xlu1 %2291 }
 0x1b9   : > { %v2289_v1 = vpop.permute.xlu0 %2288  ;;  %2098 = vperm.xlu1 %5066, %v2016_v62   ;;  %4229 = vmatprep.mubr.msk.f32.mxu0 %vm2368_vm10, %v5468_v49  ;;  %vm2378_vm4 = vcmp.eq.s32.totalorder %v2292_v0, %v6005_v40  ;;  %vm2377_vm5 = vcmp.eq.s32.totalorder %v2292_v0, %v5995_v35  ;;  %v6199_v62 = vadd.s32 %v2841_v60, %v5995_v35  ;;  %v6207_v0 = vld [vmem:[%s7901_s6] ss:$0 sm:$0xff] }
 0x1ba   : > { %2178 = vperm.xlu0 %5065, %v2032_v63   ;;  %vm2376_vm2 = vcmp.eq.s32.totalorder %v2289_v1, %v6005_v40  ;;  %vm2375_vm3 = vcmp.eq.s32.totalorder %v2289_v1, %v5995_v35 }
 0x1bc   : > { %4230 = vmatmul.mubr.msk.f32.gmra.mxu0 %vm2367_vm11, %v5468_v49  ;;  %v6052_v4 = vpop.permute.xlu1 %2297 }
 0x1bd   : > { %v2295_v5 = vpop.permute.xlu0 %2294  ;;  %2093 = vperm.xlu1 %5066, %v2015_v2   ;;  %4231 = vmatprep.mubr.msk.f32.mxu0 %vm2370_vm12, %v5468_v49  ;;  %vm2382_vm8 = vcmp.eq.s32.totalorder %v6052_v4, %v6005_v40  ;;  %vm2381_vm9 = vcmp.eq.s32.totalorder %v6052_v4, %v5995_v35 }
 0x1be   : > { %2173 = vperm.xlu0 %5065, %v2031_v3   ;;  %vm2380_vm6 = vcmp.eq.s32.totalorder %v2295_v5, %v6005_v40  ;;  %vm2379_vm7 = vcmp.eq.s32.totalorder %v2295_v5, %v5995_v35 }
 0x1c0   : > { %4232 = vmatmul.mubr.msk.f32.gmra.mxu0 %vm2369_vm13, %v5468_v49  ;;  %v6060_v8 = vpop.permute.xlu1 %2303 }
 0x1c1   : > { %v6063_v9 = vpop.permute.xlu0 %2300  ;;  %2088 = vperm.xlu1 %5066, %v2014_v6   ;;  %4233 = vmatprep.mubr.msk.f32.mxu0 %vm2372_vm14, %v5468_v49  ;;  %vm2386_vm12 = vcmp.eq.s32.totalorder %v6060_v8, %v6005_v40  ;;  %vm2385_vm13 = vcmp.eq.s32.totalorder %v6060_v8, %v5995_v35 }
 0x1c2   : > { %2168 = vperm.xlu0 %5065, %v2030_v7   ;;  %vm2384_vm10 = vcmp.eq.s32.totalorder %v6063_v9, %v6005_v40  ;;  %vm2383_vm11 = vcmp.eq.s32.totalorder %v6063_v9, %v5995_v35 }
 0x1c4   : > { %4234 = vmatmul.mubr.msk.f32.gmra.mxu0 %vm2371_vm15, %v5468_v49  ;;  %v6070_v12 = vpop.permute.xlu1 %2309 }
 0x1c5   : > { %v6073_v13 = vpop.permute.xlu0 %2306  ;;  %2083 = vperm.xlu1 %5066, %v2013_v10   ;;  %4235 = vmatprep.mubr.msk.f32.mxu0 %vm2374_vm0, %v5468_v49  ;;  %vm2390_vm0 = vcmp.eq.s32.totalorder %v6070_v12, %v6005_v40 }
 0x1c6   : > { %2163 = vperm.xlu0 %5065, %v2029_v11   ;;  %vm2388_vm14 = vcmp.eq.s32.totalorder %v6073_v13, %v6005_v40  ;;  %vm2387_vm15 = vcmp.eq.s32.totalorder %v6073_v13, %v5995_v35 }
 0x1c8   : > { %4236 = vmatmul.mubr.msk.f32.gmra.mxu0 %vm2373_vm1, %v5468_v49  ;;  %v6080_v16 = vpop.permute.xlu1 %2315  ;;  %vm2389_vm1 = vcmp.eq.s32.totalorder %v6070_v12, %v5995_v35 }
 0x1c9   : > { %v6083_v17 = vpop.permute.xlu0 %2312  ;;  %2078 = vperm.xlu1 %5066, %v2012_v14   ;;  %4237 = vmatprep.mubr.msk.f32.mxu0 %vm2376_vm2, %v5468_v49 }
 0x1ca   : > { %2158 = vperm.xlu0 %5065, %v2028_v15   ;;  %vm2392_vm2 = vcmp.eq.s32.totalorder %v6083_v17, %v6005_v40 }
 0x1cc   : > { %4238 = vmatmul.mubr.msk.f32.gmra.mxu0 %vm2375_vm3, %v5468_v49  ;;  %v6090_v20 = vpop.permute.xlu1 %2321  ;;  %vm2391_vm3 = vcmp.eq.s32.totalorder %v6083_v17, %v5995_v35 }
 0x1cd   : > { %v6093_v21 = vpop.permute.xlu0 %2318  ;;  %2073 = vperm.xlu1 %5066, %v2011_v18   ;;  %4239 = vmatprep.mubr.msk.f32.mxu0 %vm2378_vm4, %v5468_v49  ;;  %vm2394_vm4 = vcmp.eq.s32.totalorder %v6080_v16, %v6005_v40 }
 0x1ce   : > { %2153 = vperm.xlu0 %5065, %v2027_v19  }
 0x1d0   : > { %4240 = vmatmul.mubr.msk.f32.gmra.mxu0 %vm2377_vm5, %v5468_v49  ;;  %v6100_v24 = vpop.permute.xlu1 %2327  ;;  %vm2393_vm5 = vcmp.eq.s32.totalorder %v6080_v16, %v5995_v35 }
 0x1d1   : > { %v6103_v25 = vpop.permute.xlu0 %2324  ;;  %2068 = vperm.xlu1 %5066, %v2010_v22   ;;  %4241 = vmatprep.mubr.msk.f32.mxu0 %vm2380_vm6, %v5468_v49  ;;  %vm2396_vm6 = vcmp.eq.s32.totalorder %v6093_v21, %v6005_v40 }
 0x1d2   : > { %2148 = vperm.xlu0 %5065, %v2026_v23  }
 0x1d4   : > { %4242 = vmatmul.mubr.msk.f32.gmra.mxu0 %vm2379_vm7, %v5468_v49  ;;  %v6111_v28 = vpop.permute.xlu1 %2333  ;;  %vm2398_vm7 = vcmp.eq.s32.totalorder %v6090_v20, %v6005_v40 }
 0x1d5   : > { %v6115_v29 = vpop.permute.xlu0 %2330  ;;  %2063 = vperm.xlu1 %5066, %v2009_v26   ;;  %4243 = vmatprep.mubr.msk.f32.mxu0 %vm2382_vm8, %v5468_v49  ;;  %vm2395_vm8 = vcmp.eq.s32.totalorder %v6093_v21, %v5995_v35 }
 0x1d6   : > { %2143 = vperm.xlu0 %5065, %v2025_v27  }
 0x1d8   : > { %4244 = vmatmul.mubr.msk.f32.gmra.mxu0 %vm2381_vm9, %v5468_v49  ;;  %v6123_v32 = vpop.permute.xlu1 %2339  ;;  %vm2397_vm9 = vcmp.eq.s32.totalorder %v6090_v20, %v5995_v35 }
 0x1d9   : > { %v6127_v33 = vpop.permute.xlu0 %2336  ;;  %2058 = vperm.xlu1 %5066, %v2008_v30   ;;  %4245 = vmatprep.mubr.msk.f32.mxu0 %vm2384_vm10, %v5468_v49  ;;  %vm2400_vm10 = vcmp.eq.s32.totalorder %v6103_v25, %v6005_v40 }
 0x1da   : > { %2138 = vperm.xlu0 %5065, %v2024_v31  }
 0x1dc   : > { %4246 = vmatmul.mubr.msk.f32.gmra.mxu0 %vm2383_vm11, %v5468_v49  ;;  %v6135_v37 = vpop.permute.xlu1 %2345  ;;  %vm2399_vm11 = vcmp.eq.s32.totalorder %v6103_v25, %v5995_v35 }
 0x1dd   : > { %v6139_v39 = vpop.permute.xlu0 %2342  ;;  %2053 = vperm.xlu1 %5066, %v2007_v34   ;;  %4247 = vmatprep.mubr.msk.f32.mxu0 %vm2386_vm12, %v5468_v49  ;;  %vm2402_vm12 = vcmp.eq.s32.totalorder %v6100_v24, %v6005_v40 }
 0x1de   : > { %2133 = vperm.xlu0 %5065, %v2023_v36  }
 0x1e0   : > { %4248 = vmatmul.mubr.msk.f32.gmra.mxu0 %vm2385_vm13, %v5468_v49  ;;  %v6147_v43 = vpop.permute.xlu1 %2351  ;;  %vm2401_vm13 = vcmp.eq.s32.totalorder %v6100_v24, %v5995_v35 }
 0x1e1   : > { %v6151_v44 = vpop.permute.xlu0 %2348  ;;  %2048 = vperm.xlu1 %5066, %v2006_v41   ;;  %4249 = vmatprep.mubr.msk.f32.mxu0 %vm2388_vm14, %v5468_v49  ;;  %vm2406_vm14 = vcmp.eq.s32.totalorder %v6111_v28, %v6005_v40 }
 0x1e2   : > { %2128 = vperm.xlu0 %5065, %v2022_v42  }
 0x1e4   : > { %4250 = vmatmul.mubr.msk.f32.gmra.mxu0 %vm2387_vm15, %v5468_v49  ;;  %v6159_v47 = vpop.permute.xlu1 %2357 }
 0x1e5   : > { %v6163_v48 = vpop.permute.xlu0 %2354  ;;  %2043 = vperm.xlu1 %5066, %v2005_v45   ;;  %4251 = vmatprep.mubr.msk.f32.mxu0 %vm2390_vm0, %v5468_v49 }
 0x1e6   : > { %2123 = vperm.xlu0 %5065, %v2021_v46  }
 0x1e8   : > { %4252 = vmatmul.mubr.msk.f32.gmra.mxu0 %vm2389_vm1, %v5468_v49  ;;  %v2877_v52 = vpop.permute.xlu1 %2876 }
 0x1e9   : > { %v2925_v53 = vpop.permute.xlu0 %2924  ;;  %2038 = vperm.xlu1 %5066, %v2004_v50   ;;  %4253 = vmatprep.mubr.msk.f32.mxu0 %vm2392_vm2, %v5468_v49  ;;  %vm2971_vm15 = vcmp.eq.s32.totalorder %v2877_v52, %v6199_v62 }
 0x1ea   : > { %2118 = vperm.xlu0 %5065, %v2020_v51   ;;  %vm2987_vm0 = vcmp.eq.s32.totalorder %v2925_v53, %v6199_v62  ;;  %v4286_v8 = vsel %vm2971_vm15, 1.0, %v7924_v38  ;;  %vm2408_vm15 = vcmp.eq.s32.totalorder %v6127_v33, %v6005_v40 }
 0x1eb   : > { %v4302_v11 = vsel %vm2987_vm0, 1.0, %v7924_v38 }
 0x1ec   : > { %4254 = vmatmul.mubr.msk.f32.gmra.mxu0 %vm2391_vm3, %v5468_v49  ;;  %v2880_v54 = vpop.permute.xlu1 %2879  ;;  %v5067_v26 = vpack.i.bf16 %v4286_v8, %v4302_v11 }
 0x1ed   : > { %v2928_v55 = vpop.permute.xlu0 %2927  ;;  %4255 = vmatprep.mubr.msk.f32.mxu0 %vm2394_vm4, %v5468_v49  ;;  %vm2972_vm1 = vcmp.eq.s32.totalorder %v2880_v54, %v6199_v62  ;;  %vm2405_vm4 = vcmp.eq.s32.totalorder %v6111_v28, %v5995_v35 }
 0x1ee   : > { %vm2988_vm2 = vcmp.eq.s32.totalorder %v2928_v55, %v6199_v62  ;;  %v6255_v12 = vsel %vm2972_vm1, 1.0, %v7924_v38 }
 0x1ef   : > { %v6260_v13 = vsel %vm2988_vm2, 1.0, %v7924_v38  ;;  %vm2412_vm2 = vcmp.eq.s32.totalorder %v6139_v39, %v6005_v40 }
 0x1f0   : > { %4256 = vmatmul.mubr.msk.f32.gmra.mxu0 %vm2393_vm5, %v5468_v49  ;;  %v2883_v56 = vpop.permute.xlu1 %2882  ;;  %v5069_v27 = vpack.i.bf16 %v6255_v12, %v6260_v13 }
 0x1f1   : > { %v2931_v57 = vpop.permute.xlu0 %2930  ;;  %4257 = vmatprep.mubr.msk.f32.mxu0 %vm2396_vm6, %v5468_v49  ;;  %vm2973_vm3 = vcmp.eq.s32.totalorder %v2883_v56, %v6199_v62 }
 0x1f2   : > { %vm2989_vm5 = vcmp.eq.s32.totalorder %v2931_v57, %v6199_v62  ;;  %v6269_v17 = vsel %vm2973_vm3, 1.0, %v7924_v38 }
 0x1f3   : > { %v6274_v18 = vsel %vm2989_vm5, 1.0, %v7924_v38 }
 0x1f4   : > { %4258 = vmatmul.mubr.msk.f32.gmra.mxu0 %vm2395_vm8, %v5468_v49  ;;  %v2886_v58 = vpop.permute.xlu1 %2885  ;;  %vm2403_vm8 = vcmp.eq.s32.totalorder %v6115_v29, %v5995_v35 }
 0x1f5   : > { %v2934_v59 = vpop.permute.xlu0 %2933  ;;  %4259 = vmatprep.mubr.msk.f32.mxu0 %vm2398_vm7, %v5468_v49  ;;  %vm2974_vm6 = vcmp.eq.s32.totalorder %v2886_v58, %v6199_v62 }
 0x1f6   : > { %vm2990_vm7 = vcmp.eq.s32.totalorder %v2934_v59, %v6199_v62  ;;  %v6279_v19 = vsel %vm2974_vm6, 1.0, %v7924_v38  ;;  %vm2414_vm6 = vcmp.eq.s32.totalorder %v6135_v37, %v6005_v40 }
 0x1f7   : > { %v6284_v20 = vsel %vm2990_vm7, 1.0, %v7924_v38 }
 0x1f8   : > { %4260 = vmatmul.mubr.msk.f32.gmra.mxu0 %vm2397_vm9, %v5468_v49  ;;  %v6196_v61 = vpop.permute.xlu1 %2888  ;;  %vm2404_vm9 = vcmp.eq.s32.totalorder %v6115_v29, %v6005_v40  ;;  %v5071_v29 = vpack.i.bf16 %v6269_v17, %v6274_v18  ;;  %v5073_v41 = vpack.i.bf16 %v6279_v19, %v6284_v20 }
 0x1f9   : > { %v6201_v63 = vpop.permute.xlu0 %2936  ;;  %4261 = vmatprep.mubr.msk.f32.mxu0 %vm2400_vm10, %v5468_v49  ;;  %vm2407_vm10 = vcmp.eq.s32.totalorder %v6127_v33, %v5995_v35 }
 0x1fb   : > { %v4718_v1 = vpop.f32.mrf.mxu0 }
 0x1fc   : > { %v6214_v2 = vadd.f32 %v4718_v1, %v6207_v0  ;;  %4262 = vmatmul.mubr.msk.f32.gmra.mxu0 %vm2399_vm11, %v5468_v49  ;;  %v2892_v3 = vpop.permute.xlu1 %2891  ;;  %vm2975_vm11 = vcmp.eq.s32.totalorder %v6196_v61, %v6199_v62 }
 0x1fd   : > { %v2940_v4 = vpop.permute.xlu0 %2939  ;;  %v1085_v5 = vpop.f32.mrf.mxu0  ;;  %4263 = vmatprep.mubr.msk.f32.mxu0 %vm2402_vm12, %v5468_v49  ;;  %vm2991_vm12 = vcmp.eq.s32.totalorder %v6201_v63, %v6199_v62  ;;  %vm2976_vm0 = vcmp.eq.s32.totalorder %v2892_v3, %v6199_v62  ;;  %v6326_v42 = vsel %vm2975_vm11, 1.0, %v7924_v38 }
 0x1fe   : > { %v6233_v6 = vadd.f32 %v6207_v0, %v1085_v5  ;;  %v1277_v9 = vand.u32 2147483647, %v6214_v2  ;;  %vm2992_vm1 = vcmp.eq.s32.totalorder %v2940_v4, %v6199_v62  ;;  %v6332_v45 = vsel %vm2991_vm12, 1.0, %v7924_v38 }
 0x1ff   : > { %v4721_v7 = vpop.f32.mrf.mxu0  ;;  %v6339_v46 = vsel %vm2976_vm0, 1.0, %v7924_v38  ;;  %v6344_v50 = vsel %vm2992_vm1, 1.0, %v7924_v38  ;;  %v5075_v57 = vpack.i.bf16 %v6326_v42, %v6332_v45  ;;  %vm2416_vm12 = vcmp.eq.s32.totalorder %v6151_v44, %v6005_v40 }
 0x200   : > { %4264 = vmatmul.mubr.msk.f32.gmra.mxu0 %vm2401_vm13, %v5468_v49  ;;  %v6247_v10 = vpop.permute.xlu1 %2894  ;;  %v6263_v14 = vadd.f32 %v4721_v7, %v6207_v0  ;;  %v1276_v21 = vand.u32 2147483647, %v6233_v6  ;;  %vm2410_vm13 = vcmp.eq.s32.totalorder %v6123_v32, %v6005_v40  ;;  %v1309_v24 = vsub.f32 0.0, %v1277_v9 }
 0x201   : > { %v2943_v15 = vpop.permute.xlu0 %2942  ;;  %v1095_v16 = vpop.f32.mrf.mxu0  ;;  %4265 = vmatprep.mubr.msk.f32.mxu0 %vm2404_vm9, %v5468_v49  ;;  %vm2977_vm3 = vcmp.eq.s32.totalorder %v6247_v10, %v6199_v62  ;;  %v5077_v1 = vpack.i.bf16 %v6339_v46, %v6344_v50  ;;  %vm2413_vm9 = vcmp.eq.s32.totalorder %v6135_v37, %v5995_v35 }
 0x202   : > { %v6294_v22 = vadd.f32 %v6207_v0, %v1095_v16  ;;  %v1279_v30 = vand.u32 2147483647, %v6263_v14  ;;  %v1308_v51 = vsub.f32 0.0, %v1276_v21  ;;  %v1342_v54 = vmul.f32 1.442695, %v1309_v24 }
 0x203   : > { %v4724_v23 = vpop.f32.mrf.mxu0  ;;  %vm2993_vm5 = vcmp.eq.s32.totalorder %v2943_v15, %v6199_v62  ;;  %v6382_v7 = vsel %vm2977_vm3, 1.0, %v7924_v38  ;;  %vm2420_vm3 = vcmp.eq.s32.totalorder %v6163_v48, %v6005_v40 }
 0x204   : > { %4266 = vmatmul.mubr.msk.f32.gmra.mxu0 %vm2403_vm8, %v5468_v49  ;;  %v6306_v25 = vpop.permute.xlu1 %2897  ;;  %v6312_v31 = vadd.f32 %v4724_v23, %v6207_v0  ;;  %v1278_v52 = vand.u32 2147483647, %v6294_v22  ;;  %v1311_v58 = vsub.f32 0.0, %v1279_v30  ;;  %v1340_v5 = vmul.f32 1.442695, %v1308_v51 }
 0x205   : > { %v2946_v34 = vpop.permute.xlu0 %2945  ;;  %v1105_v36 = vpop.f32.mrf.mxu0  ;;  %4267 = vmatprep.mubr.msk.f32.mxu0 %vm2406_vm14, %v5468_v49  ;;  %vm2409_vm14 = vcmp.eq.s32.totalorder %v6123_v32, %v5995_v35  ;;  %v6387_v8 = vsel %vm2993_vm5, 1.0, %v7924_v38  ;;  %5179 = vpow2.f32 %v1342_v54  ;;  %vm2978_vm7 = vcmp.eq.s32.totalorder %v6306_v25, %v6199_v62 }
 0x206   : > { %v6353_v55 = vadd.f32 %v6207_v0, %v1105_v36  ;;  %v1281_v59 = vand.u32 2147483647, %v6312_v31  ;;  %v1310_v9 = vsub.f32 0.0, %v1278_v52  ;;  %vm2994_vm8 = vcmp.eq.s32.totalorder %v2946_v34, %v6199_v62 }
 0x207   : > { %v4727_v53 = vpop.f32.mrf.mxu0  ;;  %v1346_v13 = vmul.f32 1.442695, %v1311_v58  ;;  %v5079_v33 = vpack.i.bf16 %v6382_v7, %v6387_v8  ;;  %5181 = vpow2.f32 %v1340_v5  ;;  %v6422_v51 = vsel %vm2978_vm7, 1.0, %v7924_v38 }
 0x208   : > { %5068 = vxpose.xlu0.b32.start [1/16] %v5067_v26, 128  ;;  %4268 = vmatmul.mubr.msk.f32.gmra.mxu0 %vm2405_vm4, %v5468_v49  ;;  %v6359_v56 = vpop.permute.xlu1 %2900  ;;  %v6365_v60 = vadd.f32 %v4727_v53, %v6207_v0  ;;  %vm2411_vm4 = vcmp.eq.s32.totalorder %v6139_v39, %v5995_v35  ;;  %v1280_v10 = vand.u32 2147483647, %v6353_v55  ;;  %v1313_v15 = vsub.f32 0.0, %v1281_v59 }
 0x209   : > { %v2949_v61 = vpop.permute.xlu0 %2948  ;;  %v1115_v63 = vpop.f32.mrf.mxu0  ;;  %4269 = vmatprep.mubr.msk.f32.mxu0 %vm2408_vm15, %v5468_v49  ;;  %v1344_v36 = vmul.f32 1.442695, %v1310_v9  ;;  %v6427_v52 = vsel %vm2994_vm8, 1.0, %v7924_v38  ;;  %5183 = vpow2.f32 %v1346_v13  ;;  %vm2418_vm15 = vcmp.eq.s32.totalorder %v6147_v43, %v6005_v40 }
 0x20a   : > { %v1283_v16 = vand.u32 2147483647, %v6365_v60  ;;  %v6403_v21 = vadd.f32 %v6207_v0, %v1115_v63  ;;  %v1312_v54 = vsub.f32 0.0, %v1280_v10  ;;  %vm2995_vm11 = vcmp.eq.s32.totalorder %v2949_v61, %v6199_v62 }
 0x20b   : > { %v4730_v11 = vpop.f32.mrf.mxu0  ;;  %v1350_v34 = vmul.f32 1.442695, %v1313_v15  ;;  %v5081_v32 = vpack.i.bf16 %v6422_v51, %v6427_v52  ;;  %5185 = vpow2.f32 %v1344_v36  ;;  %v6468_v13 = vsel %vm2995_vm11, 1.0, %v7924_v38 }
 0x20c   : > { %5070 = vxpose.xlu0.b32.cont [2/16] %v5069_v27, 128  ;;  %4270 = vmatmul.mubr.msk.f32.gmra.mxu0 %vm2407_vm10, %v5468_v49  ;;  %v6399_v12 = vpop.permute.xlu1 %2903  ;;  %v6414_v30 = vadd.f32 %v4730_v11, %v6207_v0  ;;  %vm2979_vm10 = vcmp.eq.s32.totalorder %v6359_v56, %v6199_v62  ;;  %v1315_v59 = vsub.f32 0.0, %v1283_v16  ;;  %v1282_v63 = vand.u32 2147483647, %v6403_v21 }
 0x20d   : > { %v2952_v23 = vpop.permute.xlu0 %2951  ;;  %v1125_v24 = vpop.f32.mrf.mxu0  ;;  %4271 = vmatprep.mubr.msk.f32.mxu0 %vm2410_vm13, %v5468_v49  ;;  %v6463_v10 = vsel %vm2979_vm10, 1.0, %v7924_v38  ;;  %vm2415_vm13 = vcmp.eq.s32.totalorder %v6151_v44, %v5995_v35  ;;  %v1348_v16 = vmul.f32 1.442695, %v1312_v54  ;;  %vm2980_vm0 = vcmp.eq.s32.totalorder %v6399_v12, %v6199_v62 }
 0x20e   : > { %v6433_v58 = vadd.f32 %v6207_v0, %v1125_v24  ;;  %v1285_v18 = vand.u32 2147483647, %v6414_v30  ;;  %vm2996_vm1 = vcmp.eq.s32.totalorder %v2952_v23, %v6199_v62  ;;  %5187 = vpow2.f32 %v1350_v34 }
 0x20f   : > { %v4733_v53 = vpop.f32.mrf.mxu0  ;;  %v1354_v24 = vmul.f32 1.442695, %v1315_v59  ;;  %v1314_v36 = vsub.f32 0.0, %v1282_v63  ;;  %v5083_v19 = vpack.i.bf16 %v6463_v10, %v6468_v13  ;;  %v6504_v34 = vsel %vm2980_vm0, 1.0, %v7924_v38 }
 0x210   : > { %5072 = vxpose.xlu0.b32.cont [3/16] %v5071_v29, 128  ;;  %4272 = vmatmul.mubr.msk.f32.gmra.mxu0 %vm2409_vm14, %v5468_v49  ;;  %v6442_v25 = vpop.permute.xlu1 %2906  ;;  %v6456_v29 = vadd.f32 %v4733_v53, %v6207_v0  ;;  %v1284_v56 = vand.u32 2147483647, %v6433_v58  ;;  %v1317_v20 = vsub.f32 0.0, %v1285_v18  ;;  %vm2417_vm14 = vcmp.eq.s32.totalorder %v6147_v43, %v5995_v35 }
 0x211   : > { %v2955_v5 = vpop.permute.xlu0 %2954  ;;  %v1135_v9 = vpop.f32.mrf.mxu0  ;;  %4273 = vmatprep.mubr.msk.f32.mxu0 %vm2412_vm2, %v5468_v49  ;;  %v6509_v59 = vsel %vm2996_vm1, 1.0, %v7924_v38  ;;  %vm2981_vm2 = vcmp.eq.s32.totalorder %v6442_v25, %v6199_v62  ;;  %5189 = vpow2.f32 %v1348_v16  ;;  %v1352_v16 = vmul.f32 1.442695, %v1314_v36 }
 0x212   : > { %v6488_v53 = vadd.f32 %v6207_v0, %v1135_v9  ;;  %v1316_v18 = vsub.f32 0.0, %v1284_v56  ;;  %vm2997_vm5 = vcmp.eq.s32.totalorder %v2955_v5, %v6199_v62  ;;  %5191 = vpow2.f32 %v1354_v24 }
 0x213   : > { %v4736_v15 = vpop.f32.mrf.mxu0  ;;  %v1358_v42 = vmul.f32 1.442695, %v1317_v20  ;;  %vm2422_vm7 = vcmp.eq.s32.totalorder %v6159_v47, %v6005_v40  ;;  %5193 = vpow2.f32 %v1352_v16 }
 0x214   : > { %5074 = vxpose.xlu0.b32.cont [4/16] %v5073_v41, 128  ;;  %4274 = vmatmul.mubr.msk.f32.gmra.mxu0 %vm2411_vm4, %v5468_v49  ;;  %v6485_v61 = vpop.permute.xlu1 %2909  ;;  %v1287_v41 = vand.u32 2147483647, %v6456_v29  ;;  %v6514_v63 = vadd.f32 %v4736_v15, %v6207_v0  ;;  %v6529_v15 = vpop.eup %5179  ;;  %v1286_v12 = vand.u32 2147483647, %v6488_v53  ;;  %vm2419_vm4 = vcmp.eq.s32.totalorder %v6163_v48, %v5995_v35 }
 0x215   : > { %v2958_v54 = vpop.permute.xlu0 %2957  ;;  %v1145_v11 = vpop.f32.mrf.mxu0  ;;  %4275 = vmatprep.mubr.msk.f32.mxu0 %vm2414_vm6, %v5468_v49  ;;  %vm2982_vm6 = vcmp.eq.s32.totalorder %v6485_v61, %v6199_v62  ;;  %v1356_v5 = vmul.f32 1.442695, %v1316_v18  ;;  %5195 = vpow2.f32 %v1358_v42 }
 0x216   : > { %v6533_v56 = vadd.f32 %v6207_v0, %v1145_v11  ;;  %v1319_v45 = vsub.f32 0.0, %v1287_v41  ;;  %v6552_v11 = vsel %vm2997_vm5, 1.0, %v7924_v38  ;;  %v1289_v24 = vand.u32 2147483647, %v6514_v63  ;;  %v6560_v41 = vpop.eup %5181 }
 0x217   : > { %v4739_v9 = vpop.f32.mrf.mxu0  ;;  %vm2998_vm8 = vcmp.eq.s32.totalorder %v2958_v54, %v6199_v62  ;;  %v1318_v3 = vsub.f32 0.0, %v1286_v12  ;;  %v6582_v46 = vpop.eup %5183  ;;  %5197 = vpow2.f32 %v1356_v5 }
 0x218   : > { %5076 = vxpose.xlu0.b32.cont [5/16] %v5075_v57, 128  ;;  %4276 = vmatmul.mubr.msk.f32.gmra.mxu0 %vm2413_vm9, %v5468_v49  ;;  %v6527_v23 = vpop.permute.xlu1 %2912  ;;  %v6545_v57 = vsel %vm2981_vm2, 1.0, %v7924_v38  ;;  %v6558_v36 = vadd.f32 %v4739_v9, %v6207_v0  ;;  %v1288_v17 = vand.u32 2147483647, %v6533_v56  ;;  %v1362_v50 = vmul.f32 1.442695, %v1319_v45  ;;  %v6603_v26 = vpop.eup %5185 }
 0x219   : > { %v1155_v39 = vpop.f32.mrf.mxu0  ;;  %4277 = vmatprep.mubr.msk.f32.mxu0 %vm2416_vm12, %v5468_v49  ;;  %v2961_v20 = vpop.permute.xlu0 %2960  ;;  %vm2421_vm9 = vcmp.eq.s32.totalorder %v6159_v47, %v5995_v35  ;;  %v1321_v12 = vsub.f32 0.0, %v1289_v24  ;;  %v6597_v16 = vsel %vm2998_vm8, 1.0, %v7924_v38  ;;  %v1360_v54 = vmul.f32 1.442695, %v1318_v3 }
 0x21a   : > { %7968 = vst [vmem:[#allocation18_spill] sm:$0xff] %v6558_v36  ;;  %v6576_v27 = vadd.f32 %v6207_v0, %v1155_v39  ;;  %v1291_v42 = vand.u32 2147483647, %v6558_v36  ;;  %v1320_v28 = vsub.f32 0.0, %v1288_v17  ;;  %vm2983_vm10 = vcmp.eq.s32.totalorder %v6527_v23, %v6199_v62 }
 0x21b   : > { %v4742_v25 = vpop.f32.mrf.mxu0  ;;  %vm2999_vm11 = vcmp.eq.s32.totalorder %v2961_v20, %v6199_v62  ;;  %v6624_v7 = vpop.eup %5187  ;;  %5199 = vpow2.f32 %v1362_v50  ;;  %v6638_v50 = vsel %vm2983_vm10, 1.0, %v7924_v38  ;;  %v7977_v36 = vpack.i.bf16 %v6545_v57, %v6552_v11 }
 0x21c   : > { %5078 = vxpose.xlu0.b32.cont [6/16] %v5077_v1, 128  ;;  %4278 = vmatmul.mubr.msk.f32.gmra.mxu0 %vm2415_vm13, %v5468_v49  ;;  %v6590_v1 = vsel %vm2982_vm6, 1.0, %v7924_v38  ;;  %v2916_v39 = vpop.permute.xlu1 %2915  ;;  %v6601_v45 = vadd.f32 %v4742_v25, %v6207_v0  ;;  %v1290_v4 = vand.u32 2147483647, %v6576_v27  ;;  %v1364_v37 = vmul.f32 1.442695, %v1320_v28 }
 0x21d   : > { %v1165_v18 = vpop.f32.mrf.mxu0  ;;  %4279 = vmatprep.mubr.msk.f32.mxu0 %vm2418_vm15, %v5468_v49  ;;  %v2964_v24 = vpop.permute.xlu0 %2963  ;;  %v6643_v43 = vsel %vm2999_vm11, 1.0, %v7924_v38  ;;  %5201 = vpow2.f32 %v1360_v54  ;;  %vm2984_vm12 = vcmp.eq.s32.totalorder %v2916_v39, %v6199_v62  ;;  %v7974_v54 = vpack.i.bf16 %v6504_v34, %v6509_v59 }
 0x21e   : > { %7969 = vst [vmem:[#allocation19_spill] sm:$0xff] %v6601_v45  ;;  %v6618_v17 = vadd.f32 %v6207_v0, %v1165_v18  ;;  %v1323_v18 = vsub.f32 0.0, %v1291_v42  ;;  %v1293_v61 = vand.u32 2147483647, %v6601_v45  ;;  %v6652_v28 = vpop.eup %5189  ;;  %vm3000_vm13 = vcmp.eq.s32.totalorder %v2964_v24, %v6199_v62 }
 0x21f   : > { %v4745_v9 = vpop.f32.mrf.mxu0  ;;  %v6663_v51 = vpop.eup %5191  ;;  %v6676_v48 = vsel %vm2984_vm12, 1.0, %v7924_v38  ;;  %v1404_v34 = vadd.f32 1.0, %v6560_v41 }
 0x220   : > { %5080 = vxpose.xlu0.b32.cont [7/16] %v5079_v33, 128  ;;  %4280 = vmatmul.mubr.msk.f32.gmra.mxu0 %vm2417_vm14, %v5468_v49  ;;  %v6630_v8 = vadd.f32 %v4745_v9, %v6207_v0  ;;  %v1366_v33 = vmul.f32 1.442695, %v1321_v12  ;;  %v1322_v9 = vsub.f32 0.0, %v1290_v4  ;;  %v2919_v12 = vpop.permute.xlu1 %2918  ;;  %v1292_v23 = vand.u32 2147483647, %v6618_v17 }
 0x221   : > { %v1175_v25 = vpop.f32.mrf.mxu0  ;;  %4281 = vmatprep.mubr.msk.f32.mxu0 %vm2420_vm3, %v5468_v49  ;;  %v1370_v42 = vmul.f32 1.442695, %v1323_v18  ;;  %v2967_v5 = vpop.permute.xlu0 %2966  ;;  %vm2985_vm15 = vcmp.eq.s32.totalorder %v2919_v12, %v6199_v62 }
 0x222   : > { %7970 = vst [vmem:[#allocation20_spill] sm:$0xff] %v6630_v8  ;;  %v6657_v20 = vadd.f32 %v6207_v0, %v1175_v25  ;;  %v1295_v52 = vand.u32 2147483647, %v6630_v8  ;;  %5203 = vpow2.f32 %v1366_v33  ;;  %v1325_v25 = vsub.f32 0.0, %v1293_v61  ;;  %v6693_v33 = vpop.eup %5193 }
 0x223   : > { %v4748_v44 = vpop.f32.mrf.mxu0  ;;  %5205 = vpow2.f32 %v1364_v37  ;;  %v1368_v3 = vmul.f32 1.442695, %v1322_v9  ;;  %v1324_v37 = vsub.f32 0.0, %v1292_v23  ;;  %vm3001_vm0 = vcmp.eq.s32.totalorder %v2967_v5, %v6199_v62 }
 0x224   : > { %5082 = vxpose.xlu0.b32.cont [8/16] %v5081_v32, 128  ;;  %4282 = vmatmul.mubr.msk.f32.gmra.mxu0 %vm2419_vm4, %v5468_v49  ;;  %v6669_v32 = vadd.f32 %v4748_v44, %v6207_v0  ;;  %v1294_v24 = vand.u32 2147483647, %v6657_v20  ;;  %v6687_v44 = vsel %vm3000_vm13, 1.0, %v7924_v38  ;;  %v1327_v18 = vsub.f32 0.0, %v1295_v52  ;;  %v2970_v13 = vpop.permute.xlu1 %2969 }
 0x225   : > { %v1185_v4 = vpop.f32.mrf.mxu0  ;;  %4283 = vmatprep.mubr.msk.f32.mxu0 %vm2422_vm7, %v5468_v49  ;;  %5207 = vpow2.f32 %v1370_v42  ;;  %v1374_v9 = vmul.f32 1.442695, %v1325_v25  ;;  %v6709_v52 = vsel %vm2985_vm15, 1.0, %v7924_v38  ;;  %v1372_v47 = vmul.f32 1.442695, %v1324_v37 }
 0x226   : > { %7971 = vst [vmem:[#allocation21_spill] sm:$0xff] %v6669_v32  ;;  %v6691_v39 = vadd.f32 %v6207_v0, %v1185_v4  ;;  %v1297_v10 = vand.u32 2147483647, %v6669_v32  ;;  %5209 = vpow2.f32 %v1368_v3  ;;  %v6719_v3 = vsel %vm3001_vm0, 1.0, %v7924_v38 }
 0x227   : > { %v4751_v40 = vpop.f32.mrf.mxu0  ;;  %v1378_v4 = vmul.f32 1.442695, %v1327_v18  ;;  %5211 = vpow2.f32 %v1374_v9  ;;  %vm3002_vm1 = vcmp.eq.s32.totalorder %v2970_v13, %v6199_v62  ;;  %v1422_v13 = vadd.f32 1.0, %v6603_v26 }
 0x228   : > { %5084 = vxpose.xlu0.b32.cont [9/16] %v5083_v19, 128  ;;  %4284 = vmatmul.mubr.msk.f32.gmra.mxu0 %vm2421_vm9, %v5468_v49  ;;  %7972 = vst [vmem:[#allocation22_spill] sm:$0xff] %v6691_v39  ;;  %v6698_v35 = vadd.f32 %v4751_v40, %v6207_v0  ;;  %v6700_v49 = vpop.eup %5195  ;;  %v1326_v40 = vsub.f32 0.0, %v1294_v24  ;;  %v1296_v25 = vand.u32 2147483647, %v6691_v39  ;;  %v1329_v24 = vsub.f32 0.0, %v1297_v10  ;;  %v2922_v18 = vpop.permute.xlu1 %2921 }
 0x229   : > { %v1195_v61 = vpop.f32.mrf.mxu0  ;;  %v6714_v42 = vpop.eup %5197  ;;  %5213 = vlog2.f32 %v1404_v34  ;;  %vm2986_vm14 = vcmp.eq.s32.totalorder %v2922_v18, %v6199_v62  ;;  %v7982_v62 = vpack.i.bf16 %v6638_v50, %v6643_v43 }
 0x22a   : > { %7973 = vst [vmem:[#allocation23_spill] sm:$0xff] %v6698_v35  ;;  %v6723_v19 = vadd.f32 %v6207_v0, %v1195_v61  ;;  %v1299_v45 = vand.u32 2147483647, %v6698_v35  ;;  %v6727_v59 = vpop.eup %5199  ;;  %v1376_v38 = vmul.f32 1.442695, %v1326_v40  ;;  %5215 = vpow2.f32 %v1372_v47 }
 0x22b   : > { %v4754_v23 = vpop.f32.mrf.mxu0  ;;  %v1328_v9 = vsub.f32 0.0, %v1296_v25  ;;  %5217 = vpow2.f32 %v1378_v4  ;;  %v1382_v61 = vmul.f32 1.442695, %v1329_v24  ;;  %v1407_v25 = vmul.f32 -0.5, %v6560_v41 }
 0x22c   : > { %5086 = vxpose.xlu0.b32.cont [10/16] %v7974_v54, 128  ;;  %7975 = vst [vmem:[#allocation24_spill] sm:$0xff] %v6723_v19  ;;  %v6732_v37 = vadd.f32 %v4754_v23, %v6207_v0  ;;  %v1298_v5 = vand.u32 2147483647, %v6723_v19  ;;  %v1413_v23 = vadd.f32 1.0, %v6529_v15  ;;  %v6742_v54 = vpop.eup %5201  ;;  %v1331_v8 = vsub.f32 0.0, %v1299_v45 }
 0x22d   : > { %v1205_v12 = vpop.f32.mrf.mxu0  ;;  %v7979_v24 = vpack.i.bf16 %v6590_v1, %v6597_v16  ;;  %v1416_v16 = vmul.f32 -0.5, %v6529_v15 }
 0x22e   : > { %7976 = vst [vmem:[#allocation25_spill] sm:$0xff] %v6732_v37  ;;  %v1301_v57 = vand.u32 2147483647, %v6732_v37  ;;  %5219 = vlog2.f32 %v1413_v23  ;;  %v1380_v23 = vmul.f32 1.442695, %v1328_v9  ;;  %v1330_v40 = vsub.f32 0.0, %v1298_v5 }
 0x22f   : > { %v4757_v10 = vpop.f32.mrf.mxu0  ;;  %v6748_v11 = vpop.eup %5203  ;;  %5221 = vpow2.f32 %v1376_v38  ;;  %v6763_v38 = vadd.f32 %v6207_v0, %v1205_v12  ;;  %v1386_v4 = vmul.f32 1.442695, %v1331_v8  ;;  %v1408_v5 = vadd.f32 1.0, %v1407_v25 }
 0x230   : > { %5088 = vxpose.xlu0.b32.cont [11/16] %v7977_v36, 128  ;;  %v7978_v36 = vmov 0.0   ;;  %v6760_v34 = vpop.eup %5205  ;;  %5223 = vpow2.f32 %v1382_v61  ;;  %v1333_v1 = vsub.f32 0.0, %v1301_v57  ;;  %v6774_v9 = vadd.f32 %v4757_v10, %v6207_v0 }
 0x231   : > { %v6753_v47 = vsel %vm3002_vm1, 1.0, %v7978_v36  ;;  %v1215_v45 = vpop.f32.mrf.mxu0  ;;  %7980 = vst [vmem:[#allocation26_spill] sm:$0xff] %v6763_v38  ;;  %v6770_v39 = vsel %vm2986_vm14, 1.0, %v7978_v36  ;;  %5225 = vlog2.f32 %v1422_v13  ;;  %v1410_v61 = vand.u32 2147483647, %v6560_v41 }
 0x232   : > { %7981 = vst [vmem:[#allocation27_spill] sm:$0xff] %v6774_v9  ;;  %v6776_v12 = vpop.eup %5207  ;;  %v1431_v8 = vadd.f32 1.0, %v6582_v46  ;;  %5227 = vpow2.f32 %v1380_v23  ;;  %v5097_v10 = vpack.i.bf16 %v6770_v39, %v6753_v47  ;;  %v1384_v57 = vmul.f32 1.442695, %v1330_v40 }
 0x233   : > { %v4760_v32 = vpop.f32.mrf.mxu0  ;;  %v6784_v18 = vpop.eup %5209  ;;  %v1300_v36 = vand.u32 2147483647, %v6763_v38  ;;  %v1419_v13 = vand.u32 2147483647, %v6529_v15  ;;  %v6792_v35 = vadd.f32 %v6207_v0, %v1215_v45  ;;  %v1390_v43 = vmul.f32 1.442695, %v1333_v1 }
 0x234   : > { %5090 = vxpose.xlu0.b32.cont [12/16] %v7979_v24, 128  ;;  %v1425_v24 = vmul.f32 -0.5, %v6603_v26  ;;  %5229 = vlog2.f32 %v1431_v8  ;;  %v1417_v50 = vadd.f32 1.0, %v1416_v16  ;;  %v6795_v23 = vpop.eup %5211  ;;  %v1409_v39 = vmul.f32 %v6560_v41, %v1408_v5 }
 0x235   : > { %7983 = vst [vmem:[#allocation28_spill] sm:$0xff] %v6792_v35  ;;  %5231 = vpow2.f32 %v1386_v4  ;;  %vm6798_vm2 = vcmp.lt.f32.partialorder %v1410_v61, 0.0004427343  ;;  %v1440_v25 = vadd.f32 1.0, %v6652_v28  ;;  %v1225_v8 = vpop.f32.mrf.mxu0  ;;  %v7986_v45 = vpack.i.bf16 %v6676_v48, %v6687_v44 }
 0x236   : > { %v1426_v47 = vadd.f32 1.0, %v1425_v24  ;;  %v5214_v4 = vpop.eup %5213  ;;  %5233 = vpow2.f32 %v1384_v57  ;;  %v1332_v1 = vsub.f32 0.0, %v1300_v36  ;;  %v1428_v16 = vand.u32 2147483647, %v6603_v26 }
 0x237   : > { %v6810_v41 = vpop.eup %5215  ;;  %v1406_v5 = vmul.f32 0.6931472, %v5214_v4  ;;  %v1434_v61 = vmul.f32 -0.5, %v6582_v46  ;;  %v1302_v24 = vand.u32 2147483647, %v6792_v35  ;;  %5235 = vlog2.f32 %v1440_v25  ;;  %v4763_v35 = vpop.f32.mrf.mxu0 }
 0x238   : > { %5092 = vxpose.xlu0.b32.cont [13/16] %v7982_v62, 128  ;;  %v1303_v62 = vand.u32 2147483647, %v6774_v9  ;;  %v6808_v9 = vadd.f32 %v4760_v32, %v6207_v0  ;;  %v6814_v19 = vpop.eup %5217  ;;  %5237 = vpow2.f32 %v1390_v43  ;;  %v1418_v48 = vmul.f32 %v6529_v15, %v1417_v50 }
 0x239   : > { %vm6817_vm3 = vcmp.lt.f32.partialorder %v1419_v13, 0.0004427343  ;;  %v1412_v36 = vsel %vm6798_vm2, %v1409_v39, %v1406_v5  ;;  %v1437_v4 = vand.u32 2147483647, %v6582_v46  ;;  %v1449_v25 = vadd.f32 1.0, %v6624_v7 }
 0x23a   : > { %v1335_v57 = vsub.f32 0.0, %v1303_v62  ;;  %v7989_v43 = vpack.i.bf16 %v6709_v52, %v6719_v3  ;;  %v7990_v13 = vmax.f32 %v6233_v6, 0.0  ;;  %v1388_v38 = vmul.f32 1.442695, %v1332_v1 }
 0x23b   : > { %v5220_v32 = vpop.eup %5219  ;;  %v1305_v39 = vand.u32 2147483647, %v6808_v9  ;;  %vm6834_vm5 = vcmp.lt.f32.partialorder %v1428_v16, 0.0004427343  ;;  %v1435_v40 = vadd.f32 1.0, %v1434_v61  ;;  %v1443_v5 = vmul.f32 -0.5, %v6652_v28 }
 0x23c   : > { %5094 = vxpose.xlu0.b32.cont [14/16] %v7986_v45, 128  ;;  %v1427_v45 = vmul.f32 %v6603_v26, %v1426_v47  ;;  %v6829_v15 = vpop.eup %5221  ;;  %v1692_v50 = vadd.f32 %v1412_v36, %v7990_v13  ;;  %v1415_v62 = vmul.f32 0.6931472, %v5220_v32  ;;  %v1334_v47 = vsub.f32 0.0, %v1302_v24  ;;  %v1235_v26 = vpop.f32.mrf.mxu0 }
 0x23d   : > { %v6839_v37 = vpop.eup %5223  ;;  %v6844_v6 = vadd.f32 %v6207_v0, %v1225_v8  ;;  %v6847_v1 = vadd.f32 %v4763_v35, %v6207_v0  ;;  %v7993_v32 = vmax.f32 %v6214_v2, 0.0  ;;  %v1394_v61 = vmul.f32 1.442695, %v1335_v57 }
 0x23e   : > { %v4124_v52 = vadd.f32 -0.6931472, %v1692_v50  ;;  %v1421_v3 = vsel %vm6817_vm3, %v1418_v48, %v1415_v62  ;;  %v5226_v16 = vpop.eup %5225  ;;  %vm6851_vm4 = vcmp.lt.f32.partialorder %v1437_v4, 0.0004427343  ;;  %5239 = vlog2.f32 %v1449_v25 }
 0x23f   : > { %v1693_v36 = vadd.f32 %v1421_v3, %v7993_v32  ;;  %5241 = vpow2.f32 %v1388_v38  ;;  %v1424_v48 = vmul.f32 0.6931472, %v5226_v16  ;;  %v1337_v44 = vsub.f32 0.0, %v1305_v39 }
 0x240   : > { %5096 = vxpose.xlu0.b32.cont [15/16] %v7989_v43, 128  ;;  %4796 = vmatprep.mubr.f32.mxu1 %v4124_v52  ;;  %v1458_v8 = vadd.f32 1.0, %v6693_v33  ;;  %v6856_v43 = vpop.eup %5227  ;;  %v1392_v13 = vmul.f32 1.442695, %v1334_v47  ;;  %v1444_v50 = vadd.f32 1.0, %v1443_v5  ;;  %v1467_v2 = vadd.f32 1.0, %v6663_v51 }
 0x241   : > { %v4125_v35 = vadd.f32 -0.6931472, %v1693_v36  ;;  %v5230_v57 = vpop.eup %5229  ;;  %v1430_v4 = vsel %vm6834_vm5, %v1427_v45, %v1424_v48  ;;  %v1304_v25 = vand.u32 2147483647, %v6844_v6  ;;  %v7996_v62 = vmax.f32 %v6294_v22, 0.0 }
 0x242   : > { %5243 = vlog2.f32 %v1458_v8  ;;  %v6863_v38 = vpop.eup %5231  ;;  %v1433_v47 = vmul.f32 0.6931472, %v5230_v57  ;;  %v1436_v5 = vmul.f32 %v6582_v46, %v1435_v40  ;;  %v1398_v52 = vmul.f32 1.442695, %v1337_v44 }
 0x243   : > { %4797 = vmatmul.mubr.f32.vlgmr.msra.gmra.mxu1 %v4125_v35  ;;  %5245 = vpow2.f32 %v1394_v61  ;;  %v1694_v39 = vadd.f32 %v1430_v4, %v7996_v62  ;;  %v1446_v3 = vand.u32 2147483647, %v6652_v28  ;;  %v1452_v45 = vmul.f32 -0.5, %v6624_v7  ;;  %v6870_v16 = vpop.eup %5233 }
 0x244   : > { %5098 = vxpose.xlu0.b32.end [16/16] %v5097_v10, 128  ;;  %v1307_v10 = vand.u32 2147483647, %v6847_v1  ;;  %5247 = vlog2.f32 %v1467_v2  ;;  %v1439_v36 = vsel %vm6851_vm4, %v1436_v5, %v1433_v47  ;;  %v1445_v22 = vmul.f32 %v6652_v28, %v1444_v50  ;;  %v5236_v61 = vpop.eup %5235 }
 0x245   : > { %v4126_v32 = vadd.f32 -0.6931472, %v1694_v39  ;;  %5249 = vpow2.f32 %v1392_v13  ;;  %v7997_v48 = vmax.f32 %v6263_v14, 0.0  ;;  %v1336_v40 = vsub.f32 0.0, %v1304_v25  ;;  %v6878_v35 = vpop.eup %5237 }
 0x246   : > { %v1339_v44 = vsub.f32 0.0, %v1307_v10  ;;  %v1461_v8 = vmul.f32 -0.5, %v6693_v33  ;;  %v1442_v2 = vmul.f32 0.6931472, %v5236_v61  ;;  %v1470_v57 = vmul.f32 -0.5, %v6663_v51 }
 0x247   : > { %v1695_v46 = vadd.f32 %v1439_v36, %v7997_v48  ;;  %4799 = vmatprep.mubr.f32.mxu1 %v4126_v32  ;;  %v6882_v24 = vadd.f32 %v6207_v0, %v1235_v26  ;;  %v1476_v13 = vadd.f32 1.0, %v6714_v42  ;;  %5251 = vpow2.f32 %v1398_v52 }
 0x248   : > { %vm1447_vm6 = vcmp.lt.f32.partialorder %v1446_v3, 0.0004427343  ;;  %v1455_v14 = vand.u32 2147483647, %v6624_v7  ;;  %v1453_v4 = vadd.f32 1.0, %v1452_v45  ;;  %v7998_v10 = vmax.f32 %v6353_v55, 0.0 }
 0x249   : > { %v4127_v28 = vadd.f32 -0.6931472, %v1695_v46  ;;  %v1448_v50 = vsel %vm1447_vm6, %v1445_v22, %v1442_v2  ;;  %v1464_v25 = vand.u32 2147483647, %v6693_v33  ;;  %5253 = vlog2.f32 %v1476_v13 }
 0x24a   : > { %v1696_v62 = vadd.f32 %v1448_v50, %v7998_v10  ;;  %v1396_v39 = vmul.f32 1.442695, %v1336_v40  ;;  %v1462_v47 = vadd.f32 1.0, %v1461_v8  ;;  %v1485_v0 = vadd.f32 1.0, %v6700_v49 }
 0x24b   : > { %4800 = vmatmul.mubr.f32.gmra.mxu1 %v4127_v28  ;;  %v1402_v5 = vmul.f32 1.442695, %v1339_v44  ;;  %v1471_v26 = vadd.f32 1.0, %v1470_v57  ;;  %v1306_v52 = vand.u32 2147483647, %v6882_v24  ;;  %v1494_v3 = vadd.f32 1.0, %v6742_v54  ;;  %v5240_v32 = vpop.eup %5239 }
 0x24c   : > { %v4128_v36 = vadd.f32 -0.6931472, %v1696_v62  ;;  %vm6892_vm7 = vcmp.lt.f32.partialorder %v1455_v14, 0.0004427343  ;;  %v1473_v22 = vand.u32 2147483647, %v6663_v51  ;;  %5255 = vlog2.f32 %v1485_v0  ;;  %v6897_v55 = vpop.eup %5241 }
 0x24d   : > { %v1451_v61 = vmul.f32 0.6931472, %v5240_v32  ;;  %v1454_v48 = vmul.f32 %v6624_v7, %v1453_v4  ;;  %v1479_v46 = vmul.f32 -0.5, %v6714_v42  ;;  %5257 = vlog2.f32 %v1494_v3 }
 0x24e   : > { %4802 = vmatprep.mubr.f32.mxu1 %v4128_v36  ;;  %5259 = vpow2.f32 %v1396_v39  ;;  %v1463_v40 = vmul.f32 %v6693_v33, %v1462_v47  ;;  %vm6902_vm8 = vcmp.lt.f32.partialorder %v1464_v25, 0.0004427343  ;;  %v1503_v8 = vadd.f32 1.0, %v6727_v59 }
 0x24f   : > { %v5244_v2 = vpop.eup %5243  ;;  %v1457_v57 = vsel %vm6892_vm7, %v1454_v48, %v1451_v61  ;;  %5261 = vpow2.f32 %v1402_v5  ;;  %v1472_v7 = vmul.f32 %v6663_v51, %v1471_v26  ;;  %v1338_v13 = vsub.f32 0.0, %v1306_v52 }
 0x250   : > { %v6910_v28 = vpop.eup %5245  ;;  %v8003_v14 = vmax.f32 %v6312_v31, 0.0  ;;  %v1460_v33 = vmul.f32 0.6931472, %v5244_v2  ;;  %vm6914_vm9 = vcmp.lt.f32.partialorder %v1473_v22, 0.0004427343  ;;  %v1488_v25 = vmul.f32 -0.5, %v6700_v49 }
 0x251   : > { %v5248_v10 = vpop.eup %5247  ;;  %v1480_v62 = vadd.f32 1.0, %v1479_v46  ;;  %v1482_v39 = vand.u32 2147483647, %v6714_v42  ;;  %5263 = vlog2.f32 %v1503_v8  ;;  %v1512_v51 = vadd.f32 1.0, %v6760_v34 }
 0x252   : > { %v1697_v50 = vadd.f32 %v1457_v57, %v8003_v14  ;;  %v6921_v47 = vpop.eup %5249  ;;  %v1466_v31 = vsel %vm6902_vm8, %v1463_v40, %v1460_v33  ;;  %v1469_v5 = vmul.f32 0.6931472, %v5248_v10  ;;  %v1497_v26 = vmul.f32 -0.5, %v6742_v54 }
 0x253   : > { %v8006_v52 = vmax.f32 %v6403_v21, 0.0  ;;  %v1400_v32 = vmul.f32 1.442695, %v1338_v13  ;;  %v1506_v36 = vmul.f32 -0.5, %v6727_v59  ;;  %5265 = vlog2.f32 %v1512_v51 }
 0x254   : > { %v4129_v0 = vadd.f32 -0.6931472, %v1697_v50  ;;  %v1475_v45 = vsel %vm6914_vm9, %v1472_v7, %v1469_v5  ;;  %v1489_v22 = vadd.f32 1.0, %v1488_v25  ;;  %v1491_v61 = vand.u32 2147483647, %v6700_v49  ;;  %v6933_v46 = vpop.eup %5251 }
 0x255   : > { %v1698_v3 = vadd.f32 %v1466_v31, %v8006_v52  ;;  %v1521_v48 = vadd.f32 1.0, %v6748_v11  ;;  %v8007_v44 = vmax.f32 %v6365_v60, 0.0  ;;  %v1481_v8 = vmul.f32 %v6714_v42, %v1480_v62 }
 0x256   : > { %4803 = vmatmul.mubr.f32.gmra.mxu1 %v4129_v0  ;;  %v1500_v2 = vand.u32 2147483647, %v6742_v54  ;;  %v5254_v57 = vpop.eup %5253  ;;  %vm6939_vm10 = vcmp.lt.f32.partialorder %v1482_v39, 0.0004427343  ;;  %v1498_v7 = vadd.f32 1.0, %v1497_v26  ;;  %v1530_v14 = vadd.f32 1.0, %v6784_v18 }
 0x257   : > { %v4130_v40 = vadd.f32 -0.6931472, %v1698_v3  ;;  %v1699_v21 = vadd.f32 %v1475_v45, %v8007_v44  ;;  %5267 = vlog2.f32 %v1521_v48  ;;  %v1478_v33 = vmul.f32 0.6931472, %v5254_v57 }
 0x258   : > { %5269 = vpow2.f32 %v1400_v32  ;;  %v1507_v4 = vadd.f32 1.0, %v1506_v36  ;;  %v1490_v60 = vmul.f32 %v6700_v49, %v1489_v22  ;;  %vm6945_vm11 = vcmp.lt.f32.partialorder %v1491_v61, 0.0004427343 }
 0x259   : > { %4805 = vmatprep.mubr.f32.mxu1 %v4130_v40  ;;  %v4131_v50 = vadd.f32 -0.6931472, %v1699_v21  ;;  %v1515_v25 = vmul.f32 -0.5, %v6760_v34  ;;  %5271 = vlog2.f32 %v1530_v14  ;;  %v5256_v10 = vpop.eup %5255  ;;  %v1484_v62 = vsel %vm6939_vm10, %v1481_v8, %v1478_v33 }
 0x25a   : > { %vm6952_vm12 = vcmp.lt.f32.partialorder %v1500_v2, 0.0004427343  ;;  %v1509_v51 = vand.u32 2147483647, %v6727_v59  ;;  %v1539_v49 = vadd.f32 1.0, %v6776_v12  ;;  %v5258_v0 = vpop.eup %5257  ;;  %v8014_v31 = vmax.f32 %v6433_v58, 0.0 }
 0x25b   : > { %4806 = vmatmul.mubr.f32.gmra.mxu1 %v4131_v50  ;;  %v1487_v26 = vmul.f32 0.6931472, %v5256_v10  ;;  %v1499_v52 = vmul.f32 %v6742_v54, %v1498_v7  ;;  %v1524_v3 = vmul.f32 -0.5, %v6748_v11  ;;  %v6962_v32 = vpop.eup %5259  ;;  %v1496_v36 = vmul.f32 0.6931472, %v5258_v0 }
 0x25c   : > { %v1700_v5 = vadd.f32 %v1484_v62, %v8014_v31  ;;  %v1508_v45 = vmul.f32 %v6727_v59, %v1507_v4  ;;  %v1518_v22 = vand.u32 2147483647, %v6760_v34  ;;  %5273 = vlog2.f32 %v1539_v49  ;;  %v6966_v61 = vpop.eup %5261 }
 0x25d   : > { %v1493_v58 = vsel %vm6945_vm11, %v1490_v60, %v1487_v26  ;;  %v1516_v40 = vadd.f32 1.0, %v1515_v25  ;;  %v1548_v44 = vadd.f32 1.0, %v6810_v41  ;;  %v8015_v54 = vmax.f32 %v6414_v30, 0.0 }
 0x25e   : > { %v4132_v48 = vadd.f32 -0.6931472, %v1700_v5  ;;  %v1502_v8 = vsel %vm6952_vm12, %v1499_v52, %v1496_v36  ;;  %vm6975_vm13 = vcmp.lt.f32.partialorder %v1509_v51, 0.0004427343  ;;  %v1533_v2 = vmul.f32 -0.5, %v6784_v18  ;;  %v5264_v57 = vpop.eup %5263 }
 0x25f   : > { %v1701_v21 = vadd.f32 %v1493_v58, %v8015_v54  ;;  %v8018_v13 = vmax.f32 %v6488_v53, 0.0  ;;  %v1525_v14 = vadd.f32 1.0, %v1524_v3  ;;  %v1527_v50 = vand.u32 2147483647, %v6748_v11 }
 0x260   : > { %4808 = vmatprep.mubr.f32.mxu1 %v4132_v48  ;;  %5275 = vlog2.f32 %v1548_v44  ;;  %v1505_v33 = vmul.f32 0.6931472, %v5264_v57  ;;  %v1542_v4 = vmul.f32 -0.5, %v6776_v12  ;;  %v1557_v60 = vadd.f32 1.0, %v6795_v23  ;;  %v5266_v42 = vpop.eup %5265 }
 0x261   : > { %v1702_v7 = vadd.f32 %v1502_v8, %v8018_v13  ;;  %v4133_v30 = vadd.f32 -0.6931472, %v1701_v21  ;;  %v1517_v10 = vmul.f32 %v6760_v34, %v1516_v40  ;;  %vm6986_vm15 = vcmp.lt.f32.partialorder %v1518_v22, 0.0004427343 }
 0x262   : > { %v1566_v53 = vadd.f32 1.0, %v6829_v15  ;;  %v1511_v39 = vsel %vm6975_vm13, %v1508_v45, %v1505_v33  ;;  %v1514_v51 = vmul.f32 0.6931472, %v5266_v42  ;;  %v1534_v49 = vadd.f32 1.0, %v1533_v2 }
 0x263   : > { %v4134_v25 = vadd.f32 -0.6931472, %v1702_v7  ;;  %4809 = vmatmul.mubr.f32.gmra.mxu1 %v4133_v30  ;;  %5277 = vlog2.f32 %v1557_v60  ;;  %v8021_v0 = vmax.f32 %v6456_v29, 0.0  ;;  %v1526_v5 = vmul.f32 %v6748_v11, %v1525_v14 }
 0x264   : > { %v1536_v34 = vand.u32 2147483647, %v6784_v18  ;;  %5279 = vlog2.f32 %v1566_v53  ;;  %v5268_v26 = vpop.eup %5267  ;;  %v1520_v52 = vsel %vm6986_vm15, %v1517_v10, %v1514_v51  ;;  %v1543_v3 = vadd.f32 1.0, %v1542_v4 }
 0x265   : > { %4811 = vmatprep.mubr.f32.mxu1 %v4134_v25  ;;  %v1703_v31 = vadd.f32 %v1511_v39, %v8021_v0  ;;  %v1551_v36 = vmul.f32 -0.5, %v6810_v41  ;;  %v1575_v45 = vadd.f32 1.0, %v6814_v19  ;;  %v7001_v22 = vpop.eup %5269  ;;  %v8022_v29 = vmax.f32 %v6533_v56, 0.0 }
 0x266   : > { %v1523_v40 = vmul.f32 0.6931472, %v5268_v26  ;;  %v1560_v11 = vmul.f32 -0.5, %v6795_v23  ;;  %v5272_v44 = vpop.eup %5271  ;;  %vm1528_vm0 = vcmp.lt.f32.partialorder %v1527_v50, 0.0004427343  ;;  %v1535_v54 = vmul.f32 %v6784_v18, %v1534_v49 }
 0x267   : > { %v4135_v48 = vadd.f32 -0.6931472, %v1703_v31  ;;  %v1704_v58 = vadd.f32 %v1520_v52, %v8022_v29  ;;  %v1545_v21 = vand.u32 2147483647, %v6776_v12  ;;  %5281 = vlog2.f32 %v1575_v45 }
 0x268   : > { %v1529_v59 = vsel %vm1528_vm0, %v1526_v5, %v1523_v40  ;;  %v1532_v2 = vmul.f32 0.6931472, %v5272_v44  ;;  %v1554_v57 = vand.u32 2147483647, %v6810_v41  ;;  %v8023_v13 = vmax.f32 %v6514_v63, 0.0 }
 0x269   : > { %4812 = vmatmul.mubr.f32.gmra.mxu1 %v4135_v48  ;;  %v4136_v8 = vadd.f32 -0.6931472, %v1704_v58  ;;  %vm1537_vm1 = vcmp.lt.f32.partialorder %v1536_v34, 0.0004427343  ;;  %v1552_v7 = vadd.f32 1.0, %v1551_v36  ;;  %v1584_v14 = vadd.f32 1.0, %v6856_v43  ;;  %v5274_v50 = vpop.eup %5273 }
 0x26a   : > { %v1705_v56 = vadd.f32 %v1529_v59, %v8023_v13  ;;  %v1538_v18 = vsel %vm1537_vm1, %v1535_v54, %v1532_v2  ;;  %v1544_v33 = vmul.f32 %v6776_v12, %v1543_v3  ;;  %v1561_v4 = vadd.f32 1.0, %v1560_v11  ;;  %v8029_v34 = vld [vmem:[#allocation18_spill] sm:$0xff] }
 0x26b   : > { %4814 = vmatprep.mubr.f32.mxu1 %v4136_v8  ;;  %v1569_v60 = vmul.f32 -0.5, %v6829_v15  ;;  %v8025_v25 = vmax.f32 %v6576_v27, 0.0  ;;  %v1541_v63 = vmul.f32 0.6931472, %v5274_v50  ;;  %v1563_v62 = vand.u32 2147483647, %v6795_v23 }
 0x26c   : > { %v7012_v30 = vpop.f32.mrf.mxu0  ;;  %v4137_v42 = vadd.f32 -0.6931472, %v1705_v56  ;;  %vm1546_vm14 = vcmp.lt.f32.partialorder %v1545_v21, 0.0004427343  ;;  %vm7019_vm2 = vcmp.lt.f32.partialorder %v1554_v57, 0.0004427343  ;;  %5283 = vlog2.f32 %v1584_v14 }
 0x26d   : > { %8024 = vst [vmem:[#allocation29_spill] sm:$0xff] %v7012_v30  ;;  %v1706_v10 = vadd.f32 %v1538_v18, %v8025_v25  ;;  %v1578_v51 = vmul.f32 -0.5, %v6814_v19  ;;  %v5276_v12 = vpop.eup %5275  ;;  %v1547_v0 = vsel %vm1546_vm14, %v1544_v33, %v1541_v63  ;;  %v1553_v31 = vmul.f32 %v6810_v41, %v1552_v7 }
 0x26e   : > { %v2651_v53 = vpop.f32.mrf.mxu0  ;;  %4815 = vmatmul.mubr.f32.gmra.mxu1 %v4137_v42  ;;  %v1593_v27 = vadd.f32 1.0, %v6839_v37  ;;  %v8030_v26 = vmax.f32 %v8029_v34, 0.0  ;;  %v1550_v3 = vmul.f32 0.6931472, %v5276_v12  ;;  %v1570_v36 = vadd.f32 1.0, %v1569_v60  ;;  %v8035_v42 = vld [vmem:[#allocation19_spill] sm:$0xff] }
 0x26f   : > { %v4138_v49 = vadd.f32 -0.6931472, %v1706_v10  ;;  %v1572_v45 = vand.u32 2147483647, %v6829_v15  ;;  %v1562_v48 = vmul.f32 %v6795_v23, %v1561_v4  ;;  %vm7032_vm3 = vcmp.lt.f32.partialorder %v1563_v62, 0.0004427343 }
 0x270   : > { %v7026_v5 = vpop.f32.mrf.mxu0  ;;  %v1707_v52 = vadd.f32 %v1547_v0, %v8030_v26  ;;  %5285 = vlog2.f32 %v1593_v27  ;;  %v1602_v41 = vadd.f32 1.0, %v6870_v16  ;;  %v5278_v40 = vpop.eup %5277  ;;  %v1556_v44 = vsel %vm7019_vm2, %v1553_v31, %v1550_v3 }
 0x271   : > { %8028 = vst [vmem:[#allocation30_spill] sm:$0xff] %v7026_v5  ;;  %4817 = vmatprep.mubr.f32.mxu1 %v4138_v49  ;;  %v1579_v54 = vadd.f32 1.0, %v1578_v51  ;;  %v1581_v21 = vand.u32 2147483647, %v6814_v19  ;;  %v5280_v8 = vpop.eup %5279  ;;  %v8033_v59 = vmax.f32 %v6618_v17, 0.0  ;;  %v1587_v57 = vmul.f32 -0.5, %v6856_v43 }
 0x272   : > { %v2656_v58 = vpop.f32.mrf.mxu0  ;;  %v4139_v11 = vadd.f32 -0.6931472, %v1707_v52  ;;  %v1559_v2 = vmul.f32 0.6931472, %v5278_v40  ;;  %5287 = vlog2.f32 %v1602_v41  ;;  %v1568_v56 = vmul.f32 0.6931472, %v5280_v8 }
 0x273   : > { %v1708_v23 = vadd.f32 %v1556_v44, %v8033_v59  ;;  %v1571_v7 = vmul.f32 %v6829_v15, %v1570_v36  ;;  %vm1573_vm5 = vcmp.lt.f32.partialorder %v1572_v45, 0.0004427343  ;;  %v1611_v14 = vadd.f32 1.0, %v6863_v38  ;;  %v8041_v45 = vld [vmem:[#allocation25_spill] sm:$0xff] }
 0x274   : > { %v7043_v13 = vpop.f32.mrf.mxu0  ;;  %4818 = vmatmul.mubr.f32.gmra.mxu1 %v4139_v11  ;;  %v1565_v18 = vsel %vm7032_vm3, %v1562_v48, %v1559_v2  ;;  %v1590_v17 = vand.u32 2147483647, %v6856_v43  ;;  %v1596_v33 = vmul.f32 -0.5, %v6839_v37  ;;  %v5282_v60 = vpop.eup %5281  ;;  %v8036_v25 = vmax.f32 %v8035_v42, 0.0  ;;  %v8042_v48 = vld [vmem:[#allocation20_spill] sm:$0xff]  ;;  %v8044_v11 = vld [vmem:[#allocation26_spill] sm:$0xff] }
 0x275   : > { %8034 = vst [vmem:[#allocation18_spill] sm:$0xff] %v7043_v13  ;;  %v4140_v50 = vadd.f32 -0.6931472, %v1708_v23  ;;  %v1574_v63 = vsel %vm1573_vm5, %v1571_v7, %v1568_v56  ;;  %vm7053_vm4 = vcmp.lt.f32.partialorder %v1581_v21, 0.0004427343  ;;  %5289 = vlog2.f32 %v1611_v14  ;;  %v8048_v42 = vld [vmem:[#allocation22_spill] sm:$0xff] }
 0x276   : > { %v2661_v4 = vpop.f32.mrf.mxu0  ;;  %v1709_v10 = vadd.f32 %v1565_v18, %v8036_v25  ;;  %v8039_v15 = vmax.f32 %v6657_v20, 0.0  ;;  %v1577_v39 = vmul.f32 0.6931472, %v5282_v60  ;;  %v1580_v51 = vmul.f32 %v6814_v19, %v1579_v54 }
 0x277   : > { %4820 = vmatprep.mubr.f32.mxu1 %v4140_v50  ;;  %v1588_v12 = vadd.f32 1.0, %v1587_v57  ;;  %v1599_v31 = vand.u32 2147483647, %v6839_v37  ;;  %v1605_v27 = vmul.f32 -0.5, %v6870_v16  ;;  %v1620_v34 = vadd.f32 1.0, %v6897_v55 }
 0x278   : > { %v1710_v53 = vadd.f32 %v1574_v63, %v8039_v15  ;;  %v7060_v49 = vpop.f32.mrf.mxu0  ;;  %v4141_v0 = vadd.f32 -0.6931472, %v1709_v10  ;;  %v1583_v52 = vsel %vm7053_vm4, %v1580_v51, %v1577_v39  ;;  %v1597_v3 = vadd.f32 1.0, %v1596_v33 }
 0x279   : > { %8040 = vst [vmem:[#allocation19_spill] sm:$0xff] %v7060_v49  ;;  %v1629_v20 = vadd.f32 1.0, %v6878_v35  ;;  %v1269_v19 = vmax.f32 %v8041_v45, 0.0  ;;  %v8043_v29 = vmax.f32 %v8042_v48, 0.0  ;;  %v1614_v58 = vmul.f32 -0.5, %v6863_v38  ;;  %v5284_v40 = vpop.eup %5283 }
 0x27a   : > { %v4142_v26 = vadd.f32 -0.6931472, %v1710_v53  ;;  %v2666_v36 = vpop.f32.mrf.mxu0  ;;  %4821 = vmatmul.mubr.f32.gmra.mxu1 %v4141_v0  ;;  %5291 = vlog2.f32 %v1620_v34  ;;  %v1268_v44 = vmax.f32 %v8044_v11, 0.0  ;;  %v1608_v54 = vand.u32 2147483647, %v6870_v16  ;;  %v8053_v34 = vld [vmem:[#allocation21_spill] sm:$0xff] }
 0x27b   : > { %v1711_v41 = vadd.f32 %v1583_v52, %v8043_v29  ;;  %5293 = vlog2.f32 %v1629_v20  ;;  %v1638_v21 = vadd.f32 1.0, %v6921_v47  ;;  %v1586_v23 = vmul.f32 0.6931472, %v5284_v40 }
 0x27c   : > { %4823 = vmatprep.mubr.f32.mxu1 %v4142_v26  ;;  %v7075_v8 = vpop.f32.mrf.mxu0  ;;  %v1589_v2 = vmul.f32 %v6856_v43, %v1588_v12  ;;  %v1606_v57 = vadd.f32 1.0, %v1605_v27  ;;  %vm1591_vm6 = vcmp.lt.f32.partialorder %v1590_v17, 0.0004427343  ;;  %v1598_v56 = vmul.f32 %v6839_v37, %v1597_v3 }
 0x27d   : > { %8045 = vst [vmem:[#allocation25_spill] sm:$0xff] %v7075_v8  ;;  %v4143_v59 = vadd.f32 -0.6931472, %v1711_v41  ;;  %vm7079_vm7 = vcmp.lt.f32.partialorder %v1599_v31, 0.0004427343  ;;  %5295 = vlog2.f32 %v1638_v21  ;;  %v5286_v50 = vpop.eup %5285  ;;  %v1615_v33 = vadd.f32 1.0, %v1614_v58 }
 0x27e   : > { %v2671_v14 = vpop.f32.mrf.mxu0  ;;  %v1592_v18 = vsel %vm1591_vm6, %v1589_v2, %v1586_v23  ;;  %v1623_v4 = vmul.f32 -0.5, %v6897_v55  ;;  %v1647_v60 = vadd.f32 1.0, %v6910_v28  ;;  %v8049_v43 = vmax.f32 %v8048_v42, 0.0 }
 0x27f   : > { %4824 = vmatmul.mubr.f32.gmra.mxu1 %v4143_v59  ;;  %v1595_v17 = vmul.f32 0.6931472, %v5286_v50  ;;  %vm7087_vm8 = vcmp.lt.f32.partialorder %v1608_v54, 0.0004427343  ;;  %v1617_v10 = vand.u32 2147483647, %v6863_v38  ;;  %v5288_v62 = vpop.eup %5287  ;;  %v1607_v15 = vmul.f32 %v6870_v16, %v1606_v57 }
 0x280   : > { %v1712_v25 = vadd.f32 %v1592_v18, %v8049_v43  ;;  %v7092_v63 = vpop.f32.mrf.mxu0  ;;  %v1626_v53 = vand.u32 2147483647, %v6897_v55  ;;  %v1632_v39 = vmul.f32 -0.5, %v6878_v35  ;;  %5297 = vlog2.f32 %v1647_v60  ;;  %v8056_v54 = vld [vmem:[#allocation24_spill] sm:$0xff] }
 0x281   : > { %8052 = vst [vmem:[#allocation20_spill] sm:$0xff] %v7092_v63  ;;  %v1601_v12 = vsel %vm7079_vm7, %v1598_v56, %v1595_v17  ;;  %v1604_v0 = vmul.f32 0.6931472, %v5288_v62  ;;  %v1656_v31 = vadd.f32 1.0, %v6962_v32  ;;  %v8054_v26 = vmax.f32 %v8053_v34, 0.0 }
 0x282   : > { %v4144_v51 = vadd.f32 -0.6931472, %v1712_v25  ;;  %v2676_v27 = vpop.f32.mrf.mxu0  ;;  %v1616_v3 = vmul.f32 %v6863_v38, %v1615_v33  ;;  %v1624_v20 = vadd.f32 1.0, %v1623_v4  ;;  %v1641_v16 = vmul.f32 -0.5, %v6921_v47  ;;  %v5290_v36 = vpop.eup %5289  ;;  %v8060_v4 = vld [vmem:[#allocation23_spill] sm:$0xff] }
 0x283   : > { %v1713_v52 = vadd.f32 %v1601_v12, %v8054_v26  ;;  %v1610_v48 = vsel %vm7087_vm8, %v1607_v15, %v1604_v0  ;;  %v1635_v29 = vand.u32 2147483647, %v6878_v35  ;;  %5299 = vlog2.f32 %v1656_v31 }
 0x284   : > { %4826 = vmatprep.mubr.f32.mxu1 %v4144_v51  ;;  %v1665_v41 = vadd.f32 1.0, %v6933_v46  ;;  %v7108_v58 = vpop.f32.mrf.mxu0  ;;  %v8057_v21 = vmax.f32 %v8056_v54, 0.0  ;;  %v1613_v38 = vmul.f32 0.6931472, %v5290_v36  ;;  %v1650_v23 = vmul.f32 -0.5, %v6910_v28  ;;  %v8066_v36 = vld [vmem:[#allocation28_spill] sm:$0xff] }
 0x285   : > { %8055 = vst [vmem:[#allocation26_spill] sm:$0xff] %v7108_v58  ;;  %v4145_v40 = vadd.f32 -0.6931472, %v1713_v52  ;;  %vm1618_vm9 = vcmp.lt.f32.partialorder %v1617_v10, 0.0004427343  ;;  %v1633_v57 = vadd.f32 1.0, %v1632_v39  ;;  %v1625_v43 = vmul.f32 %v6897_v55, %v1624_v20 }
 0x286   : > { %v1714_v59 = vadd.f32 %v1610_v48, %v8057_v21  ;;  %vm7113_vm10 = vcmp.lt.f32.partialorder %v1626_v53, 0.0004427343  ;;  %5301 = vlog2.f32 %v1665_v41  ;;  %v2681_v56 = vpop.f32.mrf.mxu0  ;;  %v1619_v14 = vsel %vm1618_vm9, %v1616_v3, %v1613_v38 }
 0x287   : > { %4827 = vmatmul.mubr.f32.gmra.mxu1 %v4145_v40  ;;  %v1642_v50 = vadd.f32 1.0, %v1641_v16  ;;  %v1674_v18 = vadd.f32 1.0, %v7001_v22  ;;  %v5292_v33 = vpop.eup %5291  ;;  %v8061_v60 = vmax.f32 %v8060_v4, 0.0  ;;  %vm7121_vm11 = vcmp.lt.f32.partialorder %v1635_v29, 0.0004427343 }
 0x288   : > { %v4146_v7 = vadd.f32 -0.6931472, %v1714_v59  ;;  %v1644_v17 = vand.u32 2147483647, %v6921_v47  ;;  %v7126_v37 = vpop.f32.mrf.mxu0  ;;  %v5294_v10 = vpop.eup %5293  ;;  %v1622_v62 = vmul.f32 0.6931472, %v5292_v33  ;;  %v1634_v12 = vmul.f32 %v6878_v35, %v1633_v57 }
 0x289   : > { %v1715_v42 = vadd.f32 %v1619_v14, %v8061_v60  ;;  %8064 = vst [vmem:[#allocation22_spill] sm:$0xff] %v7126_v37  ;;  %v1651_v15 = vadd.f32 1.0, %v1650_v23  ;;  %5303 = vlog2.f32 %v1674_v18  ;;  %v1683_v53 = vadd.f32 1.0, %v6966_v61  ;;  %v8067_v57 = vld [vmem:[#allocation27_spill] sm:$0xff] }
 0x28a   : > { %4829 = vmatprep.mubr.f32.mxu1 %v4146_v7  ;;  %v1631_v51 = vmul.f32 0.6931472, %v5294_v10  ;;  %v1659_v55 = vmul.f32 -0.5, %v6962_v32  ;;  %v2686_v0 = vpop.f32.mrf.mxu0  ;;  %v5296_v31 = vpop.eup %5295  ;;  %v1628_v27 = vsel %vm7113_vm10, %v1625_v43, %v1622_v62  ;;  %v1643_v34 = vmul.f32 %v6921_v47, %v1642_v50 }
 0x28b   : > { %v4147_v39 = vadd.f32 -0.6931472, %v1715_v42  ;;  %v1653_v26 = vand.u32 2147483647, %v6910_v28  ;;  %5305 = vlog2.f32 %v1683_v53  ;;  %v1716_v52 = vadd.f32 %v1628_v27, %v1268_v44 }
 0x28c   : > { %v1637_v3 = vsel %vm7121_vm11, %v1634_v12, %v1631_v51  ;;  %v1640_v35 = vmul.f32 0.6931472, %v5296_v31  ;;  %v1668_v20 = vmul.f32 -0.5, %v6933_v46  ;;  %v7140_v16 = vpop.f32.mrf.mxu0  ;;  %v1270_v48 = vmax.f32 %v8066_v36, 0.0 }
 0x28d   : > { %4830 = vmatmul.mubr.f32.gmra.mxu1 %v4147_v39  ;;  %8065 = vst [vmem:[#allocation21_spill] sm:$0xff] %v7140_v16  ;;  %v1717_v47 = vadd.f32 %v1637_v3, %v1269_v19  ;;  %vm1645_vm12 = vcmp.lt.f32.partialorder %v1644_v17, 0.0004427343  ;;  %v1652_v29 = vmul.f32 %v6910_v28, %v1651_v15  ;;  %v5298_v41 = vpop.eup %5297  ;;  %v4148_v40 = vadd.f32 -0.6931472, %v1716_v52 }
 0x28e   : > { %v1646_v11 = vsel %vm1645_vm12, %v1643_v34, %v1640_v35  ;;  %v1660_v44 = vadd.f32 1.0, %v1659_v55  ;;  %v1662_v54 = vand.u32 2147483647, %v6962_v32  ;;  %v2691_v21 = vpop.f32.mrf.mxu0  ;;  %v1649_v23 = vmul.f32 0.6931472, %v5298_v41 }
 0x28f   : > { %v4149_v59 = vadd.f32 -0.6931472, %v1717_v47  ;;  %v1718_v38 = vadd.f32 %v1646_v11, %v1270_v48  ;;  %v1677_v2 = vmul.f32 -0.5, %v7001_v22  ;;  %v1271_v56 = vmax.f32 %v8067_v57, 0.0  ;;  %4832 = vmatprep.mubr.f32.mxu1 %v4148_v40 }
 0x290   : > { %vm1654_vm13 = vcmp.lt.f32.partialorder %v1653_v26, 0.0004427343  ;;  %v1669_v45 = vadd.f32 1.0, %v1668_v20  ;;  %v7149_v19 = vpop.f32.mrf.mxu0  ;;  %v5300_v28 = vpop.eup %5299  ;;  %v1671_v50 = vand.u32 2147483647, %v6933_v46  ;;  %v1686_v18 = vmul.f32 -0.5, %v6966_v61 }
 0x291   : > { %8068 = vst [vmem:[#allocation24_spill] sm:$0xff] %v7149_v19  ;;  %4833 = vmatmul.mubr.f32.gmra.mxu1 %v4149_v59  ;;  %v4150_v7 = vadd.f32 -0.6931472, %v1718_v38  ;;  %v1655_v14 = vsel %vm1654_vm13, %v1652_v29, %v1649_v23  ;;  %v1658_v4 = vmul.f32 0.6931472, %v5300_v28  ;;  %v1661_v60 = vmul.f32 %v6962_v32, %v1660_v44  ;;  %v7171_v38 = vpop.permute.xlu0 %2193 }
 0x292   : > { %v1719_v33 = vadd.f32 %v1655_v14, %v1271_v56  ;;  %v2696_v42 = vpop.f32.mrf.mxu0  ;;  %v1272_v25 = vmax.f32 %v6844_v6, 0.0  ;;  %vm1663_vm15 = vcmp.lt.f32.partialorder %v1662_v54, 0.0004427343  ;;  %v1678_v17 = vadd.f32 1.0, %v1677_v2 }
 0x293   : > { %v5302_v43 = vpop.eup %5301  ;;  %4835 = vmatprep.mubr.f32.mxu1 %v4150_v7  ;;  %v1680_v10 = vand.u32 2147483647, %v7001_v22  ;;  %v1664_v15 = vsel %vm1663_vm15, %v1661_v60, %v1658_v4  ;;  %v1670_v39 = vmul.f32 %v6933_v46, %v1669_v45  ;;  %v1273_v12 = vmax.f32 %v6808_v9, 0.0 }
 0x294   : > { %v4151_v62 = vadd.f32 -0.6931472, %v1719_v33  ;;  %v1667_v53 = vmul.f32 0.6931472, %v5302_v43  ;;  %v7157_v51 = vpop.f32.mrf.mxu0  ;;  %v1720_v55 = vadd.f32 %v1664_v15, %v1272_v25  ;;  %vm1672_vm0 = vcmp.lt.f32.partialorder %v1671_v50, 0.0004427343 }
 0x295   : > { %v1687_v32 = vadd.f32 1.0, %v1686_v18  ;;  %v1689_v31 = vand.u32 2147483647, %v6966_v61  ;;  %v1679_v3 = vmul.f32 %v7001_v22, %v1678_v17  ;;  %v1274_v46 = vmax.f32 %v6882_v24, 0.0  ;;  %v7175_v2 = vpop.permute.xlu0 %2113 }
 0x296   : > { %v5304_v0 = vpop.eup %5303  ;;  %4836 = vmatmul.mubr.f32.gmra.mxu1 %v4151_v62  ;;  %v1673_v6 = vsel %vm1672_vm0, %v1670_v39, %v1667_v53  ;;  %v2701_v27 = vpop.f32.mrf.mxu0  ;;  %v4152_v34 = vadd.f32 -0.6931472, %v1720_v55  ;;  %vm1681_vm1 = vcmp.lt.f32.partialorder %v1680_v10, 0.0004427343  ;;  %v1275_v29 = vmax.f32 %v6847_v1, 0.0 }
 0x297   : > { %v1721_v26 = vadd.f32 %v1673_v6, %v1273_v12  ;;  %v1676_v52 = vmul.f32 0.6931472, %v5304_v0  ;;  %v1688_v47 = vmul.f32 %v6966_v61, %v1687_v32  ;;  %vm1690_vm14 = vcmp.lt.f32.partialorder %v1689_v31, 0.0004427343 }
 0x298   : > { %v5306_v35 = vpop.eup %5305  ;;  %v7163_v20 = vpop.f32.mrf.mxu0  ;;  %4838 = vmatprep.mubr.f32.mxu1 %v4152_v34 }
 0x299   : > { %v4153_v9 = vadd.f32 -0.6931472, %v1721_v26  ;;  %v1682_v36 = vsel %vm1681_vm1, %v1679_v3, %v1676_v52  ;;  %v1685_v48 = vmul.f32 0.6931472, %v5306_v35  ;;  %v7181_v28 = vpop.permute.xlu0 %2188 }
 0x29a   : > { %v1722_v41 = vadd.f32 %v1682_v36, %v1274_v46  ;;  %v2706_v40 = vpop.f32.mrf.mxu0 }
 0x29b   : > { %4839 = vmatmul.mubr.f32.gmra.mxu1 %v4153_v9  ;;  %v1691_v11 = vsel %vm1690_vm14, %v1688_v47, %v1685_v48 }
 0x29c   : > { %v4154_v22 = vadd.f32 -0.6931472, %v1722_v41  ;;  %v1723_v44 = vadd.f32 %v1691_v11, %v1275_v29  ;;  %v7167_v54 = vpop.f32.mrf.mxu0 }
 0x29d   : > { %v7185_v18 = vpop.permute.xlu0 %2183 }
 0x29e   : > { %4841 = vmatprep.mubr.f32.mxu1 %v4154_v22  ;;  %v4155_v24 = vadd.f32 -0.6931472, %v1723_v44  ;;  %v2711_v21 = vpop.f32.mrf.mxu0 }
 0x2a0   : > { %4842 = vmatmul.mubr.f32.gmra.mxu1 %v4155_v24  ;;  %v7169_v59 = vpop.f32.mrf.mxu0 }
 0x2a1   : > { %v7191_v42 = vpop.permute.xlu0 %2178 }
 0x2a2   : > { %v2716_v61 = vpop.f32.mrf.mxu0 }
 0x2a4   : > { %v7173_v23 = vpop.f32.mrf.mxu0 }
 0x2a5   : > { %v7195_v10 = vpop.permute.xlu0 %2173 }
 0x2a6   : > { %v2721_v1 = vpop.f32.mrf.mxu0 }
 0x2a8   : > { %v7177_v57 = vpop.f32.mrf.mxu0 }
 0x2a9   : > { %v7201_v39 = vpop.permute.xlu0 %2168 }
 0x2aa   : > { %v2726_v56 = vpop.f32.mrf.mxu0 }
 0x2ac   : > { %v7179_v45 = vpop.f32.mrf.mxu0 }
 0x2ad   : > { %8069 = vst [vmem:[#allocation23_spill] sm:$0xff] %v7179_v45  ;;  %v7205_v0 = vpop.permute.xlu0 %2163 }
 0x2ae   : > { %v2731_v7 = vpop.f32.mrf.mxu0 }
 0x2b0   : > { %v7183_v14 = vpop.f32.mrf.mxu0 }
 0x2b1   : > { %8070 = vst [vmem:[#allocation28_spill] sm:$0xff] %v7183_v14  ;;  %v7211_v34 = vpop.permute.xlu0 %2158 }
 0x2b2   : > { %v2736_v50 = vpop.f32.mrf.mxu0 }
 0x2b4   : > { %v7187_v33 = vpop.f32.mrf.mxu0 }
 0x2b5   : > { %8071 = vst [vmem:[#allocation27_spill] sm:$0xff] %v7187_v33  ;;  %v7215_v35 = vpop.permute.xlu0 %2153 }
 0x2b6   : > { %v2741_v4 = vpop.f32.mrf.mxu0 }
 0x2b8   : > { %v7189_v60 = vpop.f32.mrf.mxu0 }
 0x2b9   : > { %8072 = vst [vmem:[#allocation31_spill] sm:$0xff] %v7189_v60  ;;  %v7221_v48 = vpop.permute.xlu0 %2148 }
 0x2ba   : > { %v2746_v43 = vpop.f32.mrf.mxu0  ;;  %8078 = vst [vmem:[#allocation37_spill] sm:$0xff] %v7221_v48 }
 0x2bc   : > { %v7193_v25 = vpop.f32.mrf.mxu0 }
 0x2bd   : > { %8073 = vst [vmem:[#allocation32_spill] sm:$0xff] %v7193_v25  ;;  %v7225_v40 = vpop.permute.xlu0 %2143 }
 0x2be   : > { %v2751_v17 = vpop.f32.mrf.mxu0  ;;  %8079 = vst [vmem:[#allocation38_spill] sm:$0xff] %v7225_v40 }
 0x2c0   : > { %v7197_v62 = vpop.f32.mrf.mxu0 }
 0x2c1   : > { %8074 = vst [vmem:[#allocation33_spill] sm:$0xff] %v7197_v62  ;;  %v7231_v24 = vpop.permute.xlu0 %2138 }
 0x2c2   : > { %v2756_v15 = vpop.f32.mrf.mxu0  ;;  %8080 = vst [vmem:[#allocation39_spill] sm:$0xff] %v7231_v24  ;;  %v7319_v24 = vld [vmem:[%s7903_s8] ss:$0 sm:$0xff] }
 0x2c4   : > { %v7199_v53 = vpop.f32.mrf.mxu0 }
 0x2c5   : > { %8075 = vst [vmem:[#allocation34_spill] sm:$0xff] %v7199_v53  ;;  %v7233_v61 = vpop.permute.xlu0 %2133 }
 0x2c6   : > { %v2761_v12 = vpop.f32.mrf.mxu0  ;;  %8081 = vst [vmem:[#allocation40_spill] sm:$0xff] %v7233_v61 }
 0x2c8   : > { %v7203_v55 = vpop.f32.mrf.mxu0 }
 0x2c9   : > { %8076 = vst [vmem:[#allocation35_spill] sm:$0xff] %v7203_v55  ;;  %v7235_v1 = vpop.permute.xlu0 %2128 }
 0x2ca   : > { %v2766_v32 = vpop.f32.mrf.mxu0  ;;  %8082 = vst [vmem:[#allocation41_spill] sm:$0xff] %v7235_v1 }
 0x2cc   : > { %v7207_v6 = vpop.f32.mrf.mxu0 }
 0x2cd   : > { %8077 = vst [vmem:[#allocation36_spill] sm:$0xff] %v7207_v6  ;;  %v7237_v56 = vpop.permute.xlu0 %2123 }
 0x2ce   : > { %v2771_v31 = vpop.f32.mrf.mxu0  ;;  %8083 = vst [vmem:[#allocation42_spill] sm:$0xff] %v7237_v56 }
 0x2d0   : > { %v7209_v27 = vpop.f32.mrf.mxu0 }
 0x2d1   : > { %v7239_v7 = vpop.permute.xlu0 %2118 }
 0x2d2   : > { %v2776_v26 = vpop.f32.mrf.mxu0  ;;  %8084 = vst [vmem:[#allocation43_spill] sm:$0xff] %v7239_v7 }
 0x2d4   : > { %v7213_v52 = vpop.f32.mrf.mxu0 }
 0x2d5   : > { %v7241_v50 = vpop.trf.xlu0 }
 0x2d6   : > { %v2781_v3 = vpop.f32.mrf.mxu0  ;;  %8085 = vst [vmem:[#allocation44_spill] sm:$0xff] %v7241_v50  ;;  %v5100_v4 = vunpack.i.l.bf16 %v7241_v50  ;;  %v2109_v50 = vpop.permute.xlu1 %2108 }
 0x2d8   : > { %v7217_v46 = vpop.f32.mrf.mxu0  ;;  %3211 = vmatprep.mubr.f32.mxu1 %v5100_v4 }
 0x2d9   : > { %v7246_v17 = vpop.trf.xlu0 }
 0x2da   : > { %v2786_v9 = vpop.f32.mrf.mxu0  ;;  %8087 = vst [vmem:[#allocation46_spill] sm:$0xff] %v7246_v17  ;;  %v2104_v13 = vpop.permute.xlu1 %2103 }
 0x2dc   : > { %v7219_v36 = vpop.f32.mrf.mxu0 }
 0x2dd   : > { %v7250_v12 = vpop.trf.xlu0 }
 0x2de   : > { %v2791_v47 = vpop.f32.mrf.mxu0  ;;  %8089 = vst [vmem:[#allocation48_spill] sm:$0xff] %v7250_v12  ;;  %v2099_v49 = vpop.permute.xlu1 %2098 }
 0x2e0   : > { %v7223_v29 = vpop.f32.mrf.mxu0 }
 0x2e1   : > { %v7254_v31 = vpop.trf.xlu0 }
 0x2e2   : > { %v2796_v41 = vpop.f32.mrf.mxu0  ;;  %8091 = vst [vmem:[#allocation50_spill] sm:$0xff] %v7254_v31 }
 0x2e4   : > { %v7227_v11 = vpop.f32.mrf.mxu0 }
 0x2e5   : > { %v7258_v3 = vpop.trf.xlu0 }
 0x2e6   : > { %v2801_v22 = vpop.f32.mrf.mxu0  ;;  %8093 = vst [vmem:[#allocation52_spill] sm:$0xff] %v7258_v3 }
 0x2e8   : > { %v7229_v44 = vpop.f32.mrf.mxu0 }
 0x2e9   : > { %v7262_v47 = vpop.trf.xlu0 }
 0x2ea   : > { %v2806_v21 = vpop.f32.mrf.mxu0  ;;  %8094 = vst [vmem:[#allocation53_spill] sm:$0xff] %v7262_v47 }
 0x2ed   : > { %v7268_v21 = vpop.trf.xlu0 }
 0x2ee   : > { %8096 = vst [vmem:[#allocation55_spill] sm:$0xff] %v7268_v21 }
 0x2f1   : > { %v7272_v12 = vpop.trf.xlu0 }
 0x2f2   : > { %8097 = vst [vmem:[#allocation56_spill] sm:$0xff] %v7272_v12 }
 0x2f5   : > { %v7276_v31 = vpop.trf.xlu0 }
 0x2f6   : > { %8098 = vst [vmem:[#allocation57_spill] sm:$0xff] %v7276_v31 }
 0x2f9   : > { %v7280_v3 = vpop.trf.xlu0 }
 0x2fa   : > { %8099 = vst [vmem:[#allocation58_spill] sm:$0xff] %v7280_v3  ;;  %v2094_v3 = vpop.permute.xlu1 %2093 }
 0x2fd   : > { %v7282_v5 = vpop.trf.xlu0 }
 0x2fe   : > { %8100 = vst [vmem:[#allocation59_spill] sm:$0xff] %v7282_v5  ;;  %v2089_v1 = vpop.permute.xlu1 %2088 }
 0x301   : > { %v7284_v33 = vpop.trf.xlu0 }
 0x302   : > { %8101 = vst [vmem:[#allocation60_spill] sm:$0xff] %v7284_v33 }
 0x303   : > { %v7244_v43 = vpop.f32.mrf.mxu1 }
 0x304   : > { %8086 = vst [vmem:[#allocation45_spill] sm:$0xff] %v7244_v43 }
 0x305   : > { %v7248_v15 = vpop.f32.mrf.mxu1  ;;  %v7286_v12 = vpop.trf.xlu0 }
 0x306   : > { %8088 = vst [vmem:[#allocation47_spill] sm:$0xff] %v7248_v15  ;;  %8102 = vst [vmem:[#allocation61_spill] sm:$0xff] %v7286_v12  ;;  %v7304_v12 = vpop.permute.xlu1 %2083 }
 0x309   : > { %v7288_v31 = vpop.trf.xlu0 }
 0x30a   : > { %8103 = vst [vmem:[#allocation62_spill] sm:$0xff] %v7288_v31  ;;  %v7310_v61 = vpop.permute.xlu1 %2078 }
 0x30b   : > { %v7252_v32 = vpop.f32.mrf.mxu1 }
 0x30c   : > { %8090 = vst [vmem:[#allocation49_spill] sm:$0xff] %v7252_v32 }
 0x30d   : > { %v7256_v26 = vpop.f32.mrf.mxu1  ;;  %v7294_v15 = vpop.trf.xlu0 }
 0x30e   : > { %8092 = vst [vmem:[#allocation51_spill] sm:$0xff] %v7256_v26  ;;  %8106 = vst [vmem:[#allocation65_spill] sm:$0xff] %v7294_v15 }
 0x311   : > { %v7298_v25 = vpop.trf.xlu0 }
 0x312   : > { %8108 = vst [vmem:[#allocation67_spill] sm:$0xff] %v7298_v25 }
 0x316   : > { %v7260_v9 = vpop.f32.mrf.mxu1 }
 0x318   : > { %v7264_v41 = vpop.f32.mrf.mxu1 }
 0x319   : > { %8095 = vst [vmem:[#allocation54_spill] sm:$0xff] %v7264_v41 }
 0x31b   : > { %v7266_v22 = vpop.f32.mrf.mxu1 }
 0x31d   : > { %v7270_v4 = vpop.f32.mrf.mxu1 }
 0x323   : > { %v7274_v17 = vpop.f32.mrf.mxu1 }
 0x325   : > { %v7278_v30 = vpop.f32.mrf.mxu1 }
 0x329   : > { %v4813_v47 = vpop.f32.mrf.mxu1 }
 0x32b   : > { %v1895_v45 = vpop.f32.mrf.mxu1 }
 0x32e   : > { %v4816_v14 = vpop.f32.mrf.mxu1 }
 0x330   : > { %v1905_v21 = vpop.f32.mrf.mxu1 }
 0x334   : > { %v4819_v7 = vpop.f32.mrf.mxu1 }
 0x335   : > { %v1921_v37 = vadd.f32 %v4819_v7, %v7319_v24 }
 0x336   : > { %v1915_v60 = vpop.f32.mrf.mxu1 }
 0x337   : > { %v1916_v32 = vadd.f32 %v7319_v24, %v1915_v60  ;;  %v2211_v41 = vmul.f32 %v7175_v2, %v1921_v37  ;;  %v1906_v60 = vadd.f32 %v7319_v24, %v1905_v21  ;;  %v1901_v37 = vadd.f32 %v4813_v47, %v7319_v24 }
 0x339   : > { %v2210_v19 = vmul.f32 %v2109_v50, %v1916_v32 }
 0x33a   : > { %v7290_v56 = vpop.f32.mrf.mxu1 }
 0x33b   : > { %8104 = vst [vmem:[#allocation63_spill] sm:$0xff] %v7290_v56  ;;  %v7312_v56 = vpop.permute.xlu1 %2073 }
 0x33c   : > { %v7292_v8 = vpop.f32.mrf.mxu1  ;;  %8111 = vst [vmem:[#allocation70_spill] sm:$0xff] %v7312_v56 }
 0x33d   : > { %8105 = vst [vmem:[#allocation64_spill] sm:$0xff] %v7292_v8 }
 0x33f   : > { %v7296_v5 = vpop.f32.mrf.mxu1  ;;  %v7314_v26 = vpop.permute.xlu1 %2068 }
 0x340   : > { %8107 = vst [vmem:[#allocation66_spill] sm:$0xff] %v7296_v5  ;;  %8112 = vst [vmem:[#allocation71_spill] sm:$0xff] %v7314_v26  ;;  %v1911_v26 = vadd.f32 %v4816_v14, %v7319_v24 }
 0x341   : > { %v7300_v33 = vpop.f32.mrf.mxu1 }
 0x342   : > { %8109 = vst [vmem:[#allocation68_spill] sm:$0xff] %v7300_v33  ;;  %v2209_v2 = vmul.f32 %v2104_v13, %v1911_v26 }
 0x343   : > { %v7323_v40 = vpop.permute.xlu1 %2063 }
 0x344   : > { %8113 = vst [vmem:[#allocation72_spill] sm:$0xff] %v7323_v40 }
 0x347   : > { %v7302_v63 = vpop.f32.mrf.mxu1  ;;  %v7339_v56 = vpop.permute.xlu1 %2058  ;;  %v8120_v47 = vld [vmem:[#allocation71_spill] sm:$0xff]  ;;  %v8122_v21 = vld [vmem:[#allocation66_spill] sm:$0xff] }
 0x349   : > { %v7306_v43 = vpop.f32.mrf.mxu1 }
 0x34a   : > { %8110 = vst [vmem:[#allocation69_spill] sm:$0xff] %v7306_v43 }
 0x34d   : > { %v4831_v31 = vpop.f32.mrf.mxu1 }
 0x34f   : > { %v7308_v62 = vpop.f32.mrf.mxu1 }
 0x351   : > { %v4834_v8 = vpop.f32.mrf.mxu1  ;;  %v8116_v32 = vld [vmem:[#allocation69_spill] sm:$0xff] }
 0x353   : > { %v1965_v15 = vpop.f32.mrf.mxu1 }
 0x356   : > { %v4837_v58 = vpop.f32.mrf.mxu1 }
 0x357   : > { %v1981_v40 = vadd.f32 %v4837_v58, %v7319_v24 }
 0x358   : > { %v1975_v25 = vpop.f32.mrf.mxu1 }
 0x359   : > { %v2223_v13 = vmul.f32 %v7195_v10, %v1981_v40  ;;  %v1961_v40 = vadd.f32 %v4831_v31, %v7319_v24  ;;  %v8117_v31 = vld [vmem:[#allocation37_spill] sm:$0xff] }
 0x35b   : > { %v4840_v53 = vpop.f32.mrf.mxu1 }
 0x35c   : > { %v1991_v5 = vadd.f32 %v4840_v53, %v7319_v24 }
 0x35d   : > { %v1985_v33 = vpop.f32.mrf.mxu1 }
 0x35e   : > { %v1986_v48 = vadd.f32 %v7319_v24, %v1985_v33  ;;  %v2225_v53 = vmul.f32 %v7185_v18, %v1991_v5  ;;  %v2823_v33 = vmul.f32 %v7177_v57, %v2211_v41  ;;  %v1896_v5 = vadd.f32 %v7319_v24, %v1895_v45 }
 0x35f   : > { %v2208_v18 = vmul.f32 %v2099_v49, %v1906_v60  ;;  %v1966_v45 = vadd.f32 %v7319_v24, %v1965_v15  ;;  %v8115_v15 = vld [vmem:[#allocation24_spill] sm:$0xff] }
 0x360   : > { %v4843_v55 = vpop.f32.mrf.mxu1  ;;  %v2837_v57 = vmul.f32 %v7223_v29, %v2225_v53  ;;  %v2054_v29 = vpop.permute.xlu1 %2053  ;;  %v8124_v53 = vld [vmem:[#allocation35_spill] sm:$0xff] }
 0x361   : > { %v2001_v16 = vadd.f32 %v4843_v55, %v7319_v24  ;;  %v2820_v10 = vmul.f32 %v7167_v54, %v2208_v18  ;;  %v2220_v54 = vmul.f32 %v7211_v34, %v1966_v45  ;;  %v1871_v34 = vadd.f32 %v7260_v9, %v7319_v24  ;;  %v8121_v9 = vld [vmem:[#allocation21_spill] sm:$0xff]  ;;  %v8129_v18 = vld [vmem:[#allocation39_spill] sm:$0xff] }
 0x362   : > { %v1995_v6 = vpop.f32.mrf.mxu1 }
 0x363   : > { %v2227_v43 = vmul.f32 %v7171_v38, %v2001_v16  ;;  %v1996_v7 = vadd.f32 %v7319_v24, %v1995_v6  ;;  %v1976_v16 = vadd.f32 %v7319_v24, %v1975_v25  ;;  %v2224_v38 = vmul.f32 %v7191_v42, %v1986_v48 }
 0x364   : > { %v1971_v6 = vadd.f32 %v4834_v8, %v7319_v24  ;;  %v1891_v25 = vadd.f32 %v7274_v17, %v7319_v24  ;;  %v2207_v42 = vmul.f32 %v2094_v3, %v1901_v37  ;;  %v2821_v48 = vmul.f32 %v7169_v59, %v2209_v2  ;;  %v8119_v3 = vld [vmem:[#allocation54_spill] sm:$0xff]  ;;  %v8126_v2 = vld [vmem:[#allocation72_spill] sm:$0xff] }
 0x365   : > { %v2226_v55 = vmul.f32 %v7181_v28, %v1996_v7  ;;  %v2839_v14 = vmul.f32 %v7229_v44, %v2227_v43  ;;  %v2822_v28 = vmul.f32 %v7173_v23, %v2210_v19  ;;  %v2222_v49 = vmul.f32 %v7201_v39, %v1976_v16  ;;  %v8123_v7 = vld [vmem:[#allocation38_spill] sm:$0xff] }
 0x366   : > { %v2836_v19 = vmul.f32 %v7219_v36, %v2224_v38  ;;  %v1886_v8 = vadd.f32 %v7319_v24, %v7278_v30  ;;  %v2206_v23 = vmul.f32 %v2089_v1, %v1896_v5  ;;  %v2221_v59 = vmul.f32 %v7205_v0, %v1971_v6  ;;  %v8127_v16 = vld [vmem:[#allocation22_spill] sm:$0xff] }
 0x367   : > { %4478 = vmatprep.subr.mxu1 %v2839_v14  ;;  %v2838_v58 = vmul.f32 %v7227_v11, %v2226_v55  ;;  %v2835_v11 = vmul.f32 %v7217_v46, %v2223_v13  ;;  %v1881_v39 = vadd.f32 %v7266_v22, %v7319_v24  ;;  %v2205_v36 = vmul.f32 %v7304_v12, %v1891_v25  ;;  %v8125_v14 = vld [vmem:[#allocation49_spill] sm:$0xff]  ;;  %v8130_v6 = vld [vmem:[#allocation34_spill] sm:$0xff] }
 0x368   : > { %4479 = vmatpush3.msra.mxu1 %v2823_v33  ;;  %v2819_v44 = vmul.f32 %v7163_v20, %v2207_v42  ;;  %v1956_v30 = vadd.f32 %v7319_v24, %v7308_v62  ;;  %v2834_v1 = vmul.f32 %v7213_v52, %v2222_v49  ;;  %v1876_v0 = vadd.f32 %v7319_v24, %v7270_v4  ;;  %v8114_v52 = vld [vmem:[#allocation70_spill] sm:$0xff] }
 0x369   : > { %4480 = vmatprep.subr.mxu1 %v2838_v58  ;;  %v2204_v46 = vmul.f32 %v7310_v61, %v1886_v8  ;;  %v2818_v50 = vmul.f32 %v7157_v51, %v2206_v23  ;;  %v1951_v20 = vadd.f32 %v7302_v63, %v7319_v24  ;;  %v2219_v43 = vmul.f32 %v7215_v35, %v1961_v40  ;;  %v2049_v61 = vpop.permute.xlu1 %2048  ;;  %v8118_v63 = vld [vmem:[#allocation36_spill] sm:$0xff]  ;;  %v8135_v40 = vld [vmem:[#allocation33_spill] sm:$0xff] }
 0x36a   : > { %4481 = vmatpush3.msra.mxu1 %v2822_v28  ;;  %v2833_v62 = vmul.f32 %v7209_v27, %v2221_v59  ;;  %v2203_v17 = vmul.f32 %v8114_v52, %v1881_v39  ;;  %v2817_v12 = vmul.f32 %v8115_v15, %v2205_v36  ;;  %v1946_v51 = vadd.f32 %v7319_v24, %v8116_v32  ;;  %v8128_v58 = vld [vmem:[#allocation68_spill] sm:$0xff]  ;;  %v8144_v15 = vld [vmem:[#allocation31_spill] sm:$0xff] }
 0x36b   : > { %4482 = vmatprep.subr.mxu1 %v2837_v57  ;;  %v2218_v26 = vmul.f32 %v8117_v31, %v1956_v30  ;;  %v2832_v35 = vmul.f32 %v8118_v63, %v2220_v54  ;;  %v1866_v27 = vadd.f32 %v7319_v24, %v8119_v3  ;;  %v2202_v41 = vmul.f32 %v8120_v47, %v1876_v0  ;;  %v8131_v57 = vld [vmem:[#allocation51_spill] sm:$0xff]  ;;  %v8134_v23 = vld [vmem:[#allocation40_spill] sm:$0xff] }
 0x36c   : > { %4483 = vmatpush3.msra.mxu1 %v2821_v48  ;;  %v2816_v22 = vmul.f32 %v8121_v9, %v2204_v46  ;;  %v1941_v4 = vadd.f32 %v8122_v21, %v7319_v24  ;;  %v2217_v60 = vmul.f32 %v8123_v7, %v1951_v20  ;;  %v2831_v55 = vmul.f32 %v8124_v53, %v2219_v43  ;;  %v8132_v48 = vld [vmem:[#allocation26_spill] sm:$0xff]  ;;  %v8140_v46 = vld [vmem:[#allocation32_spill] sm:$0xff]  ;;  %v8141_v20 = vld [vmem:[#allocation47_spill] sm:$0xff] }
 0x36d   : > { %4484 = vmatprep.subr.mxu1 %v2836_v19  ;;  %v1861_v37 = vadd.f32 %v8125_v14, %v7319_v24  ;;  %v2201_v33 = vmul.f32 %v8126_v2, %v1871_v34  ;;  %v2815_v38 = vmul.f32 %v8127_v16, %v2203_v17  ;;  %v1936_v5 = vadd.f32 %v7319_v24, %v8128_v58  ;;  %v2044_v49 = vpop.permute.xlu1 %2043  ;;  %v8133_v19 = vld [vmem:[#allocation63_spill] sm:$0xff]  ;;  %v8142_v34 = vld [vmem:[#allocation25_spill] sm:$0xff]  ;;  %v8143_v17 = vld [vmem:[#allocation42_spill] sm:$0xff] }
 0x36e   : > { %4485 = vmatpush3.msra.mxu1 %v2820_v10  ;;  %v2216_v28 = vmul.f32 %v8129_v18, %v1946_v51  ;;  %v2830_v13 = vmul.f32 %v8130_v6, %v2218_v26  ;;  %v1856_v25 = vadd.f32 %v7319_v24, %v8131_v57  ;;  %v2200_v42 = vmul.f32 %v7339_v56, %v1866_v27  ;;  %v8138_v56 = vld [vmem:[#allocation64_spill] sm:$0xff]  ;;  %v8145_v51 = vld [vmem:[#allocation19_spill] sm:$0xff] }
 0x36f   : > { %4486 = vmatprep.subr.mxu1 %v2835_v11  ;;  %v2814_v45 = vmul.f32 %v8132_v48, %v2202_v41  ;;  %v1931_v8 = vadd.f32 %v8133_v19, %v7319_v24  ;;  %v2215_v10 = vmul.f32 %v8134_v23, %v1941_v4  ;;  %v2829_v59 = vmul.f32 %v8135_v40, %v2217_v60  ;;  %v8136_v11 = vld [vmem:[#allocation45_spill] sm:$0xff]  ;;  %v8146_v63 = vld [vmem:[#allocation43_spill] sm:$0xff]  ;;  %v8149_v41 = vld [vmem:[#allocation28_spill] sm:$0xff] }
 0x370   : > { %4487 = vmatpush3.msra.mxu1 %v2819_v44  ;;  %v1851_v39 = vadd.f32 %v8136_v11, %v7319_v24  ;;  %v2199_v36 = vmul.f32 %v2054_v29, %v1861_v37  ;;  %v8137_v44 = vld [vmem:[#allocation20_spill] sm:$0xff]  ;;  %v1926_v54 = vadd.f32 %v7319_v24, %v8138_v56  ;;  %v1846_v43 = vadd.f32 %v7319_v24, %v8141_v20  ;;  %v8147_v3 = vld [vmem:[#allocation27_spill] sm:$0xff]  ;;  %v8154_v37 = vld [vmem:[#allocation46_spill] sm:$0xff] }
 0x371   : > { %4488 = vmatprep.subr.mxu1 %v2834_v1  ;;  %v2813_v30 = vmul.f32 %v8137_v44, %v2201_v33  ;;  %v8139_v1 = vld [vmem:[#allocation41_spill] sm:$0xff]  ;;  %v2812_v52 = vmul.f32 %v8142_v34, %v2200_v42  ;;  %v2213_v29 = vmul.f32 %v8143_v17, %v1931_v8  ;;  %v2039_v26 = vpop.permute.xlu1 %2038  ;;  %v8151_v4 = vld [vmem:[#allocation23_spill] sm:$0xff]  ;;  %v8152_v60 = vld [vmem:[#allocation44_spill] sm:$0xff]  ;;  %v5105_v2 = vunpack.i.l.bf16 %v8154_v37 }
 0x372   : > { %4489 = vmatpush3.msra.mxu1 %v2818_v50  ;;  %v2214_v0 = vmul.f32 %v8139_v1, %v1936_v5  ;;  %v2828_v50 = vmul.f32 %v8140_v46, %v2216_v28  ;;  %v2197_v32 = vmul.f32 %v2044_v49, %v1851_v39  ;;  %v2811_v31 = vmul.f32 %v8145_v51, %v2199_v36  ;;  %v8155_v16 = vld [vmem:[#allocation48_spill] sm:$0xff]  ;;  %v8156_v5 = vld [vmem:[#allocation50_spill] sm:$0xff]  ;;  %v8161_v40 = vld [vmem:[#allocation57_spill] sm:$0xff] }
 0x373   : > { %4490 = vmatprep.subr.mxu1 %v2833_v62  ;;  %v2198_v62 = vmul.f32 %v2049_v61, %v1856_v25  ;;  %v2196_v24 = vmul.f32 %v2039_v26, %v1846_v43  ;;  %v8148_v61 = vld [vmem:[#allocation18_spill] sm:$0xff]  ;;  %v2825_v9 = vmul.f32 %v8149_v41, %v2213_v29  ;;  %v5103_v53 = vunpack.i.h.bf16 %v8152_v60  ;;  %v8157_v6 = vld [vmem:[#allocation52_spill] sm:$0xff]  ;;  %v8158_v25 = vld [vmem:[#allocation53_spill] sm:$0xff] }
 0x374   : > { %4491 = vmatpush3.msra.mxu1 %v2817_v12  ;;  %v2827_v12 = vmul.f32 %v8144_v15, %v2215_v10  ;;  %v2826_v27 = vmul.f32 %v8147_v3, %v2214_v0  ;;  %v5108_v33 = vunpack.i.h.bf16 %v8154_v37  ;;  %v5113_v58 = vunpack.i.h.bf16 %v8155_v16  ;;  %v8160_v8 = vld [vmem:[#allocation56_spill] sm:$0xff]  ;;  %v8162_v39 = vld [vmem:[#allocation58_spill] sm:$0xff]  ;;  %v8167_v17 = vld [vmem:[#allocation65_spill] sm:$0xff] }
 0x375   : > { %4492 = vmatprep.subr.mxu1 %v2832_v35  ;;  %v2212_v35 = vmul.f32 %v8146_v63, %v1926_v54  ;;  %v2810_v47 = vmul.f32 %v8148_v61, %v2198_v62  ;;  %v5115_v18 = vunpack.i.l.bf16 %v8156_v5  ;;  %v5118_v28 = vunpack.i.h.bf16 %v8156_v5  ;;  %v8164_v1 = vld [vmem:[#allocation60_spill] sm:$0xff]  ;;  %v8166_v62 = vld [vmem:[#allocation62_spill] sm:$0xff] }
 0x376   : > { %4493 = vmatpush3.msra.mxu1 %v2816_v22  ;;  %v8150_v22 = vld [vmem:[#allocation30_spill] sm:$0xff]  ;;  %v5123_v57 = vunpack.i.h.bf16 %v8157_v6  ;;  %v5125_v42 = vunpack.i.l.bf16 %v8158_v25  ;;  %v5128_v48 = vunpack.i.h.bf16 %v8158_v25  ;;  %v5135_v23 = vunpack.i.l.bf16 %v8160_v8 }
 0x377   : > { %4494 = vmatprep.subr.mxu1 %v2831_v55  ;;  %v2809_v21 = vmul.f32 %v8150_v22, %v2197_v32  ;;  %v2824_v7 = vmul.f32 %v8151_v4, %v2212_v35  ;;  %v8153_v55 = vld [vmem:[#allocation29_spill] sm:$0xff]  ;;  %v5138_v10 = vunpack.i.h.bf16 %v8160_v8  ;;  %v5143_v11 = vunpack.i.h.bf16 %v8161_v40  ;;  %v3067_v26 = vld [vmem:[#allocation3] sm:$0xff]  ;;  %v3069_v22 = vld [vmem:[#allocation3 + $0x68] sm:$0xff] }
 0x378   : > { %4495 = vmatpush3.msra.mxu1 %v2815_v38  ;;  %v2808_v14 = vmul.f32 %v8153_v55, %v2196_v24  ;;  %v5110_v38 = vunpack.i.l.bf16 %v8155_v16  ;;  %v5145_v36 = vunpack.i.l.bf16 %v8162_v39  ;;  %v5148_v44 = vunpack.i.h.bf16 %v8162_v39  ;;  %v3068_v24 = vld [vmem:[#allocation3 + $0x48] sm:$0xff]  ;;  %v3073_v25 = vld [vmem:[#allocation3 + $0x40] sm:$0xff] }
 0x379   : > { %4496 = vmatprep.subr.mxu1 %v2830_v13  ;;  %v5120_v13 = vunpack.i.l.bf16 %v8157_v6  ;;  %v5155_v0 = vunpack.i.l.bf16 %v8164_v1  ;;  %v5158_v46 = vunpack.i.h.bf16 %v8164_v1  ;;  %v5165_v34 = vunpack.i.l.bf16 %v8166_v62 }
 0x37a   : > { %4497 = vmatpush3.msra.mxu1 %v2814_v45  ;;  %v8159_v45 = vld [vmem:[#allocation55_spill] sm:$0xff]  ;;  %v5170_v29 = vunpack.i.l.bf16 %v8167_v17  ;;  %v5173_v15 = vunpack.i.h.bf16 %v8167_v17 }
 0x37b   : > { %4498 = vmatprep.subr.mxu1 %v2829_v59  ;;  %v5130_v49 = vunpack.i.l.bf16 %v8159_v45  ;;  %v5133_v19 = vunpack.i.h.bf16 %v8159_v45  ;;  %v5140_v59 = vunpack.i.l.bf16 %v8161_v40 }
 0x37c   : > { %4499 = vmatpush3.msra.mxu1 %v2813_v30  ;;  %v8163_v30 = vld [vmem:[#allocation59_spill] sm:$0xff] }
 0x37d   : > { %4500 = vmatprep.subr.mxu1 %v2828_v50  ;;  %v5150_v56 = vunpack.i.l.bf16 %v8163_v30  ;;  %v5153_v54 = vunpack.i.h.bf16 %v8163_v30  ;;  %v8165_v50 = vld [vmem:[#allocation61_spill] sm:$0xff]  ;;  %v3076_v30 = vld [vmem:[#allocation3 + $0x60] sm:$0xff] }
 0x37e   : > { %4501 = vmatpush3.msra.mxu1 %v2812_v52  ;;  %v5160_v20 = vunpack.i.l.bf16 %v8165_v50  ;;  %v5163_v43 = vunpack.i.h.bf16 %v8165_v50  ;;  %v5168_v52 = vunpack.i.h.bf16 %v8166_v62 }
 0x37f   : > { %4502 = vmatprep.subr.mxu1 %v2827_v12  ;;  %v8168_v12 = vld [vmem:[#allocation67_spill] sm:$0xff] }
 0x380   : > { %4503 = vmatpush3.msra.mxu1 %v2811_v31  ;;  %v5175_v32 = vunpack.i.l.bf16 %v8168_v12  ;;  %v5178_v51 = vunpack.i.h.bf16 %v8168_v12  ;;  %v3079_v12 = vld [vmem:[#allocation3 + $0x10] sm:$0xff] }
 0x381   : > { %4504 = vmatprep.subr.mxu1 %v2826_v27 }
 0x382   : > { %4505 = vmatpush3.msra.mxu1 %v2810_v47 }
 0x383   : > { %4506 = vmatprep.subr.mxu1 %v2825_v9 }
 0x384   : > { %4507 = vmatpush3.msra.mxu1 %v2809_v21 }
 0x385   : > { %4508 = vmatprep.subr.mxu1 %v2824_v7 }
 0x386   : > { %4509 = vmatpush3.msra.mxu1 %v2808_v14 }
 0x387   : > { %3212 = vmatmul.mubr.f32.vlgmr.msra.gmra.mxu1 %v5103_v53  ;;  %v3070_v53 = vld [vmem:[#allocation3 + $0x78] sm:$0xff] }
 0x388   : > { %3216 = vmatprep.mubr.f32.mxu1 %v5105_v2 }
 0x38b   : > { %3217 = vmatmul.mubr.f32.gmra.mxu1 %v5108_v33  ;;  %v3071_v33 = vld [vmem:[#allocation3 + $0x8] sm:$0xff] }
 0x38c   : > { %3221 = vmatprep.mubr.f32.mxu1 %v5110_v38 }
 0x38f   : > { %3222 = vmatmul.mubr.f32.gmra.mxu1 %v5113_v58 }
 0x390   : > { %3226 = vmatprep.mubr.f32.mxu1 %v5115_v18  ;;  %v3072_v18 = vld [vmem:[#allocation3 + $0x50] sm:$0xff] }
 0x393   : > { %3227 = vmatmul.mubr.f32.gmra.mxu1 %v5118_v28 }
 0x394   : > { %3231 = vmatprep.mubr.f32.mxu1 %v5120_v13 }
 0x397   : > { %3232 = vmatmul.mubr.f32.gmra.mxu1 %v5123_v57 }
 0x398   : > { %3236 = vmatprep.mubr.f32.mxu1 %v5125_v42 }
 0x39b   : > { %3237 = vmatmul.mubr.f32.gmra.mxu1 %v5128_v48 }
 0x39c   : > { %3241 = vmatprep.mubr.f32.mxu1 %v5130_v49 }
 0x39f   : > { %3242 = vmatmul.mubr.f32.gmra.mxu1 %v5133_v19  ;;  %v3074_v19 = vld [vmem:[#allocation3 + $0x38] sm:$0xff] }
 0x3a0   : > { %3246 = vmatprep.mubr.f32.mxu1 %v5135_v23 }
 0x3a3   : > { %3247 = vmatmul.mubr.f32.gmra.mxu1 %v5138_v10 }
 0x3a4   : > { %3251 = vmatprep.mubr.f32.mxu1 %v5140_v59  ;;  %v3075_v59 = vld [vmem:[#allocation3 + $0x70] sm:$0xff] }
 0x3a7   : > { %3252 = vmatmul.mubr.f32.gmra.mxu1 %v5143_v11 }
 0x3a8   : > { %3256 = vmatprep.mubr.f32.mxu1 %v5145_v36 }
 0x3ab   : > { %3257 = vmatmul.mubr.f32.gmra.mxu1 %v5148_v44 }
 0x3ac   : > { %3261 = vmatprep.mubr.f32.mxu1 %v5150_v56 }
 0x3af   : > { %3262 = vmatmul.mubr.f32.gmra.mxu1 %v5153_v54 }
 0x3b0   : > { %3266 = vmatprep.mubr.f32.mxu1 %v5155_v0 }
 0x3b3   : > { %3267 = vmatmul.mubr.f32.gmra.mxu1 %v5158_v46  ;;  %v3077_v46 = vld [vmem:[#allocation3 + $0x18] sm:$0xff] }
 0x3b4   : > { %3271 = vmatprep.mubr.f32.mxu1 %v5160_v20 }
 0x3b7   : > { %3272 = vmatmul.mubr.f32.gmra.mxu1 %v5163_v43 }
 0x3b8   : > { %3276 = vmatprep.mubr.f32.mxu1 %v5165_v34  ;;  %v3078_v34 = vld [vmem:[#allocation3 + $0x20] sm:$0xff] }
 0x3bb   : > { %3277 = vmatmul.mubr.f32.gmra.mxu1 %v5168_v52 }
 0x3bc   : > { %3281 = vmatprep.mubr.f32.mxu1 %v5170_v29 }
 0x3bf   : > { %3282 = vmatmul.mubr.f32.gmra.mxu1 %v5173_v15 }
 0x3c0   : > { %3286 = vmatprep.mubr.f32.mxu1 %v5175_v32 }
 0x3c3   : > { %3287 = vmatmul.mubr.f32.gmra.mxu1 %v5178_v51 }
 0x447   : > { %v4510_v31 = vpop.f32.mrf.mxu1 }
 0x449   : > { %v4511_v63 = vpop.f32.mrf.mxu1 }
 0x44a   : > { %v4512_v35 = vadd.f32 %v4511_v63, %v4510_v31  ;;  %v3080_v63 = vld [vmem:[#allocation3 + $0x30] sm:$0xff] }
 0x44b   : > { %v4513_v3 = vpop.f32.mrf.mxu1 }
 0x44c   : > { %v3292_v27 = vadd.f32 %v4512_v35, %v3067_v26 }
 0x44d   : > { %v4514_v61 = vpop.f32.mrf.mxu1 }
 0x44e   : > { %3308 = vst [vmem:[#allocation3] sm:$0xff] %v3292_v27  ;;  %v4515_v47 = vadd.f32 %v4514_v61, %v4513_v3  ;;  %v3081_v61 = vld [vmem:[#allocation3 + $0x28] sm:$0xff] }
 0x44f   : > { %v4516_v41 = vpop.f32.mrf.mxu1 }
 0x450   : > { %v3293_v9 = vadd.f32 %v4515_v47, %v3068_v24 }
 0x451   : > { %v4517_v21 = vpop.f32.mrf.mxu1 }
 0x452   : > { %3309 = vst [vmem:[#allocation3 + $0x48] sm:$0xff] %v3293_v9  ;;  %v4518_v4 = vadd.f32 %v4517_v21, %v4516_v41  ;;  %v3082_v21 = vld [vmem:[#allocation3 + $0x58] sm:$0xff] }
 0x453   : > { %v4519_v7 = vpop.f32.mrf.mxu1 }
 0x454   : > { %v3294_v60 = vadd.f32 %v4518_v4, %v3069_v22 }
 0x455   : > { %v4520_v55 = vpop.f32.mrf.mxu1 }
 0x456   : > { %3310 = vst [vmem:[#allocation3 + $0x68] sm:$0xff] %v3294_v60  ;;  %v4521_v14 = vadd.f32 %v4520_v55, %v4519_v7 }
 0x457   : > { %v4522_v37 = vpop.f32.mrf.mxu1 }
 0x458   : > { %v3295_v2 = vadd.f32 %v4521_v14, %v3070_v53 }
 0x459   : > { %v4523_v16 = vpop.f32.mrf.mxu1 }
 0x45a   : > { %3311 = vst [vmem:[#allocation3 + $0x78] sm:$0xff] %v3295_v2  ;;  %v4524_v38 = vadd.f32 %v4523_v16, %v4522_v37 }
 0x45b   : > { %v4525_v58 = vpop.f32.mrf.mxu1 }
 0x45c   : > { %v3296_v5 = vadd.f32 %v4524_v38, %v3071_v33 }
 0x45d   : > { %v4526_v28 = vpop.f32.mrf.mxu1 }
 0x45e   : > { %3312 = vst [vmem:[#allocation3 + $0x8] sm:$0xff] %v3296_v5  ;;  %v4527_v6 = vadd.f32 %v4526_v28, %v4525_v58 }
 0x45f   : > { %v4528_v13 = vpop.f32.mrf.mxu1 }
 0x460   : > { %v3297_v57 = vadd.f32 %v4527_v6, %v3072_v18 }
 0x461   : > { %v4529_v42 = vpop.f32.mrf.mxu1 }
 0x462   : > { %3313 = vst [vmem:[#allocation3 + $0x50] sm:$0xff] %v3297_v57  ;;  %v4530_v48 = vadd.f32 %v4529_v42, %v4528_v13 }
 0x463   : > { %v4531_v45 = vpop.f32.mrf.mxu1 }
 0x464   : > { %v3298_v49 = vadd.f32 %v4530_v48, %v3073_v25 }
 0x465   : > { %v4532_v8 = vpop.f32.mrf.mxu1 }
 0x466   : > { %3314 = vst [vmem:[#allocation3 + $0x40] sm:$0xff] %v3298_v49  ;;  %v4533_v23 = vadd.f32 %v4532_v8, %v4531_v45 }
 0x467   : > { %v4534_v10 = vpop.f32.mrf.mxu1 }
 0x468   : > { %v3299_v40 = vadd.f32 %v4533_v23, %v3074_v19 }
 0x469   : > { %v4535_v11 = vpop.f32.mrf.mxu1 }
 0x46a   : > { %3315 = vst [vmem:[#allocation3 + $0x38] sm:$0xff] %v3299_v40  ;;  %v4536_v39 = vadd.f32 %v4535_v11, %v4534_v10 }
 0x46b   : > { %v4537_v36 = vpop.f32.mrf.mxu1 }
 0x46c   : > { %v3300_v44 = vadd.f32 %v4536_v39, %v3075_v59 }
 0x46d   : > { %v4538_v56 = vpop.f32.mrf.mxu1 }
 0x46e   : > { %3316 = vst [vmem:[#allocation3 + $0x70] sm:$0xff] %v3300_v44  ;;  %v4539_v54 = vadd.f32 %v4538_v56, %v4537_v36 }
 0x46f   : > { %v4540_v1 = vpop.f32.mrf.mxu1 }
 0x470   : > { %v3301_v0 = vadd.f32 %v4539_v54, %v3076_v30 }
 0x471   : > { %v4541_v50 = vpop.f32.mrf.mxu1 }
 0x472   : > { %3317 = vst [vmem:[#allocation3 + $0x60] sm:$0xff] %v3301_v0  ;;  %v4542_v20 = vadd.f32 %v4541_v50, %v4540_v1 }
 0x473   : > { %v4543_v43 = vpop.f32.mrf.mxu1 }
 0x474   : > { %v3302_v62 = vadd.f32 %v4542_v20, %v3077_v46 }
 0x475   : > { %v4544_v52 = vpop.f32.mrf.mxu1 }
 0x476   : > { %3318 = vst [vmem:[#allocation3 + $0x18] sm:$0xff] %v3302_v62  ;;  %v4545_v17 = vadd.f32 %v4544_v52, %v4543_v43 }
 0x477   : > { %v4546_v29 = vpop.f32.mrf.mxu1 }
 0x478   : > { %v3303_v15 = vadd.f32 %v4545_v17, %v3078_v34 }
 0x479   : > { %v4547_v32 = vpop.f32.mrf.mxu1 }
 0x47a   : > { %3319 = vst [vmem:[#allocation3 + $0x20] sm:$0xff] %v3303_v15  ;;  %v4548_v51 = vadd.f32 %v4547_v32, %v4546_v29 }
 0x47b   : > { %v4549_v31 = vpop.f32.mrf.mxu1 }
 0x47c   : > { %v3304_v26 = vadd.f32 %v4548_v51, %v3079_v12 }
 0x47d   : > { %v4550_v35 = vpop.f32.mrf.mxu1 }
 0x47e   : > { %3320 = vst [vmem:[#allocation3 + $0x10] sm:$0xff] %v3304_v26  ;;  %v4551_v3 = vadd.f32 %v4550_v35, %v4549_v31 }
 0x47f   : > { %v4552_v27 = vpop.f32.mrf.mxu1 }
 0x480   : > { %v3305_v24 = vadd.f32 %v4551_v3, %v3080_v63 }
 0x481   : > { %v4553_v47 = vpop.f32.mrf.mxu1 }
 0x482   : > { %3321 = vst [vmem:[#allocation3 + $0x30] sm:$0xff] %v3305_v24  ;;  %v4554_v41 = vadd.f32 %v4553_v47, %v4552_v27 }
 0x483   : > { %v4555_v9 = vpop.f32.mrf.mxu1 }
 0x484   : > { %v3306_v22 = vadd.f32 %v4554_v41, %v3081_v61 }
 0x485   : > { %v4556_v4 = vpop.f32.mrf.mxu1 }
 0x486   : > { %3322 = vst [vmem:[#allocation3 + $0x28] sm:$0xff] %v3306_v22  ;;  %v4557_v7 = vadd.f32 %v4556_v4, %v4555_v9  ;;  %3327 = sbr.rel (%p4318_p0) target bundleno = 1674 (0x68a), region = 84 }
 0x488   : > { %v3307_v60 = vadd.f32 %v4557_v7, %v3082_v21 }
 0x48a   : > { %3323 = vst [vmem:[#allocation3 + $0x58] sm:$0xff] %v3307_v60 }
 0x48b   : > { %v3359_v53 = vld [vmem:[%s7905_s10 + $0x78] sm:$0xff]  ;;  %v3358_v55 = vld [vmem:[%s7905_s10 + $0x70] sm:$0xff]  ;;  %v3357_v14 = vld [vmem:[%s7905_s10 + $0x68] sm:$0xff] }
 0x48c   : > { %4844 = vmatprep.subr.mxu0 %v3359_v53  ;;  %v3356_v37 = vld [vmem:[%s7905_s10 + $0x60] sm:$0xff]  ;;  %v3355_v33 = vld [vmem:[%s7905_s10 + $0x58] sm:$0xff]  ;;  %v3354_v16 = vld [vmem:[%s7905_s10 + $0x50] sm:$0xff] }
 0x48d   : > { %4845 = vmatpush3.msra.mxu0 %v3359_v53  ;;  %v3328_v2 = vld [vmem:[#allocation3] sm:$0xff]  ;;  %v3353_v38 = vld [vmem:[%s7905_s10 + $0x48] sm:$0xff]  ;;  %v3351_v5 = vld [vmem:[%s7905_s10 + $0x38] sm:$0xff] }
 0x48e   : > { %4846 = vmatprep.subr.mxu0 %v3358_v55  ;;  %4876 = vmatprep.mubr.f32.mxu0 %v3328_v2  ;;  %v3352_v58 = vld [vmem:[%s7905_s10 + $0x40] sm:$0xff]  ;;  %v3350_v18 = vld [vmem:[%s7905_s10 + $0x30] sm:$0xff]  ;;  %v3349_v28 = vld [vmem:[%s7905_s10 + $0x28] sm:$0xff] }
 0x48f   : > { %4847 = vmatpush3.msra.mxu0 %v3358_v55  ;;  %v3348_v6 = vld [vmem:[%s7905_s10 + $0x20] sm:$0xff]  ;;  %v3347_v13 = vld [vmem:[%s7905_s10 + $0x18] sm:$0xff]  ;;  %v3346_v57 = vld [vmem:[%s7905_s10 + $0x10] sm:$0xff] }
 0x490   : > { %4848 = vmatprep.subr.mxu0 %v3357_v14  ;;  %v3345_v25 = vld [vmem:[%s7905_s10 + $0x8] sm:$0xff]  ;;  %v3344_v42 = vld [vmem:[%s7905_s10] sm:$0xff]  ;;  %v3331_v49 = vld [vmem:[#allocation3 + $0x78] sm:$0xff] }
 0x491   : > { %4849 = vmatpush3.msra.mxu0 %v3357_v14  ;;  %v3329_v48 = vld [vmem:[#allocation3 + $0x48] sm:$0xff]  ;;  %v3333_v8 = vld [vmem:[#allocation3 + $0x50] sm:$0xff]  ;;  %v3334_v23 = vld [vmem:[#allocation3 + $0x40] sm:$0xff] }
 0x492   : > { %4850 = vmatprep.subr.mxu0 %v3356_v37  ;;  %v3330_v45 = vld [vmem:[#allocation3 + $0x68] sm:$0xff]  ;;  %v3335_v10 = vld [vmem:[#allocation3 + $0x38] sm:$0xff]  ;;  %v3336_v40 = vld [vmem:[#allocation3 + $0x70] sm:$0xff] }
 0x493   : > { %4851 = vmatpush3.msra.mxu0 %v3356_v37  ;;  %v3332_v19 = vld [vmem:[#allocation3 + $0x8] sm:$0xff]  ;;  %v3337_v59 = vld [vmem:[#allocation3 + $0x60] sm:$0xff]  ;;  %v3338_v11 = vld [vmem:[#allocation3 + $0x18] sm:$0xff] }
 0x494   : > { %4852 = vmatprep.subr.mxu0 %v3355_v33  ;;  %v3339_v39 = vld [vmem:[#allocation3 + $0x20] sm:$0xff]  ;;  %v3340_v36 = vld [vmem:[#allocation3 + $0x10] sm:$0xff]  ;;  %v3342_v30 = vld [vmem:[#allocation3 + $0x28] sm:$0xff] }
 0x495   : > { %4853 = vmatpush3.msra.mxu0 %v3355_v33  ;;  %v3341_v44 = vld [vmem:[#allocation3 + $0x30] sm:$0xff]  ;;  %v3343_v56 = vld [vmem:[#allocation3 + $0x58] sm:$0xff]  ;;  %v3781_v0 = vld [vmem:[%s7907_s12 + $0x68] sm:$0xff] }
 0x496   : > { %4854 = vmatprep.subr.mxu0 %v3354_v16  ;;  %v3783_v54 = vld [vmem:[%s7907_s12 + $0x78] sm:$0xff]  ;;  %v3782_v1 = vld [vmem:[%s7907_s12 + $0x70] sm:$0xff]  ;;  %v3780_v46 = vld [vmem:[%s7907_s12 + $0x60] sm:$0xff] }
 0x497   : > { %4855 = vmatpush3.msra.mxu0 %v3354_v16  ;;  %4900 = vmatprep.subr.mxu1 %v3783_v54  ;;  %v3779_v50 = vld [vmem:[%s7907_s12 + $0x58] sm:$0xff]  ;;  %v3778_v20 = vld [vmem:[%s7907_s12 + $0x50] sm:$0xff]  ;;  %v3777_v43 = vld [vmem:[%s7907_s12 + $0x48] sm:$0xff] }
 0x498   : > { %4856 = vmatprep.subr.mxu0 %v3353_v38  ;;  %4901 = vmatpush3.msra.mxu1 %v3783_v54  ;;  %v3776_v62 = vld [vmem:[%s7907_s12 + $0x40] sm:$0xff]  ;;  %v3775_v34 = vld [vmem:[%s7907_s12 + $0x38] sm:$0xff]  ;;  %v3774_v52 = vld [vmem:[%s7907_s12 + $0x30] sm:$0xff] }
 0x499   : > { %4857 = vmatpush3.msra.mxu0 %v3353_v38  ;;  %4902 = vmatprep.subr.mxu1 %v3782_v1  ;;  %v3773_v17 = vld [vmem:[%s7907_s12 + $0x28] sm:$0xff]  ;;  %v3772_v29 = vld [vmem:[%s7907_s12 + $0x20] sm:$0xff]  ;;  %v3771_v15 = vld [vmem:[%s7907_s12 + $0x18] sm:$0xff] }
 0x49a   : > { %4858 = vmatprep.subr.mxu0 %v3352_v58  ;;  %4903 = vmatpush3.msra.mxu1 %v3782_v1  ;;  %v3770_v12 = vld [vmem:[%s7907_s12 + $0x10] sm:$0xff]  ;;  %v3769_v32 = vld [vmem:[%s7907_s12 + $0x8] sm:$0xff]  ;;  %v3768_v51 = vld [vmem:[%s7907_s12] sm:$0xff] }
 0x49b   : > { %4859 = vmatpush3.msra.mxu0 %v3352_v58  ;;  %4904 = vmatprep.subr.mxu1 %v3781_v0  ;;  %v7560_v31 = vld [vmem:[%s7906_s11] ss:$0 sm:$0xff] }
 0x49c   : > { %4860 = vmatprep.subr.mxu0 %v3351_v5  ;;  %4905 = vmatpush3.msra.mxu1 %v3781_v0 }
 0x49d   : > { %4861 = vmatpush3.msra.mxu0 %v3351_v5  ;;  %4906 = vmatprep.subr.mxu1 %v3780_v46 }
 0x49e   : > { %4862 = vmatprep.subr.mxu0 %v3350_v18  ;;  %4907 = vmatpush3.msra.mxu1 %v3780_v46 }
 0x49f   : > { %4863 = vmatpush3.msra.mxu0 %v3350_v18  ;;  %4908 = vmatprep.subr.mxu1 %v3779_v50 }
 0x4a0   : > { %4864 = vmatprep.subr.mxu0 %v3349_v28  ;;  %4909 = vmatpush3.msra.mxu1 %v3779_v50 }
 0x4a1   : > { %4865 = vmatpush3.msra.mxu0 %v3349_v28  ;;  %4910 = vmatprep.subr.mxu1 %v3778_v20 }
 0x4a2   : > { %4866 = vmatprep.subr.mxu0 %v3348_v6  ;;  %4911 = vmatpush3.msra.mxu1 %v3778_v20 }
 0x4a3   : > { %4867 = vmatpush3.msra.mxu0 %v3348_v6  ;;  %4912 = vmatprep.subr.mxu1 %v3777_v43 }
 0x4a4   : > { %4868 = vmatprep.subr.mxu0 %v3347_v13  ;;  %4913 = vmatpush3.msra.mxu1 %v3777_v43 }
 0x4a5   : > { %4869 = vmatpush3.msra.mxu0 %v3347_v13  ;;  %4914 = vmatprep.subr.mxu1 %v3776_v62 }
 0x4a6   : > { %4870 = vmatprep.subr.mxu0 %v3346_v57  ;;  %4915 = vmatpush3.msra.mxu1 %v3776_v62 }
 0x4a7   : > { %4871 = vmatpush3.msra.mxu0 %v3346_v57  ;;  %4916 = vmatprep.subr.mxu1 %v3775_v34 }
 0x4a8   : > { %4872 = vmatprep.subr.mxu0 %v3345_v25  ;;  %4917 = vmatpush3.msra.mxu1 %v3775_v34 }
 0x4a9   : > { %4873 = vmatpush3.msra.mxu0 %v3345_v25  ;;  %4918 = vmatprep.subr.mxu1 %v3774_v52 }
 0x4aa   : > { %4874 = vmatprep.subr.mxu0 %v3344_v42  ;;  %4919 = vmatpush3.msra.mxu1 %v3774_v52 }
 0x4ab   : > { %4875 = vmatpush3.msra.mxu0 %v3344_v42  ;;  %4920 = vmatprep.subr.mxu1 %v3773_v17 }
 0x4ac   : > { %4877 = vmatmul.mubr.f32.vlgmr.msra.gmra.mxu0 %v3329_v48  ;;  %4921 = vmatpush3.msra.mxu1 %v3773_v17 }
 0x4ad   : > { %4879 = vmatprep.mubr.f32.mxu0 %v3330_v45  ;;  %4922 = vmatprep.subr.mxu1 %v3772_v29 }
 0x4ae   : > { %4923 = vmatpush3.msra.mxu1 %v3772_v29 }
 0x4af   : > { %4924 = vmatprep.subr.mxu1 %v3771_v15 }
 0x4b0   : > { %4880 = vmatmul.mubr.f32.gmra.mxu0 %v3331_v49  ;;  %4925 = vmatpush3.msra.mxu1 %v3771_v15 }
 0x4b1   : > { %4882 = vmatprep.mubr.f32.mxu0 %v3332_v19  ;;  %4926 = vmatprep.subr.mxu1 %v3770_v12 }
 0x4b2   : > { %4927 = vmatpush3.msra.mxu1 %v3770_v12 }
 0x4b3   : > { %4928 = vmatprep.subr.mxu1 %v3769_v32 }
 0x4b4   : > { %4883 = vmatmul.mubr.f32.gmra.mxu0 %v3333_v8  ;;  %4929 = vmatpush3.msra.mxu1 %v3769_v32 }
 0x4b5   : > { %4885 = vmatprep.mubr.f32.mxu0 %v3334_v23  ;;  %4930 = vmatprep.subr.mxu1 %v3768_v51 }
 0x4b6   : > { %4931 = vmatpush3.msra.mxu1 %v3768_v51 }
 0x4b8   : > { %4886 = vmatmul.mubr.f32.gmra.mxu0 %v3335_v10 }
 0x4b9   : > { %4888 = vmatprep.mubr.f32.mxu0 %v3336_v40 }
 0x4bc   : > { %4889 = vmatmul.mubr.f32.gmra.mxu0 %v3337_v59 }
 0x4bd   : > { %4891 = vmatprep.mubr.f32.mxu0 %v3338_v11 }
 0x4c0   : > { %4892 = vmatmul.mubr.f32.gmra.mxu0 %v3339_v39 }
 0x4c1   : > { %4894 = vmatprep.mubr.f32.mxu0 %v3340_v36 }
 0x4c4   : > { %4895 = vmatmul.mubr.f32.gmra.mxu0 %v3341_v44 }
 0x4c5   : > { %4897 = vmatprep.mubr.f32.mxu0 %v3342_v30 }
 0x4c8   : > { %4898 = vmatmul.mubr.f32.gmra.mxu0 %v3343_v56 }
 0x56c   : > { %v4878_v26 = vpop.f32.mrf.mxu0 }
 0x56d   : > { %v7563_v63 = vadd.f32 %v4878_v26, %v7560_v31 }
 0x56e   : > { %v3433_v35 = vpop.f32.mrf.mxu0 }
 0x56f   : > { %v3529_v3 = vand.u32 2147483647, %v7563_v63  ;;  %v7567_v27 = vadd.f32 %v7560_v31, %v3433_v35 }
 0x570   : > { %v4881_v24 = vpop.f32.mrf.mxu0 }
 0x571   : > { %v3545_v61 = vsub.f32 0.0, %v3529_v3  ;;  %v3528_v47 = vand.u32 2147483647, %v7567_v27  ;;  %v7571_v41 = vadd.f32 %v4881_v24, %v7560_v31 }
 0x572   : > { %v3443_v9 = vpop.f32.mrf.mxu0 }
 0x573   : > { %v3562_v22 = vmul.f32 1.442695, %v3545_v61  ;;  %v3544_v21 = vsub.f32 0.0, %v3528_v47  ;;  %v3531_v4 = vand.u32 2147483647, %v7571_v41  ;;  %v7575_v7 = vadd.f32 %v7560_v31, %v3443_v9 }
 0x574   : > { %v4884_v60 = vpop.f32.mrf.mxu0  ;;  %v3513_v61 = vmax.f32 %v7563_v63, 0.0 }
 0x575   : > { %v3560_v53 = vmul.f32 1.442695, %v3544_v21  ;;  %v7578_v55 = vadd.f32 %v4884_v60, %v7560_v31  ;;  %5307 = vpow2.f32 %v3562_v22  ;;  %v3530_v14 = vand.u32 2147483647, %v7575_v7 }
 0x576   : > { %v3453_v37 = vpop.f32.mrf.mxu0  ;;  %v3547_v2 = vsub.f32 0.0, %v3531_v4  ;;  %v3515_v21 = vmax.f32 %v7571_v41, 0.0  ;;  %v3514_v4 = vmax.f32 %v7575_v7, 0.0 }
 0x577   : > { %5309 = vpow2.f32 %v3560_v53  ;;  %v3546_v33 = vsub.f32 0.0, %v3530_v14  ;;  %v3533_v16 = vand.u32 2147483647, %v7578_v55  ;;  %v7583_v38 = vadd.f32 %v7560_v31, %v3453_v37 }
 0x578   : > { %v4887_v58 = vpop.f32.mrf.mxu0  ;;  %v3566_v25 = vmul.f32 1.442695, %v3547_v2  ;;  %v3512_v14 = vmax.f32 %v7567_v27, 0.0 }
 0x579   : > { %v7586_v5 = vadd.f32 %v4887_v58, %v7560_v31  ;;  %v3564_v18 = vmul.f32 1.442695, %v3546_v33  ;;  %v3532_v28 = vand.u32 2147483647, %v7583_v38  ;;  %v3549_v42 = vsub.f32 0.0, %v3533_v16 }
 0x57a   : > { %v3463_v6 = vpop.f32.mrf.mxu0 }
 0x57b   : > { %v3535_v13 = vand.u32 2147483647, %v7586_v5  ;;  %v7591_v57 = vadd.f32 %v7560_v31, %v3463_v6  ;;  %v3548_v48 = vsub.f32 0.0, %v3532_v28  ;;  %5311 = vpow2.f32 %v3564_v18 }
 0x57c   : > { %v4890_v45 = vpop.f32.mrf.mxu0  ;;  %5313 = vpow2.f32 %v3566_v25  ;;  %v3570_v11 = vmul.f32 1.442695, %v3549_v42 }
 0x57d   : > { %v3534_v49 = vand.u32 2147483647, %v7591_v57  ;;  %v3568_v19 = vmul.f32 1.442695, %v3548_v48  ;;  %v3551_v8 = vsub.f32 0.0, %v3535_v13  ;;  %v7595_v23 = vadd.f32 %v4890_v45, %v7560_v31 }
 0x57e   : > { %v3473_v10 = vpop.f32.mrf.mxu0  ;;  %v3517_v13 = vmax.f32 %v7578_v55, 0.0  ;;  %v3516_v48 = vmax.f32 %v7583_v38, 0.0  ;;  %v3519_v45 = vmax.f32 %v7586_v5, 0.0 }
 0x57f   : > { %v3550_v40 = vsub.f32 0.0, %v3534_v49  ;;  %v7598_v59 = vadd.f32 %v7560_v31, %v3473_v10  ;;  %v3537_v36 = vand.u32 2147483647, %v7595_v23  ;;  %5315 = vpow2.f32 %v3568_v19 }
 0x580   : > { %v4893_v39 = vpop.f32.mrf.mxu0  ;;  %v3574_v30 = vmul.f32 1.442695, %v3551_v8  ;;  %5317 = vpow2.f32 %v3570_v11  ;;  %v3518_v49 = vmax.f32 %v7591_v57, 0.0 }
 0x581   : > { %v3536_v44 = vand.u32 2147483647, %v7598_v59  ;;  %v7603_v56 = vadd.f32 %v4893_v39, %v7560_v31  ;;  %v3572_v0 = vmul.f32 1.442695, %v3550_v40  ;;  %v3553_v34 = vsub.f32 0.0, %v3537_v36 }
 0x582   : > { %v3483_v54 = vpop.f32.mrf.mxu0  ;;  %v7605_v1 = vpop.eup %5307  ;;  %5319 = vpow2.f32 %v3574_v30  ;;  %v3521_v30 = vmax.f32 %v7595_v23, 0.0 }
 0x583   : > { %v3552_v46 = vsub.f32 0.0, %v3536_v44  ;;  %v7608_v50 = vadd.f32 %v7560_v31, %v3483_v54  ;;  %v3539_v43 = vand.u32 2147483647, %v7603_v56  ;;  %5321 = vpow2.f32 %v3572_v0 }
 0x584   : > { %v7610_v20 = vpop.eup %5309  ;;  %v4896_v62 = vpop.f32.mrf.mxu0  ;;  %v3601_v24 = vadd.f32 1.0, %v7605_v1  ;;  %v3578_v47 = vmul.f32 1.442695, %v3553_v34  ;;  %v3604_v42 = vmul.f32 -0.5, %v7605_v1  ;;  %v3520_v54 = vmax.f32 %v7598_v59, 0.0 }
 0x585   : > { %v3538_v52 = vand.u32 2147483647, %v7608_v50  ;;  %v7615_v17 = vadd.f32 %v4896_v62, %v7560_v31  ;;  %v3592_v15 = vadd.f32 1.0, %v7610_v20  ;;  %v3576_v12 = vmul.f32 1.442695, %v3552_v46 }
 0x586   : > { %v3493_v29 = vpop.f32.mrf.mxu0  ;;  %v3555_v26 = vsub.f32 0.0, %v3539_v43  ;;  %v3595_v16 = vmul.f32 -0.5, %v7610_v20  ;;  %v3598_v39 = vand.u32 2147483647, %v7610_v20  ;;  %v3605_v0 = vadd.f32 1.0, %v3604_v42 }
 0x587   : > { %v3554_v32 = vsub.f32 0.0, %v3538_v52  ;;  %v3541_v51 = vand.u32 2147483647, %v7615_v17  ;;  %v7620_v35 = vadd.f32 %v7560_v31, %v3493_v29  ;;  %5323 = vlog2.f32 %v3592_v15 }
 0x588   : > { %v4899_v3 = vpop.f32.mrf.mxu0  ;;  %v7631_v37 = vpop.eup %5311  ;;  %5325 = vpow2.f32 %v3576_v12  ;;  %v3582_v58 = vmul.f32 1.442695, %v3555_v26  ;;  %v3596_v40 = vadd.f32 1.0, %v3595_v16  ;;  %v3522_v46 = vmax.f32 %v7608_v50, 0.0 }
 0x589   : > { %v3557_v9 = vsub.f32 0.0, %v3541_v51  ;;  %v7625_v22 = vadd.f32 %v4899_v3, %v7560_v31  ;;  %v3540_v60 = vand.u32 2147483647, %v7620_v35  ;;  %v3580_v2 = vmul.f32 1.442695, %v3554_v32  ;;  %v7638_v6 = vpop.eup %5313 }
 0x58a   : > { %v3503_v53 = vpop.f32.mrf.mxu0  ;;  %5327 = vlog2.f32 %v3601_v24  ;;  %v3610_v19 = vadd.f32 1.0, %v7631_v37  ;;  %v3619_v36 = vadd.f32 1.0, %v7638_v6  ;;  %v3607_v43 = vand.u32 2147483647, %v7605_v1 }
 0x58b   : > { %v3543_v33 = vand.u32 2147483647, %v7625_v22  ;;  %v3556_v18 = vsub.f32 0.0, %v3540_v60  ;;  %v7636_v28 = vadd.f32 %v7560_v31, %v3503_v53  ;;  %5329 = vpow2.f32 %v3578_v47 }
 0x58c   : > { %v3586_v25 = vmul.f32 1.442695, %v3557_v9  ;;  %v7646_v8 = vpop.eup %5315  ;;  %5331 = vpow2.f32 %v3580_v2  ;;  %v3613_v15 = vmul.f32 -0.5, %v7631_v37  ;;  %v3597_v32 = vmul.f32 %v7610_v20, %v3596_v40 }
 0x58d   : > { %v3559_v31 = vsub.f32 0.0, %v3543_v33  ;;  %v3542_v10 = vand.u32 2147483647, %v7636_v28  ;;  %5333 = vpow2.f32 %v3582_v58  ;;  %v3584_v11 = vmul.f32 1.442695, %v3556_v18  ;;  %v7651_v44 = vpop.eup %5317 }
 0x58e   : > { %5335 = vpow2.f32 %v3586_v25  ;;  %v3628_v62 = vadd.f32 1.0, %v7646_v8  ;;  %vm7664_vm2 = vcmp.lt.f32.partialorder %v3598_v39, 0.0004427343  ;;  %v3637_v26 = vadd.f32 1.0, %v7651_v44 }
 0x58f   : > { %5337 = vlog2.f32 %v3610_v19  ;;  %v7658_v34 = vpop.eup %5319  ;;  %v3590_v52 = vmul.f32 1.442695, %v3559_v31  ;;  %v3558_v29 = vsub.f32 0.0, %v3542_v10  ;;  %v3606_v24 = vmul.f32 %v7605_v1, %v3605_v0 }
 0x590   : > { %5339 = vlog2.f32 %v3619_v36  ;;  %v7661_v12 = vpop.eup %5321  ;;  %v3616_v47 = vand.u32 2147483647, %v7631_v37  ;;  %v3622_v9 = vmul.f32 -0.5, %v7638_v6  ;;  %vm7672_vm3 = vcmp.lt.f32.partialorder %v3607_v43, 0.0004427343 }
 0x591   : > { %5341 = vpow2.f32 %v3584_v11  ;;  %v3625_v20 = vand.u32 2147483647, %v7638_v6  ;;  %v3588_v2 = vmul.f32 1.442695, %v3558_v29  ;;  %v3614_v33 = vadd.f32 1.0, %v3613_v15 }
 0x592   : > { %5343 = vlog2.f32 %v3628_v62  ;;  %v3646_v16 = vadd.f32 1.0, %v7661_v12  ;;  %v3631_v18 = vmul.f32 -0.5, %v7646_v8  ;;  %v3640_v25 = vmul.f32 -0.5, %v7651_v44 }
 0x593   : > { %5345 = vlog2.f32 %v3637_v26  ;;  %v3655_v42 = vadd.f32 1.0, %v7658_v34  ;;  %vm7687_vm5 = vcmp.lt.f32.partialorder %v3616_v47, 0.0004427343  ;;  %v3623_v40 = vadd.f32 1.0, %v3622_v9 }
 0x594   : > { %v5324_v3 = vpop.eup %5323  ;;  %5347 = vpow2.f32 %v3590_v52  ;;  %vm7693_vm4 = vcmp.lt.f32.partialorder %v3625_v20, 0.0004427343  ;;  %v3634_v0 = vand.u32 2147483647, %v7646_v8  ;;  %v3649_v43 = vmul.f32 -0.5, %v7661_v12 }
 0x595   : > { %v3594_v60 = vmul.f32 0.6931472, %v5324_v3  ;;  %v7678_v58 = vpop.eup %5325  ;;  %5349 = vlog2.f32 %v3646_v16  ;;  %v3643_v62 = vand.u32 2147483647, %v7651_v44  ;;  %v3641_v51 = vadd.f32 1.0, %v3640_v25 }
 0x596   : > { %5351 = vlog2.f32 %v3655_v42  ;;  %v3664_v52 = vadd.f32 1.0, %v7678_v58  ;;  %v3652_v26 = vand.u32 2147483647, %v7661_v12  ;;  %vm7716_vm6 = vcmp.lt.f32.partialorder %v3634_v0, 0.0004427343 }
 0x597   : > { %v3600_v1 = vsel %vm7664_vm2, %v3597_v32, %v3594_v60  ;;  %v5328_v19 = vpop.eup %5327  ;;  %v3632_v32 = vadd.f32 1.0, %v3631_v18  ;;  %v3650_v20 = vadd.f32 1.0, %v3649_v43  ;;  %vm7720_vm7 = vcmp.lt.f32.partialorder %v3643_v62, 0.0004427343 }
 0x598   : > { %v3736_v31 = vadd.f32 %v3600_v1, %v3512_v14  ;;  %v7691_v11 = vpop.eup %5329  ;;  %v3603_v39 = vmul.f32 0.6931472, %v5328_v19  ;;  %v3615_v14 = vmul.f32 %v7631_v37, %v3614_v33  ;;  %v3658_v37 = vmul.f32 -0.5, %v7658_v34 }
 0x599   : > { %v7702_v29 = vpop.eup %5331  ;;  %5353 = vlog2.f32 %v3664_v52  ;;  %v3673_v9 = vadd.f32 1.0, %v7691_v11  ;;  %vm7727_vm8 = vcmp.lt.f32.partialorder %v3652_v26, 0.0004427343  ;;  %v3679_v63 = vand.u32 2147483647, %v7691_v11 }
 0x59a   : > { %v4320_v27 = vadd.f32 -0.6931472, %v3736_v31  ;;  %v3609_v15 = vsel %vm7672_vm3, %v3606_v24, %v3603_v39  ;;  %v7707_v3 = vpop.eup %5333  ;;  %5355 = vpow2.f32 %v3588_v2  ;;  %v3624_v24 = vmul.f32 %v7638_v6, %v3623_v40 }
 0x59b   : > { %v3737_v47 = vadd.f32 %v3609_v15, %v3513_v61  ;;  %v7713_v60 = vpop.eup %5335  ;;  %5357 = vlog2.f32 %v3673_v9  ;;  %v3682_v61 = vadd.f32 1.0, %v7702_v29  ;;  %v3633_v2 = vmul.f32 %v7646_v8, %v3632_v32 }
 0x59c   : > { %4932 = vmatprep.mubr.f32.mxu1 %v4320_v27  ;;  %v5338_v33 = vpop.eup %5337  ;;  %v3642_v6 = vmul.f32 %v7651_v44, %v3641_v51  ;;  %v3659_v31 = vadd.f32 1.0, %v3658_v37  ;;  %v3661_v40 = vand.u32 2147483647, %v7658_v34  ;;  %v3651_v8 = vmul.f32 %v7661_v12, %v3650_v20 }
 0x59d   : > { %v4321_v16 = vadd.f32 -0.6931472, %v3737_v47  ;;  %v5340_v1 = vpop.eup %5339  ;;  %v3612_v18 = vmul.f32 0.6931472, %v5338_v33  ;;  %5359 = vlog2.f32 %v3682_v61  ;;  %v3667_v44 = vmul.f32 -0.5, %v7678_v58 }
 0x59e   : > { %v7731_v42 = vpop.eup %5341  ;;  %v3621_v19 = vmul.f32 0.6931472, %v5340_v1  ;;  %v3691_v43 = vadd.f32 1.0, %v7707_v3  ;;  %v3670_v32 = vand.u32 2147483647, %v7678_v58  ;;  %v3685_v33 = vmul.f32 -0.5, %v7702_v29 }
 0x59f   : > { %4933 = vmatmul.mubr.f32.vlgmr.msra.gmra.mxu1 %v4321_v16  ;;  %v5344_v39 = vpop.eup %5343  ;;  %v3618_v0 = vsel %vm7687_vm5, %v3615_v14, %v3612_v18  ;;  %v3676_v14 = vmul.f32 -0.5, %v7691_v11  ;;  %vm7752_vm9 = vcmp.lt.f32.partialorder %v3661_v40, 0.0004427343  ;;  %v3700_v9 = vadd.f32 1.0, %v7731_v42 }
 0x5a0   : > { %v5346_v27 = vpop.eup %5345  ;;  %v3738_v62 = vadd.f32 %v3618_v0, %v3514_v4  ;;  %v3627_v52 = vsel %vm7693_vm4, %v3624_v24, %v3621_v19  ;;  %v3630_v15 = vmul.f32 0.6931472, %v5344_v39  ;;  %5361 = vlog2.f32 %v3691_v43 }
 0x5a1   : > { %v7744_v51 = vpop.eup %5347  ;;  %v3739_v10 = vadd.f32 %v3627_v52, %v3515_v21  ;;  %v3639_v12 = vmul.f32 0.6931472, %v5346_v27  ;;  %v3660_v4 = vmul.f32 %v7658_v34, %v3659_v31  ;;  %v3668_v20 = vadd.f32 1.0, %v3667_v44 }
 0x5a2   : > { %v4322_v26 = vadd.f32 -0.6931472, %v3738_v62  ;;  %v3636_v7 = vsel %vm7716_vm6, %v3633_v2, %v3630_v15  ;;  %v5350_v47 = vpop.eup %5349  ;;  %v3677_v1 = vadd.f32 1.0, %v3676_v14  ;;  %5363 = vlog2.f32 %v3700_v9 }
 0x5a3   : > { %v4323_v37 = vadd.f32 -0.6931472, %v3739_v10  ;;  %v3740_v41 = vadd.f32 %v3636_v7, %v3516_v48  ;;  %v3645_v21 = vsel %vm7720_vm7, %v3642_v6, %v3639_v12  ;;  %v5352_v24 = vpop.eup %5351  ;;  %v3648_v34 = vmul.f32 0.6931472, %v5350_v47 }
 0x5a4   : > { %4935 = vmatprep.mubr.f32.mxu1 %v4322_v26  ;;  %v3741_v53 = vadd.f32 %v3645_v21, %v3517_v13  ;;  %v3657_v61 = vmul.f32 0.6931472, %v5352_v24  ;;  %vm7766_vm10 = vcmp.lt.f32.partialorder %v3670_v32, 0.0004427343  ;;  %v3694_v55 = vmul.f32 -0.5, %v7707_v3 }
 0x5a5   : > { %4936 = vmatmul.mubr.f32.gmra.mxu1 %v4323_v37  ;;  %v4324_v16 = vadd.f32 -0.6931472, %v3740_v41  ;;  %v3654_v38 = vsel %vm7727_vm8, %v3651_v8, %v3648_v34  ;;  %v3709_v25 = vadd.f32 1.0, %v7713_v60  ;;  %v3669_v39 = vmul.f32 %v7678_v58, %v3668_v20 }
 0x5a6   : > { %v5354_v13 = vpop.eup %5353  ;;  %v4325_v18 = vadd.f32 -0.6931472, %v3741_v53  ;;  %v3742_v2 = vadd.f32 %v3654_v38, %v3518_v49  ;;  %v3663_v6 = vsel %vm7752_vm9, %v3660_v4, %v3657_v61  ;;  %v3686_v0 = vadd.f32 1.0, %v3685_v33 }
 0x5a7   : > { %4938 = vmatprep.mubr.f32.mxu1 %v4324_v16  ;;  %v7777_v19 = vpop.eup %5355  ;;  %v3743_v31 = vadd.f32 %v3663_v6, %v3519_v45  ;;  %v3666_v40 = vmul.f32 0.6931472, %v5354_v13  ;;  %v3678_v57 = vmul.f32 %v7691_v11, %v3677_v1  ;;  %v3688_v49 = vand.u32 2147483647, %v7702_v29 }
 0x5a8   : > { %v5358_v8 = vpop.eup %5357  ;;  %v4326_v44 = vadd.f32 -0.6931472, %v3742_v2  ;;  %5365 = vlog2.f32 %v3709_v25  ;;  %v3695_v62 = vadd.f32 1.0, %v3694_v55  ;;  %v3703_v5 = vmul.f32 -0.5, %v7731_v42 }
 0x5a9   : > { %4939 = vmatmul.mubr.f32.gmra.mxu1 %v4325_v18  ;;  %v3672_v43 = vsel %vm7766_vm10, %v3669_v39, %v3666_v40  ;;  %v3675_v27 = vmul.f32 0.6931472, %v5358_v8  ;;  %v4327_v52 = vadd.f32 -0.6931472, %v3743_v31  ;;  %vm3680_vm11 = vcmp.lt.f32.partialorder %v3679_v63, 0.0004427343 }
 0x5aa   : > { %v5360_v45 = vpop.eup %5359  ;;  %4941 = vmatprep.mubr.f32.mxu1 %v4326_v44  ;;  %v3744_v58 = vadd.f32 %v3672_v43, %v3520_v54  ;;  %v3718_v15 = vadd.f32 1.0, %v7777_v19  ;;  %v3687_v10 = vmul.f32 %v7702_v29, %v3686_v0  ;;  %v3697_v12 = vand.u32 2147483647, %v7707_v3 }
 0x5ab   : > { %v3681_v11 = vsel %vm3680_vm11, %v3678_v57, %v3675_v27  ;;  %v3684_v32 = vmul.f32 0.6931472, %v5360_v45  ;;  %vm3689_vm12 = vcmp.lt.f32.partialorder %v3688_v49, 0.0004427343  ;;  %v3696_v59 = vmul.f32 %v7707_v3, %v3695_v62 }
 0x5ac   : > { %v4328_v14 = vadd.f32 -0.6931472, %v3744_v58  ;;  %v3745_v26 = vadd.f32 %v3681_v11, %v3521_v30  ;;  %5367 = vlog2.f32 %v3718_v15  ;;  %v3704_v54 = vadd.f32 1.0, %v3703_v5  ;;  %v4336_v5 = vld [vmem:[%s7908_s13] ss:$0 sm:$0xff] }
 0x5ad   : > { %4942 = vmatmul.mubr.f32.gmra.mxu1 %v4327_v52  ;;  %v5362_v7 = vpop.eup %5361  ;;  %v3690_v4 = vsel %vm3689_vm12, %v3687_v10, %v3684_v32  ;;  %v3727_v36 = vadd.f32 1.0, %v7744_v51  ;;  %v3712_v41 = vmul.f32 -0.5, %v7713_v60  ;;  %v3523_v23 = vmax.f32 %v7603_v56, 0.0 }
 0x5ae   : > { %4944 = vmatprep.mubr.f32.mxu1 %v4328_v14  ;;  %v4329_v47 = vadd.f32 -0.6931472, %v3745_v26  ;;  %v3746_v29 = vadd.f32 %v3690_v4, %v3522_v46  ;;  %v3693_v37 = vmul.f32 0.6931472, %v5362_v7  ;;  %vm3698_vm13 = vcmp.lt.f32.partialorder %v3697_v12, 0.0004427343 }
 0x5af   : > { %v3706_v30 = vand.u32 2147483647, %v7731_v42  ;;  %5369 = vlog2.f32 %v3727_v36  ;;  %v5364_v9 = vpop.eup %5363  ;;  %v3524_v24 = vmax.f32 %v7620_v35, 0.0  ;;  %v3705_v50 = vmul.f32 %v7731_v42, %v3704_v54 }
 0x5b0   : > { %v4330_v21 = vadd.f32 -0.6931472, %v3746_v29  ;;  %v3699_v3 = vsel %vm3698_vm13, %v3696_v59, %v3693_v37  ;;  %v3702_v34 = vmul.f32 0.6931472, %v5364_v9  ;;  %v3713_v46 = vadd.f32 1.0, %v3712_v41 }
 0x5b1   : > { %4945 = vmatmul.mubr.f32.gmra.mxu1 %v4329_v47  ;;  %v3747_v53 = vadd.f32 %v3699_v3, %v3523_v23  ;;  %v3721_v20 = vmul.f32 -0.5, %v7777_v19  ;;  %vm3707_vm15 = vcmp.lt.f32.partialorder %v3706_v30, 0.0004427343  ;;  %v3715_v56 = vand.u32 2147483647, %v7713_v60 }
 0x5b2   : > { %4947 = vmatprep.mubr.f32.mxu1 %v4330_v21  ;;  %v3708_v16 = vsel %vm3707_vm15, %v3705_v50, %v3702_v34  ;;  %v3730_v38 = vmul.f32 -0.5, %v7744_v51  ;;  %v3525_v35 = vmax.f32 %v7615_v17, 0.0  ;;  %v3714_v63 = vmul.f32 %v7713_v60, %v3713_v46 }
 0x5b3   : > { %v4331_v33 = vadd.f32 -0.6931472, %v3747_v53  ;;  %v3748_v1 = vadd.f32 %v3708_v16, %v3524_v24  ;;  %v3722_v55 = vadd.f32 1.0, %v3721_v20  ;;  %vm3716_vm0 = vcmp.lt.f32.partialorder %v3715_v56, 0.0004427343 }
 0x5b4   : > { %v3724_v13 = vand.u32 2147483647, %v7777_v19  ;;  %v3731_v25 = vadd.f32 1.0, %v3730_v38  ;;  %v3733_v39 = vand.u32 2147483647, %v7744_v51  ;;  %v3526_v17 = vmax.f32 %v7636_v28, 0.0 }
 0x5b5   : > { %v5366_v61 = vpop.eup %5365  ;;  %4948 = vmatmul.mubr.f32.gmra.mxu1 %v4331_v33  ;;  %v4332_v42 = vadd.f32 -0.6931472, %v3748_v1  ;;  %v3723_v40 = vmul.f32 %v7777_v19, %v3722_v55  ;;  %v3527_v43 = vmax.f32 %v7625_v22, 0.0 }
 0x5b6   : > { %v3711_v48 = vmul.f32 0.6931472, %v5366_v61  ;;  %vm3725_vm1 = vcmp.lt.f32.partialorder %v3724_v13, 0.0004427343  ;;  %v3732_v49 = vmul.f32 %v7744_v51, %v3731_v25  ;;  %vm3734_vm14 = vcmp.lt.f32.partialorder %v3733_v39, 0.0004427343 }
 0x5b7   : > { %4950 = vmatprep.mubr.f32.mxu1 %v4332_v42 }
 0x5b8   : > { %v3717_v18 = vsel %vm3716_vm0, %v3714_v63, %v3711_v48 }
 0x5b9   : > { %v5368_v2 = vpop.eup %5367  ;;  %v3749_v6 = vadd.f32 %v3717_v18, %v3525_v35 }
 0x5ba   : > { %v3720_v31 = vmul.f32 0.6931472, %v5368_v2 }
 0x5bb   : > { %v4333_v0 = vadd.f32 -0.6931472, %v3749_v6 }
 0x5bc   : > { %v5370_v60 = vpop.eup %5369  ;;  %v3726_v8 = vsel %vm3725_vm1, %v3723_v40, %v3720_v31 }
 0x5bd   : > { %4951 = vmatmul.mubr.f32.gmra.mxu1 %v4333_v0  ;;  %v3750_v44 = vadd.f32 %v3726_v8, %v3526_v17  ;;  %v3729_v57 = vmul.f32 0.6931472, %v5370_v60 }
 0x5bf   : > { %v4334_v27 = vadd.f32 -0.6931472, %v3750_v44  ;;  %v3735_v19 = vsel %vm3734_vm14, %v3732_v49, %v3729_v57 }
 0x5c0   : > { %v3751_v62 = vadd.f32 %v3735_v19, %v3527_v43 }
 0x5c1   : > { %4953 = vmatprep.mubr.f32.mxu1 %v4334_v27 }
 0x5c2   : > { %v4335_v28 = vadd.f32 -0.6931472, %v3751_v62 }
 0x5c4   : > { %4954 = vmatmul.mubr.f32.gmra.mxu1 %v4335_v28 }
 0x65f   : > { %v4934_v45 = vpop.f32.mrf.mxu1 }
 0x660   : > { %v3863_v52 = vadd.f32 %v4934_v45, %v4336_v5 }
 0x661   : > { %v3857_v58 = vpop.f32.mrf.mxu1 }
 0x662   : > { %3937 = vst [vmem:[%s5640_s23 + $0x8] sm:$0xff] %v3863_v52  ;;  %v3858_v22 = vadd.f32 %v4336_v5, %v3857_v58 }
 0x664   : > { %3936 = vst [vmem:[%s5640_s23] sm:$0xff] %v3858_v22 }
 0x665   : > { %v4937_v51 = vpop.f32.mrf.mxu1 }
 0x666   : > { %v3873_v15 = vadd.f32 %v4937_v51, %v4336_v5 }
 0x667   : > { %v3867_v11 = vpop.f32.mrf.mxu1 }
 0x668   : > { %3939 = vst [vmem:[%s5640_s23 + $0x18] sm:$0xff] %v3873_v15  ;;  %v3868_v32 = vadd.f32 %v4336_v5, %v3867_v11 }
 0x669   : > { %v4940_v10 = vpop.f32.mrf.mxu1 }
 0x66a   : > { %3938 = vst [vmem:[%s5640_s23 + $0x10] sm:$0xff] %v3868_v32  ;;  %v3883_v12 = vadd.f32 %v4940_v10, %v4336_v5 }
 0x66b   : > { %v3877_v14 = vpop.f32.mrf.mxu1 }
 0x66c   : > { %3941 = vst [vmem:[%s5640_s23 + $0x28] sm:$0xff] %v3883_v12  ;;  %v3878_v26 = vadd.f32 %v4336_v5, %v3877_v14 }
 0x66d   : > { %v4943_v7 = vpop.f32.mrf.mxu1 }
 0x66e   : > { %3940 = vst [vmem:[%s5640_s23 + $0x20] sm:$0xff] %v3878_v26  ;;  %v3893_v4 = vadd.f32 %v4943_v7, %v4336_v5 }
 0x66f   : > { %v3887_v59 = vpop.f32.mrf.mxu1 }
 0x670   : > { %3943 = vst [vmem:[%s5640_s23 + $0x38] sm:$0xff] %v3893_v4  ;;  %v3888_v54 = vadd.f32 %v4336_v5, %v3887_v59 }
 0x671   : > { %v4946_v36 = vpop.f32.mrf.mxu1 }
 0x672   : > { %3942 = vst [vmem:[%s5640_s23 + $0x30] sm:$0xff] %v3888_v54  ;;  %v3903_v47 = vadd.f32 %v4946_v36, %v4336_v5 }
 0x673   : > { %v3897_v29 = vpop.f32.mrf.mxu1 }
 0x674   : > { %3945 = vst [vmem:[%s5640_s23 + $0x48] sm:$0xff] %v3903_v47  ;;  %v3898_v37 = vadd.f32 %v4336_v5, %v3897_v29 }
 0x675   : > { %v4949_v41 = vpop.f32.mrf.mxu1 }
 0x676   : > { %3944 = vst [vmem:[%s5640_s23 + $0x40] sm:$0xff] %v3898_v37  ;;  %v3913_v23 = vadd.f32 %v4949_v41, %v4336_v5 }
 0x677   : > { %v3907_v30 = vpop.f32.mrf.mxu1 }
 0x678   : > { %3947 = vst [vmem:[%s5640_s23 + $0x58] sm:$0xff] %v3913_v23  ;;  %v3908_v21 = vadd.f32 %v4336_v5, %v3907_v30 }
 0x67a   : > { %3946 = vst [vmem:[%s5640_s23 + $0x50] sm:$0xff] %v3908_v21 }
 0x67d   : > { %v4952_v3 = vpop.f32.mrf.mxu1 }
 0x67e   : > { %v3923_v9 = vadd.f32 %v4952_v3, %v4336_v5 }
 0x67f   : > { %v3917_v24 = vpop.f32.mrf.mxu1 }
 0x680   : > { %3949 = vst [vmem:[%s5640_s23 + $0x68] sm:$0xff] %v3923_v9  ;;  %v3918_v53 = vadd.f32 %v4336_v5, %v3917_v24 }
 0x682   : > { %3948 = vst [vmem:[%s5640_s23 + $0x60] sm:$0xff] %v3918_v53 }
 0x684   : > { %v4955_v34 = vpop.f32.mrf.mxu1 }
 0x685   : > { %v3933_v50 = vadd.f32 %v4955_v34, %v4336_v5 }
 0x686   : > { %v3927_v46 = vpop.f32.mrf.mxu1 }
 0x687   : > { %3951 = vst [vmem:[%s5640_s23 + $0x78] sm:$0xff] %v3933_v50  ;;  %v3928_v20 = vadd.f32 %v4336_v5, %v3927_v46 }
 0x689   : > { %3950 = vst [vmem:[%s5640_s23 + $0x70] sm:$0xff] %v3928_v20 }
 0x68a PF: > { %s8187_s16 = sld [smem:[#allocation8_spill]]  ;;  %s4342_s15 = sshll.u32 %s5451_s17, 11 }
 0x68b   : > { %s8189_s25 = sld [smem:[#allocation73_spill]]  ;;  %s3966_s22 = sshll.u32 %s5640_s23, 4  ;;  %s7840_s22 = int_to_ptr.vmem [resolvable:$true] %s3966_s22 }
 0x68c   : > { %s5371_s14 = scalar_lea.vmem %s7840_s22, 2048  ;;  %s5469_s17 = smov [#allocation4]  }
 0x68d   : > { %p5372_p1 = scmp.ne.s32.totalorder %s7840_s22, %s5371_s14  ;;  %s5375_s20 = sshll.u32 %s5469_s17, 4  ;;  %s5376_s20 = int_to_ptr.vmem [resolvable:$false] %s5375_s20 }
 0x68e   : > { %s5377_s24 = scalar_lea.vmem %s5376_s20, 4096  ;;  %p5378_p5 = scmp.lt.s32.totalorder %s7840_s22, %s5376_s20 }
 0x68f   : > { %p5373_p2 = pnand %p5372_p1, %p5596_p3  ;;  %p5379_p6 = scmp.lt.s32.totalorder %s5377_s24, %s5371_s14 }
 0x690   : > { %s8190_s30 = sand.u32 1, %s8187_s16  }
 0x691   : > { %s7837_s21 = scalar_lea.hbm %s8189_s25, %s4342_s15  ;;  %s7844_s26 = scalar_lea.sflag [#allocation5], %s8190_s30 }
 0x692   : > { %p5374_p4 = pneg %p5373_p2  ;;  %p5380_p7 = por %p5379_p6, %p5378_p5 }
 0x694   : > { %p5381_p8 = pnand %p5380_p7, %p5374_p4 }
 0x696   : > { %5384 = shalt.err (!%p5381_p8)
}
 0x697   : > { %s5385_s23 = scalar_lea.hbm %s7837_s21, 2048  ;;  %s5389_s16 = scalar_lea.hbm %s8189_s25, 4096 }
 0x698   : > { %p5386_p10 = scmp.ne.s32.totalorder %s7837_s21, %s5385_s23  ;;  %p5390_p13 = scmp.lt.s32.totalorder %s7837_s21, %s8189_s25 }
 0x699   : > { %p5391_p0 = scmp.lt.s32.totalorder %s5389_s16, %s5385_s23 }
 0x69a   : > { %p5387_p11 = pnand %p5386_p10, %p5596_p3 }
 0x69b   : > { %p5392_p1 = por %p5391_p0, %p5390_p13 }
 0x69c   : > { %p5388_p12 = pneg %p5387_p11 }
 0x69e   : > { %p5393_p2 = pnand %p5392_p1, %p5388_p12 }
 0x6a0   : > { %5396 = shalt.err (!%p5393_p2)
}
 0x6a1   : > { %s5470_s18 = smov 128   ;;  %s5471_s30 = smov 8  }
 0x6a2   : > { %4988 = dma.vmem_to_hbm [thread:$0]  (%p5596_p3), %s7840_s22, 2048, %s7837_s21, %s7844_s26, %s5470_s18, %s5470_s18, %s5471_s30  }
 0x6a3 PF: > { %s8191_s14 = sld [smem:[#allocation12_spill]] }
 0x6a4   : > { %s8192_s17 = sld [smem:[#allocation7_spill]] }
 0x6a9   : > { %p4994_p4 = scmp.ge.s32.totalorder %s8191_s14, 2 }
 0x6aa   : > { %s3981_s24 = sand.u32 1, %s8192_s17  }
 0x6ab   : > { %p4991_p5 = pnand %p4994_p4, %p5606_p9  ;;  %s3982_s23 = scalar_lea.sflag [#allocation5], %s3981_s24 }
 0x6ad   : > { %p4992_p6 = pneg %p4991_p5 }
 0x6af   : > { %5430 = dma.done.wait (%p4992_p6), %s3982_s23, 2048  }
 0x6b0   : > { %5432 = vsyncadd (%p4992_p6), %s3982_s23, 4294965248  ;;  %s27_s20 = sadd.s32 1, %s8191_s14   ;;  %s8194_s29 = sld [smem:[#allocation8_spill]] }
 0x6b1   : > { %p24_p7 = scmp.ge.s32.totalorder %s27_s20, 10   ;;  %s8195_s30 = sld [smem:[#allocation9_spill]] }
 0x6b2   : > { %s8196_s15 = sld [smem:[#allocation17_spill]] }
 0x6b3   : > { %s8197_s16 = sld [smem:[#allocation10_spill]]  ;;  %26 = sbr.rel (!%p24_p7) target bundleno = 7 (0x7), region = 128 }
 0x6b4   : > { %s8198_s17 = sld [smem:[#allocation11_spill]] }
 0x6b5   : > { %s8199_s18 = sld [smem:[#allocation13_spill]] }
 0x6b6   : > { %s8200_s19 = sld [smem:[#allocation15_spill]] }
 0x6b8   :  { %3987 = vsyncpa [#allocation5], 1 }
 0x6b9   :  { %3989 = vsyncpa [#allocation5 + $0x1], 1 }

</bundles_post_ra>
